<compile_context>
chip_gen: v7x
topology: tpu7x:2x2x1
jax: 0.10.0
libtpu: 0.0.40
codegen_flags: <defaults>
</compile_context>

<pallas_src>
import math
import jax
import jax.numpy as jnp
from jax.experimental import pallas as pl
from jax.experimental.pallas import tpu as pltpu

LATENT_DIM = 100
LATENT_PAD = 128                      # lane-aligned latent (zero-padded)
IMG_SHAPE = (1, 28, 28)
IMG_FLAT = IMG_SHAPE[0] * IMG_SHAPE[1] * IMG_SHAPE[2]   # 784
IMG_PAD = 896                         # 7 * 128, lane-aligned output width
LEAKY_SLOPE = 0.2
BN_EPS = 0.8
W_DTYPE = jnp.bfloat16                # weight / matmul-input dtype


def _leaky_relu(x):
    # max(x, a*x) == LeakyReLU(a) for 0 < a < 1; one VPU op cheaper than where().
    return jnp.maximum(x, LEAKY_SLOPE * x)


def _batchnorm_train(x, gamma, beta):
    # BatchNorm1d (training mode) over the rows of the current BN batch.
    # Single pass: var = E[x^2] - mean^2 (can be tiny-negative before +eps in
    # pathological cases; eps=0.8 keeps rsqrt finite and well conditioned).
    # Affine folded: out = x*scale + shift  (2 full-tile VPU ops, not 4).
    inv_n = 1.0 / x.shape[0]
    mean = jnp.sum(x, axis=0, keepdims=True) * inv_n
    var = jnp.sum(x * x, axis=0, keepdims=True) * inv_n - mean * mean
    scale = gamma * jax.lax.rsqrt(var + BN_EPS)
    shift = beta - mean * scale
    return x * scale + shift


def _dot_bf16(x_f32, w_bf16):
    # bf16 MXU matmul with f32 accumulation.
    return jnp.dot(x_f32.astype(W_DTYPE), w_bf16,
                   preferred_element_type=jnp.float32)


def generator_kernel(z_ref,
                     w1_ref, b1_ref,
                     w2_ref, g2_ref, be2_ref,
                     w3_ref, g3_ref, be3_ref,
                     w4_ref, g4_ref, be4_ref,
                     w5_ref, b5_ref,
                     out_ref):
    z = z_ref[...]

    # block(latent_dim, 128, normalize=False): Linear + LeakyReLU
    h = _leaky_relu(_dot_bf16(z, w1_ref[...]) + b1_ref[...])

    # Linear bias before training-mode BatchNorm is exactly cancelled by the
    # batch-mean subtraction, so layers 2-4 carry no bias (identical output).
    # block(128, 256)
    h = _leaky_relu(_batchnorm_train(_dot_bf16(h, w2_ref[...]),
                                     g2_ref[...], be2_ref[...]))
    # block(256, 512)
    h = _leaky_relu(_batchnorm_train(_dot_bf16(h, w3_ref[...]),
                                     g3_ref[...], be3_ref[...]))
    # block(512, 1024)
    h = _leaky_relu(_batchnorm_train(_dot_bf16(h, w4_ref[...]),
                                     g4_ref[...], be4_ref[...]))

    # Linear(1024, 784 [padded to 896]) + Tanh
    out_ref[...] = jnp.tanh(_dot_bf16(h, w5_ref[...]) + b5_ref[...])


def init_params(key):
    """PyTorch-style init: U(-1/sqrt(fan_in), 1/sqrt(fan_in)) for Linear
    weight/bias; gamma=1, beta=0 for BatchNorm.  Weights padded to
    lane-aligned shapes and cast to bf16; biases / BN params stay f32.
    Biases of Linear layers that feed a training-mode BatchNorm are omitted
    (they cancel exactly in the forward pass)."""
    specs = [
        (LATENT_DIM, 128, False),
        (128, 256, True),
        (256, 512, True),
        (512, 1024, True),
        (1024, IMG_FLAT, False),
    ]
    params = []
    for i, (fan_in, fan_out, has_bn) in enumerate(specs):
        key, kw, kb = jax.random.split(key, 3)
        bound = 1.0 / math.sqrt(fan_in)
        w = jax.random.uniform(kw, (fan_in, fan_out), jnp.float32, -bound, bound)
        if i == 0:
            # zero-pad input rows 100 -> 128 (matches zero-padded z columns)
            w = jnp.pad(w, ((0, LATENT_PAD - LATENT_DIM), (0, 0)))
        if i == len(specs) - 1:
            # zero-pad output columns 784 -> 896 (sliced off in wrapper)
            w = jnp.pad(w, ((0, 0), (0, IMG_PAD - IMG_FLAT)))
        params.append(w.astype(W_DTYPE))           # bf16 weights
        if has_bn:
            params.append(jnp.ones((1, fan_out), jnp.float32))    # gamma
            params.append(jnp.zeros((1, fan_out), jnp.float32))   # beta
        else:
            b = jax.random.uniform(kb, (1, fan_out), jnp.float32, -bound, bound)
            if i == len(specs) - 1:
                b = jnp.pad(b, ((0, 0), (0, IMG_PAD - IMG_FLAT)))
            params.append(b)                       # f32 bias
    return tuple(params)


def generator_forward(z, params, bn_batch=None):
    """z: (B, 100).  If bn_batch is None the whole batch is one BatchNorm
    batch (exactly one PyTorch forward).  Otherwise B must be a multiple of
    bn_batch and the call is equivalent to B//bn_batch independent forwards,
    executed as a grid with weights VMEM-resident across all steps."""
    B = z.shape[0]
    if bn_batch is None:
        bn_batch = B
    assert B % bn_batch == 0, "batch must be a multiple of bn_batch"
    G = B // bn_batch
    if G > 1:
        assert bn_batch % 8 == 0, "per-group batch must be sublane(8)-aligned"

    # Zero-pad latent 100 -> 128 for a clean lane-aligned first matmul.
    z_pad = jnp.pad(z.astype(jnp.float32), ((0, 0), (0, LATENT_PAD - LATENT_DIM)))

    (w1, b1, w2, g2, be2, w3, g3, be3, w4, g4, be4, w5, b5) = params

    def const_spec(arr):
        # Full-array block, constant block index -> loaded once, resident in
        # VMEM across the whole batch-group grid.
        return pl.BlockSpec(arr.shape, lambda g: (0, 0))

    in_specs = [
        pl.BlockSpec((bn_batch, LATENT_PAD), lambda g: (g, 0)),   # z walks grid
        const_spec(w1), const_spec(b1),
        const_spec(w2), const_spec(g2), const_spec(be2),
        const_spec(w3), const_spec(g3), const_spec(be3),
        const_spec(w4), const_spec(g4), const_spec(be4),
        const_spec(w5), const_spec(b5),
    ]

    out_flat = pl.pallas_call(
        generator_kernel,
        out_shape=jax.ShapeDtypeStruct((B, IMG_PAD), jnp.float32),
        grid=(G,),
        in_specs=in_specs,
        out_specs=pl.BlockSpec((bn_batch, IMG_PAD), lambda g: (g, 0)),
        compiler_params=pltpu.CompilerParams(
            dimension_semantics=("parallel",),     # v7x: shard groups over TCs
            vmem_limit_bytes=32 << 20),
    )(z_pad, *params)

    # img = img.view(img.size(0), *img_shape)  -> NCHW (strip lane padding)
    return out_flat[:, :IMG_FLAT].reshape(B, *IMG_SHAPE)


if __name__ == "__main__":
    key = jax.random.PRNGKey(0)
    key_z, key_p = jax.random.split(key)
    params = init_params(key_p)

    # --- Exact module semantics: single BN batch (G = 1) -------------------
    B = 8
    z = jax.random.normal(key_z, (B, LATENT_DIM), dtype=jnp.float32)
    img = jax.jit(generator_forward)(z, params)
    jax.block_until_ready(img)
    assert img.shape == (B, *IMG_SHAPE), img.shape
    assert img.dtype == jnp.float32
    assert bool(jnp.all(jnp.isfinite(img)))
    assert bool(jnp.all(jnp.abs(img) <= 1.0))

    # --- Grid path: 4 independent BN batches of 8 in one pallas_call -------
    # (weights stay VMEM-resident across the grid; equivalent to 4 separate
    #  module calls on the 4 row-groups)
    z_big = jax.random.normal(jax.random.fold_in(key_z, 1), (32, LATENT_DIM),
                              dtype=jnp.float32)
    fwd_grid = jax.jit(lambda zz, pp: generator_forward(zz, pp, bn_batch=8))
    img_big = fwd_grid(z_big, params)
    jax.block_until_ready(img_big)
    assert img_big.shape == (32, *IMG_SHAPE)
    assert bool(jnp.all(jnp.isfinite(img_big)))

    # Cross-check: first grid group == standalone G=1 call on the same rows.
    ref0 = jax.jit(generator_forward)(z_big[:8], params)
    assert bool(jnp.allclose(img_big[:8], ref0, atol=2e-2, rtol=2e-2))

    print("KERNEL_OK")
</pallas_src>

<mosaic_0001>
module attributes {stable_mosaic.version = 11 : i64} {
  func.func @generator_kernel(%arg0: i32, %arg1: memref<8x128xf32, #tpu.memory_space<vmem>>, %arg2: memref<128x128xbf16, #tpu.memory_space<vmem>>, %arg3: memref<1x128xf32, #tpu.memory_space<vmem>>, %arg4: memref<128x256xbf16, #tpu.memory_space<vmem>>, %arg5: memref<1x256xf32, #tpu.memory_space<vmem>>, %arg6: memref<1x256xf32, #tpu.memory_space<vmem>>, %arg7: memref<256x512xbf16, #tpu.memory_space<vmem>>, %arg8: memref<1x512xf32, #tpu.memory_space<vmem>>, %arg9: memref<1x512xf32, #tpu.memory_space<vmem>>, %arg10: memref<512x1024xbf16, #tpu.memory_space<vmem>>, %arg11: memref<1x1024xf32, #tpu.memory_space<vmem>>, %arg12: memref<1x1024xf32, #tpu.memory_space<vmem>>, %arg13: memref<1024x896xbf16, #tpu.memory_space<vmem>>, %arg14: memref<1x896xf32, #tpu.memory_space<vmem>>, %arg15: memref<8x896xf32, #tpu.memory_space<vmem>>) attributes {dimension_semantics = [#tpu.dimension_semantics<parallel>], iteration_bounds = array<i64: 1>, scalar_prefetch = 0 : i64, scratch_operands = 0 : i64, tpu.core_type = #tpu.core_type<tc>, window_params = [{transform_indices = @transform_0, window_bounds = array<i64: 8, 128>}, {pipeline_mode = #tpu.pipeline_mode<synchronous>, transform_indices = @transform_1, window_bounds = array<i64: 128, 128>}, {pipeline_mode = #tpu.pipeline_mode<synchronous>, transform_indices = @transform_2, window_bounds = array<i64: 1, 128>}, {pipeline_mode = #tpu.pipeline_mode<synchronous>, transform_indices = @transform_3, window_bounds = array<i64: 128, 256>}, {pipeline_mode = #tpu.pipeline_mode<synchronous>, transform_indices = @transform_4, window_bounds = array<i64: 1, 256>}, {pipeline_mode = #tpu.pipeline_mode<synchronous>, transform_indices = @transform_5, window_bounds = array<i64: 1, 256>}, {pipeline_mode = #tpu.pipeline_mode<synchronous>, transform_indices = @transform_6, window_bounds = array<i64: 256, 512>}, {pipeline_mode = #tpu.pipeline_mode<synchronous>, transform_indices = @transform_7, window_bounds = array<i64: 1, 512>}, {pipeline_mode = #tpu.pipeline_mode<synchronous>, transform_indices = @transform_8, window_bounds = array<i64: 1, 512>}, {pipeline_mode = #tpu.pipeline_mode<synchronous>, transform_indices = @transform_9, window_bounds = array<i64: 512, 1024>}, {pipeline_mode = #tpu.pipeline_mode<synchronous>, transform_indices = @transform_10, window_bounds = array<i64: 1, 1024>}, {pipeline_mode = #tpu.pipeline_mode<synchronous>, transform_indices = @transform_11, window_bounds = array<i64: 1, 1024>}, {pipeline_mode = #tpu.pipeline_mode<synchronous>, transform_indices = @transform_12, window_bounds = array<i64: 1024, 896>}, {pipeline_mode = #tpu.pipeline_mode<synchronous>, transform_indices = @transform_13, window_bounds = array<i64: 1, 896>}, {transform_indices = @transform_14, window_bounds = array<i64: 8, 896>}]} {
    %c0 = arith.constant 0 : index
    %c0_0 = arith.constant 0 : index
    %0 = vector.load %arg1[%c0, %c0_0] : memref<8x128xf32, #tpu.memory_space<vmem>>, vector<8x128xf32>
    %c0_1 = arith.constant 0 : index
    %c0_2 = arith.constant 0 : index
    %1 = vector.load %arg2[%c0_1, %c0_2] : memref<128x128xbf16, #tpu.memory_space<vmem>>, vector<128x128xbf16>
    %2 = arith.truncf %0 : vector<8x128xf32> to vector<8x128xbf16>
    %cst = arith.constant dense<0.000000e+00> : vector<8x128xf32>
    %3 = tpu.matmul %2, %1, %cst {dimension_numbers = #tpu.dot_dimension_numbers<[1], [0], [0], [1], [0, 0, 1, 1], [], []>} : vector<8x128xbf16>, vector<128x128xbf16>, vector<8x128xf32> -> vector<8x128xf32>
    %c0_3 = arith.constant 0 : index
    %c0_4 = arith.constant 0 : index
    %4 = vector.load %arg3[%c0_3, %c0_4] : memref<1x128xf32, #tpu.memory_space<vmem>>, vector<1x128xf32>
    %5 = vector.broadcast %4 : vector<1x128xf32> to vector<8x128xf32>
    %6 = arith.addf %3, %5 : vector<8x128xf32>
    %cst_5 = arith.constant 2.000000e-01 : f32
    %7 = vector.broadcast %cst_5 : f32 to vector<8x128xf32>
    %8 = arith.mulf %7, %6 : vector<8x128xf32>
    %9 = arith.maximumf %6, %8 : vector<8x128xf32>
    %c0_6 = arith.constant 0 : index
    %c0_7 = arith.constant 0 : index
    %10 = vector.load %arg4[%c0_6, %c0_7] : memref<128x256xbf16, #tpu.memory_space<vmem>>, vector<128x256xbf16>
    %11 = arith.truncf %9 : vector<8x128xf32> to vector<8x128xbf16>
    %cst_8 = arith.constant dense<0.000000e+00> : vector<8x256xf32>
    %12 = tpu.matmul %11, %10, %cst_8 {dimension_numbers = #tpu.dot_dimension_numbers<[1], [0], [0], [1], [0, 0, 1, 1], [], []>} : vector<8x128xbf16>, vector<128x256xbf16>, vector<8x256xf32> -> vector<8x256xf32>
    %c0_9 = arith.constant 0 : index
    %c0_10 = arith.constant 0 : index
    %13 = vector.load %arg5[%c0_9, %c0_10] : memref<1x256xf32, #tpu.memory_space<vmem>>, vector<1x256xf32>
    %c0_11 = arith.constant 0 : index
    %c0_12 = arith.constant 0 : index
    %14 = vector.load %arg6[%c0_11, %c0_12] : memref<1x256xf32, #tpu.memory_space<vmem>>, vector<1x256xf32>
    %cst_13 = arith.constant dense<0.000000e+00> : vector<256xf32>
    %15 = vector.multi_reduction <add>, %12, %cst_13 [0] : vector<8x256xf32> to vector<256xf32>
    %16 = vector.shape_cast %15 : vector<256xf32> to vector<1x256xf32>
    %cst_14 = arith.constant 1.250000e-01 : f32
    %17 = vector.broadcast %cst_14 : f32 to vector<1x256xf32>
    %18 = arith.mulf %16, %17 : vector<1x256xf32>
    %19 = arith.mulf %12, %12 : vector<8x256xf32>
    %cst_15 = arith.constant dense<0.000000e+00> : vector<256xf32>
    %20 = vector.multi_reduction <add>, %19, %cst_15 [0] : vector<8x256xf32> to vector<256xf32>
    %21 = vector.shape_cast %20 : vector<256xf32> to vector<1x256xf32>
    %cst_16 = arith.constant 1.250000e-01 : f32
    %22 = vector.broadcast %cst_16 : f32 to vector<1x256xf32>
    %23 = arith.mulf %21, %22 : vector<1x256xf32>
    %24 = arith.mulf %18, %18 : vector<1x256xf32>
    %25 = arith.subf %23, %24 : vector<1x256xf32>
    %cst_17 = arith.constant 8.000000e-01 : f32
    %26 = vector.broadcast %cst_17 : f32 to vector<1x256xf32>
    %27 = arith.addf %25, %26 : vector<1x256xf32>
    %28 = math.rsqrt %27 : vector<1x256xf32>
    %29 = arith.mulf %13, %28 : vector<1x256xf32>
    %30 = arith.mulf %18, %29 : vector<1x256xf32>
    %31 = arith.subf %14, %30 : vector<1x256xf32>
    %32 = vector.broadcast %29 : vector<1x256xf32> to vector<8x256xf32>
    %33 = arith.mulf %12, %32 : vector<8x256xf32>
    %34 = vector.broadcast %31 : vector<1x256xf32> to vector<8x256xf32>
    %35 = arith.addf %33, %34 : vector<8x256xf32>
    %cst_18 = arith.constant 2.000000e-01 : f32
    %36 = vector.broadcast %cst_18 : f32 to vector<8x256xf32>
    %37 = arith.mulf %36, %35 : vector<8x256xf32>
    %38 = arith.maximumf %35, %37 : vector<8x256xf32>
    %c0_19 = arith.constant 0 : index
    %c0_20 = arith.constant 0 : index
    %39 = vector.load %arg7[%c0_19, %c0_20] : memref<256x512xbf16, #tpu.memory_space<vmem>>, vector<256x512xbf16>
    %40 = arith.truncf %38 : vector<8x256xf32> to vector<8x256xbf16>
    %cst_21 = arith.constant dense<0.000000e+00> : vector<8x512xf32>
    %41 = tpu.matmul %40, %39, %cst_21 {dimension_numbers = #tpu.dot_dimension_numbers<[1], [0], [0], [1], [0, 0, 1, 1], [], []>} : vector<8x256xbf16>, vector<256x512xbf16>, vector<8x512xf32> -> vector<8x512xf32>
    %c0_22 = arith.constant 0 : index
    %c0_23 = arith.constant 0 : index
    %42 = vector.load %arg8[%c0_22, %c0_23] : memref<1x512xf32, #tpu.memory_space<vmem>>, vector<1x512xf32>
    %c0_24 = arith.constant 0 : index
    %c0_25 = arith.constant 0 : index
    %43 = vector.load %arg9[%c0_24, %c0_25] : memref<1x512xf32, #tpu.memory_space<vmem>>, vector<1x512xf32>
    %cst_26 = arith.constant dense<0.000000e+00> : vector<512xf32>
    %44 = vector.multi_reduction <add>, %41, %cst_26 [0] : vector<8x512xf32> to vector<512xf32>
    %45 = vector.shape_cast %44 : vector<512xf32> to vector<1x512xf32>
    %cst_27 = arith.constant 1.250000e-01 : f32
    %46 = vector.broadcast %cst_27 : f32 to vector<1x512xf32>
    %47 = arith.mulf %45, %46 : vector<1x512xf32>
    %48 = arith.mulf %41, %41 : vector<8x512xf32>
    %cst_28 = arith.constant dense<0.000000e+00> : vector<512xf32>
    %49 = vector.multi_reduction <add>, %48, %cst_28 [0] : vector<8x512xf32> to vector<512xf32>
    %50 = vector.shape_cast %49 : vector<512xf32> to vector<1x512xf32>
    %cst_29 = arith.constant 1.250000e-01 : f32
    %51 = vector.broadcast %cst_29 : f32 to vector<1x512xf32>
    %52 = arith.mulf %50, %51 : vector<1x512xf32>
    %53 = arith.mulf %47, %47 : vector<1x512xf32>
    %54 = arith.subf %52, %53 : vector<1x512xf32>
    %cst_30 = arith.constant 8.000000e-01 : f32
    %55 = vector.broadcast %cst_30 : f32 to vector<1x512xf32>
    %56 = arith.addf %54, %55 : vector<1x512xf32>
    %57 = math.rsqrt %56 : vector<1x512xf32>
    %58 = arith.mulf %42, %57 : vector<1x512xf32>
    %59 = arith.mulf %47, %58 : vector<1x512xf32>
    %60 = arith.subf %43, %59 : vector<1x512xf32>
    %61 = vector.broadcast %58 : vector<1x512xf32> to vector<8x512xf32>
    %62 = arith.mulf %41, %61 : vector<8x512xf32>
    %63 = vector.broadcast %60 : vector<1x512xf32> to vector<8x512xf32>
    %64 = arith.addf %62, %63 : vector<8x512xf32>
    %cst_31 = arith.constant 2.000000e-01 : f32
    %65 = vector.broadcast %cst_31 : f32 to vector<8x512xf32>
    %66 = arith.mulf %65, %64 : vector<8x512xf32>
    %67 = arith.maximumf %64, %66 : vector<8x512xf32>
    %c0_32 = arith.constant 0 : index
    %c0_33 = arith.constant 0 : index
    %68 = vector.load %arg10[%c0_32, %c0_33] : memref<512x1024xbf16, #tpu.memory_space<vmem>>, vector<512x1024xbf16>
    %69 = arith.truncf %67 : vector<8x512xf32> to vector<8x512xbf16>
    %cst_34 = arith.constant dense<0.000000e+00> : vector<8x1024xf32>
    %70 = tpu.matmul %69, %68, %cst_34 {dimension_numbers = #tpu.dot_dimension_numbers<[1], [0], [0], [1], [0, 0, 1, 1], [], []>} : vector<8x512xbf16>, vector<512x1024xbf16>, vector<8x1024xf32> -> vector<8x1024xf32>
    %c0_35 = arith.constant 0 : index
    %c0_36 = arith.constant 0 : index
    %71 = vector.load %arg11[%c0_35, %c0_36] : memref<1x1024xf32, #tpu.memory_space<vmem>>, vector<1x1024xf32>
    %c0_37 = arith.constant 0 : index
    %c0_38 = arith.constant 0 : index
    %72 = vector.load %arg12[%c0_37, %c0_38] : memref<1x1024xf32, #tpu.memory_space<vmem>>, vector<1x1024xf32>
    %cst_39 = arith.constant dense<0.000000e+00> : vector<1024xf32>
    %73 = vector.multi_reduction <add>, %70, %cst_39 [0] : vector<8x1024xf32> to vector<1024xf32>
    %74 = vector.shape_cast %73 : vector<1024xf32> to vector<1x1024xf32>
    %cst_40 = arith.constant 1.250000e-01 : f32
    %75 = vector.broadcast %cst_40 : f32 to vector<1x1024xf32>
    %76 = arith.mulf %74, %75 : vector<1x1024xf32>
    %77 = arith.mulf %70, %70 : vector<8x1024xf32>
    %cst_41 = arith.constant dense<0.000000e+00> : vector<1024xf32>
    %78 = vector.multi_reduction <add>, %77, %cst_41 [0] : vector<8x1024xf32> to vector<1024xf32>
    %79 = vector.shape_cast %78 : vector<1024xf32> to vector<1x1024xf32>
    %cst_42 = arith.constant 1.250000e-01 : f32
    %80 = vector.broadcast %cst_42 : f32 to vector<1x1024xf32>
    %81 = arith.mulf %79, %80 : vector<1x1024xf32>
    %82 = arith.mulf %76, %76 : vector<1x1024xf32>
    %83 = arith.subf %81, %82 : vector<1x1024xf32>
    %cst_43 = arith.constant 8.000000e-01 : f32
    %84 = vector.broadcast %cst_43 : f32 to vector<1x1024xf32>
    %85 = arith.addf %83, %84 : vector<1x1024xf32>
    %86 = math.rsqrt %85 : vector<1x1024xf32>
    %87 = arith.mulf %71, %86 : vector<1x1024xf32>
    %88 = arith.mulf %76, %87 : vector<1x1024xf32>
    %89 = arith.subf %72, %88 : vector<1x1024xf32>
    %90 = vector.broadcast %87 : vector<1x1024xf32> to vector<8x1024xf32>
    %91 = arith.mulf %70, %90 : vector<8x1024xf32>
    %92 = vector.broadcast %89 : vector<1x1024xf32> to vector<8x1024xf32>
    %93 = arith.addf %91, %92 : vector<8x1024xf32>
    %cst_44 = arith.constant 2.000000e-01 : f32
    %94 = vector.broadcast %cst_44 : f32 to vector<8x1024xf32>
    %95 = arith.mulf %94, %93 : vector<8x1024xf32>
    %96 = arith.maximumf %93, %95 : vector<8x1024xf32>
    %c0_45 = arith.constant 0 : index
    %c0_46 = arith.constant 0 : index
    %97 = vector.load %arg13[%c0_45, %c0_46] : memref<1024x896xbf16, #tpu.memory_space<vmem>>, vector<1024x896xbf16>
    %98 = arith.truncf %96 : vector<8x1024xf32> to vector<8x1024xbf16>
    %cst_47 = arith.constant dense<0.000000e+00> : vector<8x896xf32>
    %99 = tpu.matmul %98, %97, %cst_47 {dimension_numbers = #tpu.dot_dimension_numbers<[1], [0], [0], [1], [0, 0, 1, 1], [], []>} : vector<8x1024xbf16>, vector<1024x896xbf16>, vector<8x896xf32> -> vector<8x896xf32>
    %c0_48 = arith.constant 0 : index
    %c0_49 = arith.constant 0 : index
    %100 = vector.load %arg14[%c0_48, %c0_49] : memref<1x896xf32, #tpu.memory_space<vmem>>, vector<1x896xf32>
    %101 = vector.broadcast %100 : vector<1x896xf32> to vector<8x896xf32>
    %102 = arith.addf %99, %101 : vector<8x896xf32>
    %103 = math.tanh %102 : vector<8x896xf32>
    %c0_50 = arith.constant 0 : index
    %c0_51 = arith.constant 0 : index
    %104 = vector.load %arg15[%c0_50, %c0_51] : memref<8x896xf32, #tpu.memory_space<vmem>>, vector<8x896xf32>
    tpu.vector_store %arg15[%c0_50, %c0_51], %103 {strides = array<i32>} : memref<8x896xf32, #tpu.memory_space<vmem>>, vector<8x896xf32>,
    return
  }
  func.func @transform_0(%arg0: i32) -> (i32, i32) {
    %c0_i32 = arith.constant 0 : i32
    %c0_i32_0 = arith.constant 0 : i32
    return %arg0, %c0_i32 : i32, i32
  }
  func.func @transform_1(%arg0: i32) -> (i32, i32) {
    %c0_i32 = arith.constant 0 : i32
    %c0_i32_0 = arith.constant 0 : i32
    %c0_i32_1 = arith.constant 0 : i32
    return %c0_i32, %c0_i32_0 : i32, i32
  }
  func.func @transform_2(%arg0: i32) -> (i32, i32) {
    %c0_i32 = arith.constant 0 : i32
    %c0_i32_0 = arith.constant 0 : i32
    %c0_i32_1 = arith.constant 0 : i32
    return %c0_i32, %c0_i32_0 : i32, i32
  }
  func.func @transform_3(%arg0: i32) -> (i32, i32) {
    %c0_i32 = arith.constant 0 : i32
    %c0_i32_0 = arith.constant 0 : i32
    %c0_i32_1 = arith.constant 0 : i32
    return %c0_i32, %c0_i32_0 : i32, i32
  }
  func.func @transform_4(%arg0: i32) -> (i32, i32) {
    %c0_i32 = arith.constant 0 : i32
    %c0_i32_0 = arith.constant 0 : i32
    %c0_i32_1 = arith.constant 0 : i32
    return %c0_i32, %c0_i32_0 : i32, i32
  }
  func.func @transform_5(%arg0: i32) -> (i32, i32) {
    %c0_i32 = arith.constant 0 : i32
    %c0_i32_0 = arith.constant 0 : i32
    %c0_i32_1 = arith.constant 0 : i32
    return %c0_i32, %c0_i32_0 : i32, i32
  }
  func.func @transform_6(%arg0: i32) -> (i32, i32) {
    %c0_i32 = arith.constant 0 : i32
    %c0_i32_0 = arith.constant 0 : i32
    %c0_i32_1 = arith.constant 0 : i32
    return %c0_i32, %c0_i32_0 : i32, i32
  }
  func.func @transform_7(%arg0: i32) -> (i32, i32) {
    %c0_i32 = arith.constant 0 : i32
    %c0_i32_0 = arith.constant 0 : i32
    %c0_i32_1 = arith.constant 0 : i32
    return %c0_i32, %c0_i32_0 : i32, i32
  }
  func.func @transform_8(%arg0: i32) -> (i32, i32) {
    %c0_i32 = arith.constant 0 : i32
    %c0_i32_0 = arith.constant 0 : i32
    %c0_i32_1 = arith.constant 0 : i32
    return %c0_i32, %c0_i32_0 : i32, i32
  }
  func.func @transform_9(%arg0: i32) -> (i32, i32) {
    %c0_i32 = arith.constant 0 : i32
    %c0_i32_0 = arith.constant 0 : i32
    %c0_i32_1 = arith.constant 0 : i32
    return %c0_i32, %c0_i32_0 : i32, i32
  }
  func.func @transform_10(%arg0: i32) -> (i32, i32) {
    %c0_i32 = arith.constant 0 : i32
    %c0_i32_0 = arith.constant 0 : i32
    %c0_i32_1 = arith.constant 0 : i32
    return %c0_i32, %c0_i32_0 : i32, i32
  }
  func.func @transform_11(%arg0: i32) -> (i32, i32) {
    %c0_i32 = arith.constant 0 : i32
    %c0_i32_0 = arith.constant 0 : i32
    %c0_i32_1 = arith.constant 0 : i32
    return %c0_i32, %c0_i32_0 : i32, i32
  }
  func.func @transform_12(%arg0: i32) -> (i32, i32) {
    %c0_i32 = arith.constant 0 : i32
    %c0_i32_0 = arith.constant 0 : i32
    %c0_i32_1 = arith.constant 0 : i32
    return %c0_i32, %c0_i32_0 : i32, i32
  }
  func.func @transform_13(%arg0: i32) -> (i32, i32) {
    %c0_i32 = arith.constant 0 : i32
    %c0_i32_0 = arith.constant 0 : i32
    %c0_i32_1 = arith.constant 0 : i32
    return %c0_i32, %c0_i32_0 : i32, i32
  }
  func.func @transform_14(%arg0: i32) -> (i32, i32) {
    %c0_i32 = arith.constant 0 : i32
    %c0_i32_0 = arith.constant 0 : i32
    return %arg0, %c0_i32 : i32, i32
  }
}

</mosaic_0001>

<bundles_post_ra>
// kernel: generator_forward.1
= control target key start
LH: loop header
LB: loop body
LE: loop exit
PB: predicated region body
PF: predicated region fallthrough
CT: control target
= control target key end

     0   :  { %19 = vsyncpa [#allocation3], 0  ;;  %s9755_s0 = inlined_call_operand.vmem [shape: f32[8,128], index: 0, kind: input, shape index: {}]   ;;  %s9756_s1 = inlined_call_operand.hbm [shape: bf16[128,128], index: 1, kind: input, shape index: {}]   ;;  %s9757_s2 = inlined_call_operand.hbm [shape: f32[1,128], index: 2, kind: input, shape index: {}]   ;;  %s9758_s3 = inlined_call_operand.hbm [shape: bf16[128,256], index: 3, kind: input, shape index: {}]   ;;  %s9759_s4 = inlined_call_operand.hbm [shape: f32[1,256], index: 4, kind: input, shape index: {}]   ;;  %s9760_s5 = inlined_call_operand.hbm [shape: f32[1,256], index: 5, kind: input, shape index: {}]   ;;  %s9761_s6 = inlined_call_operand.hbm [shape: bf16[256,512], index: 6, kind: input, shape index: {}]   ;;  %s9762_s7 = inlined_call_operand.hbm [shape: f32[1,512], index: 7, kind: input, shape index: {}]   ;;  %s9763_s8 = inlined_call_operand.hbm [shape: f32[1,512], index: 8, kind: input, shape index: {}]   ;;  %s9764_s9 = inlined_call_operand.hbm [shape: bf16[512,1024], index: 9, kind: input, shape index: {}]   ;;  %s9765_s10 = inlined_call_operand.hbm [shape: f32[1,1024], index: 10, kind: input, shape index: {}]   ;;  %s9766_s11 = inlined_call_operand.hbm [shape: f32[1,1024], index: 11, kind: input, shape index: {}]   ;;  %s9767_s12 = inlined_call_operand.hbm [shape: bf16[1024,896], index: 12, kind: input, shape index: {}]   ;;  %s9768_s13 = inlined_call_operand.hbm [shape: f32[1,896], index: 13, kind: input, shape index: {}]   ;;  %s9769_s14 = inlined_call_operand.vmem [shape: f32[8,896], index: 14, kind: output, shape index: {}]  }
   0x1   :  { %20 = vsyncpa [#allocation5], 0 }
   0x2   :  { %21 = vsyncpa [#allocation8], 0 }
   0x3   :  { %22 = vsyncpa [#allocation11], 0 }
   0x4   :  { %23 = vsyncpa [#allocation14], 0 }
   0x5   :  { %24 = vsyncpa [#allocation17], 0 }
   0x6   :  { %25 = vsyncpa [#allocation20], 0  ;;  %s9144_s29 = smov [#allocation4]   ;;  %s9145_s15 = smov [#allocation7]  }
   0x7   :  { %s46_s30 = sshll.u32 %s9144_s29, 4  ;;  %s68_s16 = sshll.u32 %s9145_s15, 4  ;;  %s47_s30 = int_to_ptr.vmem [resolvable:$true] %s46_s30  ;;  %s69_s16 = int_to_ptr.vmem [resolvable:$true] %s68_s16 }
   0x8   :  { %s8844_s19 = scalar_lea.hbm %s9757_s2, 16 }
   0x9   :  { %p8845_p0 = scmp.ne.s32.totalorder %s9757_s2, %s8844_s19  ;;  %p8848_p1 = scmp.lt.u32.totalorder %s8844_s19, %s9757_s2 }
   0xb   :  { %p8850_p2 = pnand %p8848_p1, %p8845_p0 }
   0xd   :  { %8853 = shalt.err (!%p8850_p2)
}
   0xe   :  { %s8854_s24 = scalar_lea.vmem %s47_s30, 16  ;;  %s8858_s25 = scalar_lea.vmem %s47_s30, 32 }
   0xf   :  { %p8855_p3 = scmp.ne.s32.totalorder %s47_s30, %s8854_s24  ;;  %p8859_p4 = scmp.lt.s32.totalorder %s47_s30, %s47_s30 }
  0x10   :  { %p8860_p5 = scmp.lt.s32.totalorder %s8858_s25, %s8854_s24 }
  0x12   :  { %p8861_p6 = por %p8860_p5, %p8859_p4 }
  0x14   :  { %p8862_p7 = pnand %p8861_p6, %p8855_p3 }
  0x16   :  { %8865 = shalt.err (!%p8862_p7)
}
  0x17   :  { %49 = dma.hbm_to_vmem [thread:$0]  %s9757_s2, 16, %s47_s30, [#allocation5]  }
  0x18   :  { %s8866_s15 = scalar_lea.hbm %s9759_s4, 32 }
  0x19   :  { %p8867_p8 = scmp.ne.s32.totalorder %s9759_s4, %s8866_s15  ;;  %p8870_p9 = scmp.lt.u32.totalorder %s8866_s15, %s9759_s4 }
  0x1b   :  { %p8872_p10 = pnand %p8870_p9, %p8867_p8 }
  0x1d   :  { %8875 = shalt.err (!%p8872_p10)
}
  0x1e   :  { %s8876_s21 = scalar_lea.vmem %s69_s16, 32  ;;  %p8881_p12 = scmp.lt.s32.totalorder %s69_s16, %s69_s16 }
  0x1f   :  { %p8877_p11 = scmp.ne.s32.totalorder %s69_s16, %s8876_s21  ;;  %p8882_p13 = scmp.lt.s32.totalorder %s8876_s21, %s8876_s21 }
  0x21   :  { %p8883_p0 = por %p8882_p13, %p8881_p12 }
  0x23   :  { %p8884_p1 = pnand %p8883_p0, %p8877_p11 }
  0x25   :  { %8887 = shalt.err (!%p8884_p1)
}
  0x26   :  { %71 = dma.hbm_to_vmem [thread:$0]  %s9759_s4, 32, %s69_s16, [#allocation8]  }
  0x27   :  { %s9146_s22 = smov [#allocation10]   ;;  %s8888_s26 = scalar_lea.hbm %s9761_s6, 8192 }
  0x28   :  { %s87_s23 = sshll.u32 %s9146_s22, 4  ;;  %p8889_p2 = scmp.ne.s32.totalorder %s9761_s6, %s8888_s26  ;;  %s88_s23 = int_to_ptr.vmem [resolvable:$true] %s87_s23 }
  0x29   :  { %p8892_p3 = scmp.lt.u32.totalorder %s8888_s26, %s9761_s6 }
  0x2b   :  { %p8894_p4 = pnand %p8892_p3, %p8889_p2 }
  0x2d   :  { %8897 = shalt.err (!%p8894_p4)
}
  0x2e   :  { %s8898_s17 = scalar_lea.vmem %s88_s23, 8192  ;;  %p8903_p6 = scmp.lt.s32.totalorder %s88_s23, %s88_s23 }
  0x2f   :  { %p8899_p5 = scmp.ne.s32.totalorder %s88_s23, %s8898_s17  ;;  %p8904_p7 = scmp.lt.s32.totalorder %s8898_s17, %s8898_s17 }
  0x31   :  { %p8905_p8 = por %p8904_p7, %p8903_p6 }
  0x33   :  { %p8906_p9 = pnand %p8905_p8, %p8899_p5 }
  0x35   :  { %8909 = shalt.err (!%p8906_p9)
}
  0x36   :  { %s9147_s4 = smov 256   ;;  %s9148_s16 = smov 16  }
  0x37   :  { %93 = dma.hbm_to_vmem [thread:$0]  %s9761_s6, 8192, %s88_s23, [#allocation11], %s9147_s4, %s9147_s4, %s9148_s16  }
  0x38   :  { %s9149_s20 = smov [#allocation13]   ;;  %s9150_s2 = smov [#allocation16]  }
  0x39   :  { %s110_s21 = sshll.u32 %s9149_s20, 4  ;;  %s132_s30 = sshll.u32 %s9150_s2, 4  ;;  %s111_s21 = int_to_ptr.vmem [resolvable:$true] %s110_s21  ;;  %s133_s30 = int_to_ptr.vmem [resolvable:$true] %s132_s30 }
  0x3a   :  { %s8910_s25 = scalar_lea.hbm %s9763_s8, 64 }
  0x3b   :  { %p8911_p10 = scmp.ne.s32.totalorder %s9763_s8, %s8910_s25  ;;  %p8914_p11 = scmp.lt.u32.totalorder %s8910_s25, %s9763_s8 }
  0x3d   :  { %p8916_p12 = pnand %p8914_p11, %p8911_p10 }
  0x3f   :  { %8919 = shalt.err (!%p8916_p12)
}
  0x40   :  { %s8920_s6 = scalar_lea.vmem %s111_s21, 64  ;;  %p8925_p0 = scmp.lt.s32.totalorder %s111_s21, %s111_s21 }
  0x41   :  { %p8921_p13 = scmp.ne.s32.totalorder %s111_s21, %s8920_s6  ;;  %p8926_p1 = scmp.lt.s32.totalorder %s8920_s6, %s8920_s6 }
  0x43   :  { %p8927_p2 = por %p8926_p1, %p8925_p0 }
  0x45   :  { %p8928_p3 = pnand %p8927_p2, %p8921_p13 }
  0x47   :  { %8931 = shalt.err (!%p8928_p3)
}
  0x48   :  { %113 = dma.hbm_to_vmem [thread:$0]  %s9763_s8, 64, %s111_s21, [#allocation14]  }
  0x49   :  { %s8932_s16 = scalar_lea.hbm %s9765_s10, 128 }
  0x4a   :  { %p8933_p4 = scmp.ne.s32.totalorder %s9765_s10, %s8932_s16  ;;  %p8936_p5 = scmp.lt.u32.totalorder %s8932_s16, %s9765_s10 }
  0x4c   :  { %p8938_p6 = pnand %p8936_p5, %p8933_p4 }
  0x4e   :  { %8941 = shalt.err (!%p8938_p6)
}
  0x4f   :  { %s8942_s22 = scalar_lea.vmem %s133_s30, 128  ;;  %p8947_p8 = scmp.lt.s32.totalorder %s133_s30, %s133_s30 }
  0x50   :  { %p8943_p7 = scmp.ne.s32.totalorder %s133_s30, %s8942_s22  ;;  %p8948_p9 = scmp.lt.s32.totalorder %s8942_s22, %s8942_s22 }
  0x52   :  { %p8949_p10 = por %p8948_p9, %p8947_p8 }
  0x54   :  { %p8950_p11 = pnand %p8949_p10, %p8943_p7 }
  0x56   :  { %8953 = shalt.err (!%p8950_p11)
}
  0x57   :  { %135 = dma.hbm_to_vmem [thread:$0]  %s9765_s10, 128, %s133_s30, [#allocation17]  }
  0x58   :  { %s9151_s24 = smov [#allocation19]   ;;  %s8954_s28 = scalar_lea.hbm %s9767_s12, 57344 }
  0x59   :  { %s151_s25 = sshll.u32 %s9151_s24, 4  ;;  %p8955_p12 = scmp.ne.s32.totalorder %s9767_s12, %s8954_s28  ;;  %s152_s25 = int_to_ptr.vmem [resolvable:$true] %s151_s25 }
  0x5a   :  { %p8958_p13 = scmp.lt.u32.totalorder %s8954_s28, %s9767_s12 }
  0x5c   :  { %p8960_p0 = pnand %p8958_p13, %p8955_p12 }
  0x5e   :  { %8963 = shalt.err (!%p8960_p0)
}
  0x5f   :  { %s8964_s17 = scalar_lea.vmem %s152_s25, 57344  ;;  %p8969_p2 = scmp.lt.s32.totalorder %s152_s25, %s152_s25 }
  0x60   :  { %p8965_p1 = scmp.ne.s32.totalorder %s152_s25, %s8964_s17  ;;  %p8970_p3 = scmp.lt.s32.totalorder %s8964_s17, %s8964_s17 }
  0x62   :  { %p8971_p4 = por %p8970_p3, %p8969_p2 }
  0x64   :  { %p8972_p5 = pnand %p8971_p4, %p8965_p1 }
  0x66   :  { %8975 = shalt.err (!%p8972_p5)
}
  0x67   :  { %s9152_s10 = smov 448   ;;  %s9153_s30 = smov 28  }
  0x68   :  { %157 = dma.hbm_to_vmem [thread:$0]  %s9767_s12, 57344, %s152_s25, [#allocation20], %s9152_s10, %s9152_s10, %s9153_s30  }
  0x69   :  { %s9154_s18 = smov [#allocation2]   ;;  %s8976_s22 = scalar_lea.hbm %s9756_s1, 1024 }
  0x6a   :  { %s33_s19 = sshll.u32 %s9154_s18, 4  ;;  %p8977_p6 = scmp.ne.s32.totalorder %s9756_s1, %s8976_s22  ;;  %s34_s19 = int_to_ptr.vmem [resolvable:$true] %s33_s19 }
  0x6b   :  { %p8980_p7 = scmp.lt.u32.totalorder %s8976_s22, %s9756_s1 }
  0x6d   :  { %p8982_p8 = pnand %p8980_p7, %p8977_p6 }
  0x6f   :  { %8985 = shalt.err (!%p8982_p8)
}
  0x70   :  { %s8986_s27 = scalar_lea.vmem %s34_s19, 1024  ;;  %p8991_p10 = scmp.lt.s32.totalorder %s34_s19, %s34_s19 }
  0x71   :  { %p8987_p9 = scmp.ne.s32.totalorder %s34_s19, %s8986_s27  ;;  %p8992_p11 = scmp.lt.s32.totalorder %s8986_s27, %s8986_s27 }
  0x73   :  { %p8993_p12 = por %p8992_p11, %p8991_p10 }
  0x75   :  { %p8994_p13 = pnand %p8993_p12, %p8987_p9 }
  0x77   :  { %8997 = shalt.err (!%p8994_p13)
}
  0x78   :  { %s9155_s12 = smov 64   ;;  %s9156_s25 = smov 4  }
  0x79   :  { %39 = dma.hbm_to_vmem [thread:$0]  %s9756_s1, 1024, %s34_s19, [#allocation3], %s9155_s12, %s9155_s12, %s9156_s25  }
  0x7a   :  { %s9157_s6 = smov [#allocation6]   ;;  %s8998_s10 = scalar_lea.hbm %s9758_s3, 2048 }
  0x7b   :  { %s55_s23 = sshll.u32 %s9157_s6, 4  ;;  %p8999_p0 = scmp.ne.s32.totalorder %s9758_s3, %s8998_s10  ;;  %s56_s23 = int_to_ptr.vmem [resolvable:$true] %s55_s23 }
  0x7c   :  { %p9002_p1 = scmp.lt.u32.totalorder %s8998_s10, %s9758_s3 }
  0x7e   :  { %p9004_p2 = pnand %p9002_p1, %p8999_p0 }
  0x80   :  { %9007 = shalt.err (!%p9004_p2)
}
  0x81   :  { %s9008_s20 = scalar_lea.vmem %s56_s23, 2048  ;;  %p9013_p4 = scmp.lt.s32.totalorder %s56_s23, %s56_s23 }
  0x82   :  { %p9009_p3 = scmp.ne.s32.totalorder %s56_s23, %s9008_s20  ;;  %p9014_p5 = scmp.lt.s32.totalorder %s9008_s20, %s9008_s20 }
  0x84   :  { %p9015_p6 = por %p9014_p5, %p9013_p4 }
  0x86   :  { %p9016_p7 = pnand %p9015_p6, %p9009_p3 }
  0x88   :  { %9019 = shalt.err (!%p9016_p7)
}
  0x89   :  { %s9158_s1 = smov 128   ;;  %s9159_s19 = smov 8  }
  0x8a   :  { %61 = dma.hbm_to_vmem [thread:$0]  %s9758_s3, 2048, %s56_s23, [#allocation5], %s9158_s1, %s9158_s1, %s9159_s19  }
  0x8b   :  { %s9160_s8 = smov [#allocation9]   ;;  %s9161_s24 = smov [#allocation12]  }
  0x8c   :  { %s78_s21 = sshll.u32 %s9160_s8, 4  ;;  %s100_s26 = sshll.u32 %s9161_s24, 4  ;;  %s79_s21 = int_to_ptr.vmem [resolvable:$true] %s78_s21  ;;  %s101_s26 = int_to_ptr.vmem [resolvable:$true] %s100_s26 }
  0x8d   :  { %s9020_s25 = scalar_lea.hbm %s9760_s5, 32 }
  0x8e   :  { %p9021_p8 = scmp.ne.s32.totalorder %s9760_s5, %s9020_s25  ;;  %p9024_p9 = scmp.lt.u32.totalorder %s9020_s25, %s9760_s5 }
  0x90   :  { %p9026_p10 = pnand %p9024_p9, %p9021_p8 }
  0x92   :  { %9029 = shalt.err (!%p9026_p10)
}
  0x93   :  { %s9030_s3 = scalar_lea.vmem %s79_s21, 32  ;;  %p9035_p12 = scmp.lt.s32.totalorder %s79_s21, %s79_s21 }
  0x94   :  { %p9031_p11 = scmp.ne.s32.totalorder %s79_s21, %s9030_s3  ;;  %p9036_p13 = scmp.lt.s32.totalorder %s9030_s3, %s9030_s3 }
  0x96   :  { %p9037_p0 = por %p9036_p13, %p9035_p12 }
  0x98   :  { %p9038_p1 = pnand %p9037_p0, %p9031_p11 }
  0x9a   :  { %9041 = shalt.err (!%p9038_p1)
}
  0x9b   :  { %81 = dma.hbm_to_vmem [thread:$0]  %s9760_s5, 32, %s79_s21, [#allocation8]  }
  0x9c   :  { %s9042_s4 = scalar_lea.hbm %s9762_s7, 64 }
  0x9d   :  { %p9043_p2 = scmp.ne.s32.totalorder %s9762_s7, %s9042_s4  ;;  %p9046_p3 = scmp.lt.u32.totalorder %s9042_s4, %s9762_s7 }
  0x9f   :  { %p9048_p4 = pnand %p9046_p3, %p9043_p2 }
  0xa1   :  { %9051 = shalt.err (!%p9048_p4)
}
  0xa2   :  { %s9052_s19 = scalar_lea.vmem %s101_s26, 64  ;;  %p9057_p6 = scmp.lt.s32.totalorder %s101_s26, %s101_s26 }
  0xa3   :  { %p9053_p5 = scmp.ne.s32.totalorder %s101_s26, %s9052_s19  ;;  %p9058_p7 = scmp.lt.s32.totalorder %s9052_s19, %s9052_s19 }
  0xa5   :  { %p9059_p8 = por %p9058_p7, %p9057_p6 }
  0xa7   :  { %p9060_p9 = pnand %p9059_p8, %p9053_p5 }
  0xa9   :  { %9063 = shalt.err (!%p9060_p9)
}
  0xaa   :  { %103 = dma.hbm_to_vmem [thread:$0]  %s9762_s7, 64, %s101_s26, [#allocation11]  }
  0xab   :  { %s9162_s22 = smov [#allocation15]   ;;  %s9064_s27 = scalar_lea.hbm %s9764_s9, 32768 }
  0xac   :  { %s119_s8 = sshll.u32 %s9162_s22, 4  ;;  %p9065_p10 = scmp.ne.s32.totalorder %s9764_s9, %s9064_s27  ;;  %s120_s8 = int_to_ptr.vmem [resolvable:$true] %s119_s8 }
  0xad   :  { %p9068_p11 = scmp.lt.u32.totalorder %s9064_s27, %s9764_s9 }
  0xaf   :  { %p9070_p12 = pnand %p9068_p11, %p9065_p10 }
  0xb1   :  { %9073 = shalt.err (!%p9070_p12)
}
  0xb2   :  { %s9074_s6 = scalar_lea.vmem %s120_s8, 32768  ;;  %p9079_p0 = scmp.lt.s32.totalorder %s120_s8, %s120_s8 }
  0xb3   :  { %p9075_p13 = scmp.ne.s32.totalorder %s120_s8, %s9074_s6  ;;  %p9080_p1 = scmp.lt.s32.totalorder %s9074_s6, %s9074_s6 }
  0xb5   :  { %p9081_p2 = por %p9080_p1, %p9079_p0 }
  0xb7   :  { %p9082_p3 = pnand %p9081_p2, %p9075_p13 }
  0xb9   :  { %9085 = shalt.err (!%p9082_p3)
}
  0xba   :  { %s9163_s7 = smov 512   ;;  %s9164_s26 = smov 32  }
  0xbb   :  { %125 = dma.hbm_to_vmem [thread:$0]  %s9764_s9, 32768, %s120_s8, [#allocation14], %s9163_s7, %s9163_s7, %s9164_s26  }
  0xbc   :  { %s9165_s23 = smov [#allocation18]   ;;  %s9166_s10 = smov [#allocation21]  }
  0xbd   :  { %s142_s17 = sshll.u32 %s9165_s23, 4  ;;  %s164_s30 = sshll.u32 %s9166_s10, 4  ;;  %s143_s17 = int_to_ptr.vmem [resolvable:$true] %s142_s17  ;;  %s165_s30 = int_to_ptr.vmem [resolvable:$true] %s164_s30 }
  0xbe   :  { %s9086_s18 = scalar_lea.hbm %s9766_s11, 128 }
  0xbf   :  { %p9087_p4 = scmp.ne.s32.totalorder %s9766_s11, %s9086_s18  ;;  %p9090_p5 = scmp.lt.u32.totalorder %s9086_s18, %s9766_s11 }
  0xc1   :  { %p9092_p6 = pnand %p9090_p5, %p9087_p4 }
  0xc3   :  { %9095 = shalt.err (!%p9092_p6)
}
  0xc4   :  { %s9096_s9 = scalar_lea.vmem %s143_s17, 128  ;;  %p9101_p8 = scmp.lt.s32.totalorder %s143_s17, %s143_s17 }
  0xc5   :  { %p9097_p7 = scmp.ne.s32.totalorder %s143_s17, %s9096_s9  ;;  %p9102_p9 = scmp.lt.s32.totalorder %s9096_s9, %s9096_s9 }
  0xc7   :  { %p9103_p10 = por %p9102_p9, %p9101_p8 }
  0xc9   :  { %p9104_p11 = pnand %p9103_p10, %p9097_p7 }
  0xcb   :  { %9107 = shalt.err (!%p9104_p11)
}
  0xcc   :  { %145 = dma.hbm_to_vmem [thread:$0]  %s9766_s11, 128, %s143_s17, [#allocation17]  }
  0xcd   :  { %s9108_s24 = scalar_lea.hbm %s9768_s13, 112 }
  0xce   :  { %p9109_p12 = scmp.ne.s32.totalorder %s9768_s13, %s9108_s24  ;;  %p9112_p13 = scmp.lt.u32.totalorder %s9108_s24, %s9768_s13 }
  0xd0   :  { %p9114_p0 = pnand %p9112_p13, %p9109_p12 }
  0xd2   :  { %9117 = shalt.err (!%p9114_p0)
}
  0xd3   :  { %s9118_s29 = scalar_lea.vmem %s165_s30, 112  ;;  %s9122_s6 = scalar_lea.vmem %s165_s30, 128 }
  0xd4   :  { %p9119_p1 = scmp.ne.s32.totalorder %s165_s30, %s9118_s29  ;;  %p9123_p2 = scmp.lt.s32.totalorder %s165_s30, %s165_s30 }
  0xd5   :  { %p9124_p3 = scmp.lt.s32.totalorder %s9122_s6, %s9118_s29 }
  0xd7   :  { %p9125_p4 = por %p9124_p3, %p9123_p2 }
  0xd9   :  { %p9126_p5 = pnand %p9125_p4, %p9119_p1 }
  0xdb   :  { %9129 = shalt.err (!%p9126_p5)
}
  0xdc   :  { %167 = dma.hbm_to_vmem [thread:$0]  %s9768_s13, 112, %s165_s30, [#allocation20]  }
  0xdd   :  { %9130 = dma.done.wait [#allocation3], 1024  }
  0xde   :  { %9131 = vsyncadd [#allocation3], 4294966272 }
  0xdf   :  { %9132 = dma.done.wait [#allocation5], 2064  }
  0xe0   :  { %9133 = vsyncadd [#allocation5], 4294965232 }
  0xe1   :  { %9134 = dma.done.wait [#allocation8], 64  }
  0xe2   :  { %9135 = vsyncadd [#allocation8], 4294967232 }
  0xe3   :  { %9136 = dma.done.wait [#allocation11], 8256  }
  0xe4   :  { %9137 = vsyncadd [#allocation11], 4294959040 }
  0xe5   :  { %9138 = dma.done.wait [#allocation14], 32832  }
  0xe6   :  { %9139 = vsyncadd [#allocation14], 4294934464 }
  0xe7   :  { %9140 = dma.done.wait [#allocation17], 256  }
  0xe8   :  { %9141 = vsyncadd [#allocation17], 4294967040 }
  0xe9   :  { %9142 = dma.done.wait [#allocation20], 57456  }
  0xea   :  { %9143 = vsyncadd [#allocation20], 4294909840  ;;  %v9167_v0 = vmov 0.0   ;;  %vm9168_vm0 = vmmov 0   ;;  %v8034_v1 = vld [vmem:[#allocation2] sm:$0xff]   ;;  %v8035_v2 = vld [vmem:[#allocation2 + $0x8] sm:$0xff]  }
  0xeb   :  { %7929 = vmatprep.subr.bf16.mxu0 %v9167_v0  ;;  %7945 = vmatprep.mubr.msk.bf16.mxu0 %vm9168_vm0, %v9167_v0  ;;  %v8036_v3 = vld [vmem:[#allocation2 + $0x10] sm:$0xff]   ;;  %v8044_v5 = vld [vmem:[#allocation6] ss:$8 sps:$4 sm:$0xff]   ;;  %v8037_v6 = vld [vmem:[#allocation2 + $0x18] sm:$0xff]   ;;  %v9169_v27 = vmov 0  }
  0xec   :  { %7930 = vmatpush3.bf16.msra.mxu0 %v8034_v1  ;;  %v8042_v4 = vld [vmem:[#allocation6 + $0x4] ss:$8 sps:$4 sm:$0xff]   ;;  %v8045_v7 = vld [vmem:[#allocation6 + $0x14] ss:$8 sps:$4 sm:$0xff]   ;;  %v8047_v8 = vld [vmem:[#allocation6 + $0x10] ss:$8 sps:$4 sm:$0xff]   ;;  %452 = vmatprep.mubr.bf16.mxu1 %v9169_v27 }
  0xed   :  { %7931 = vmatprep.subr.bf16.mxu0 %v9167_v0  ;;  %420 = vmatprep.subr.bf16.mxu1 %v8042_v4  ;;  %v8048_v9 = vld [vmem:[#allocation6 + $0x24] ss:$8 sps:$4 sm:$0xff]   ;;  %v8050_v12 = vld [vmem:[#allocation6 + $0x20] ss:$8 sps:$4 sm:$0xff]   ;;  %v8051_v13 = vld [vmem:[#allocation6 + $0x34] ss:$8 sps:$4 sm:$0xff]  }
  0xee   :  { %421 = vmatpush1.bf16.msra.mxu1 %v8044_v5  ;;  %v8038_v10 = vld [vmem:[#allocation2 + $0x20] sm:$0xff]   ;;  %v8039_v11 = vld [vmem:[#allocation2 + $0x28] sm:$0xff]   ;;  %v8053_v14 = vld [vmem:[#allocation6 + $0x30] ss:$8 sps:$4 sm:$0xff]  }
  0xef   :  { %422 = vmatprep.subr.bf16.mxu1 %v8045_v7  ;;  %v8054_v15 = vld [vmem:[#allocation6 + $0x44] ss:$8 sps:$4 sm:$0xff]   ;;  %v8056_v17 = vld [vmem:[#allocation6 + $0x40] ss:$8 sps:$4 sm:$0xff]   ;;  %v8057_v18 = vld [vmem:[#allocation6 + $0x54] ss:$8 sps:$4 sm:$0xff]  }
  0xf0   :  { %7932 = vmatpush3.bf16.msra.mxu0 %v8035_v2  ;;  %v8040_v16 = vld [vmem:[#allocation2 + $0x30] sm:$0xff]   ;;  %v8041_v19 = vld [vmem:[#allocation2 + $0x38] sm:$0xff]   ;;  %v208_v20 = vld [vmem:[%s9755_s0] sm:$0xff] }
  0xf1   :  { %7933 = vmatprep.subr.bf16.mxu0 %v9167_v0  ;;  %v8059_v21 = vld [vmem:[#allocation6 + $0x50] ss:$8 sps:$4 sm:$0xff]   ;;  %v225_v22 = vpack.c.bf16 %v208_v20, %v208_v20  ;;  %v8060_v23 = vld [vmem:[#allocation6 + $0x64] ss:$8 sps:$4 sm:$0xff]   ;;  %v8062_v24 = vld [vmem:[#allocation6 + $0x60] ss:$8 sps:$4 sm:$0xff]  }
  0xf2   :  { %423 = vmatpush1.bf16.msra.mxu1 %v8047_v8  ;;  %v8063_v25 = vld [vmem:[#allocation6 + $0x74] ss:$8 sps:$4 sm:$0xff]   ;;  %v8065_v26 = vld [vmem:[#allocation6 + $0x70] ss:$8 sps:$4 sm:$0xff]  }
  0xf3   :  { %424 = vmatprep.subr.bf16.mxu1 %v8048_v9  ;;  %v8068_v28 = vld [vmem:[#allocation10 + $0x4] ss:$16 sps:$4 sm:$0xff]   ;;  %v7039_v29 = vld [vmem:[#allocation4] ss:$0 sm:$0xff]  ;;  %v8066_v37 = vld [vmem:[#allocation10] ss:$16 sps:$4 sm:$0xff]  }
  0xf4   :  { %7934 = vmatpush3.bf16.msra.mxu0 %v8036_v3  ;;  %v8071_v39 = vld [vmem:[#allocation10 + $0x24] ss:$16 sps:$4 sm:$0xff]   ;;  %v8069_v40 = vld [vmem:[#allocation10 + $0x20] ss:$16 sps:$4 sm:$0xff]   ;;  %v8116_v5 = vld [vmem:[#allocation10 + $0xc] ss:$16 sps:$4 sm:$0xff]  }
  0xf5   :  { %7935 = vmatprep.subr.bf16.mxu0 %v9167_v0  ;;  %v8074_v41 = vld [vmem:[#allocation10 + $0x44] ss:$16 sps:$4 sm:$0xff]   ;;  %v8072_v42 = vld [vmem:[#allocation10 + $0x40] ss:$16 sps:$4 sm:$0xff]  }
  0xf6   :  { %425 = vmatpush1.bf16.msra.mxu1 %v8050_v12  ;;  %v8077_v43 = vld [vmem:[#allocation10 + $0x64] ss:$16 sps:$4 sm:$0xff]   ;;  %v8075_v44 = vld [vmem:[#allocation10 + $0x60] ss:$16 sps:$4 sm:$0xff]  }
  0xf7   :  { %426 = vmatprep.subr.bf16.mxu1 %v8051_v13  ;;  %v8080_v45 = vld [vmem:[#allocation10 + $0x84] ss:$16 sps:$4 sm:$0xff]   ;;  %v8078_v46 = vld [vmem:[#allocation10 + $0x80] ss:$16 sps:$4 sm:$0xff]  }
  0xf8   :  { %7936 = vmatpush3.bf16.msra.mxu0 %v8037_v6  ;;  %v8083_v47 = vld [vmem:[#allocation10 + $0xa4] ss:$16 sps:$4 sm:$0xff]   ;;  %v8081_v48 = vld [vmem:[#allocation10 + $0xa0] ss:$16 sps:$4 sm:$0xff]  }
  0xf9   :  { %7937 = vmatprep.subr.bf16.mxu0 %v9167_v0  ;;  %v8086_v49 = vld [vmem:[#allocation10 + $0xc4] ss:$16 sps:$4 sm:$0xff]   ;;  %v8084_v50 = vld [vmem:[#allocation10 + $0xc0] ss:$16 sps:$4 sm:$0xff]  }
  0xfa   :  { %427 = vmatpush1.bf16.msra.mxu1 %v8053_v14  ;;  %v8089_v51 = vld [vmem:[#allocation10 + $0xe4] ss:$16 sps:$4 sm:$0xff]   ;;  %v8087_v52 = vld [vmem:[#allocation10 + $0xe0] ss:$16 sps:$4 sm:$0xff]  }
  0xfb   :  { %428 = vmatprep.subr.bf16.mxu1 %v8054_v15  ;;  %v8092_v53 = vld [vmem:[#allocation10 + $0x104] ss:$16 sps:$4 sm:$0xff]   ;;  %v8090_v54 = vld [vmem:[#allocation10 + $0x100] ss:$16 sps:$4 sm:$0xff]  }
  0xfc   :  { %7938 = vmatpush3.bf16.msra.mxu0 %v8038_v10  ;;  %v8095_v55 = vld [vmem:[#allocation10 + $0x124] ss:$16 sps:$4 sm:$0xff]   ;;  %v8093_v56 = vld [vmem:[#allocation10 + $0x120] ss:$16 sps:$4 sm:$0xff]  }
  0xfd   :  { %7939 = vmatprep.subr.bf16.mxu0 %v9167_v0  ;;  %v8098_v57 = vld [vmem:[#allocation10 + $0x144] ss:$16 sps:$4 sm:$0xff]   ;;  %v8096_v58 = vld [vmem:[#allocation10 + $0x140] ss:$16 sps:$4 sm:$0xff]  }
  0xfe   :  { %429 = vmatpush1.bf16.msra.mxu1 %v8056_v17  ;;  %v8101_v59 = vld [vmem:[#allocation10 + $0x164] ss:$16 sps:$4 sm:$0xff]   ;;  %v8099_v60 = vld [vmem:[#allocation10 + $0x160] ss:$16 sps:$4 sm:$0xff]  }
  0xff   :  { %430 = vmatprep.subr.bf16.mxu1 %v8057_v18  ;;  %v8104_v61 = vld [vmem:[#allocation10 + $0x184] ss:$16 sps:$4 sm:$0xff]   ;;  %v8102_v62 = vld [vmem:[#allocation10 + $0x180] ss:$16 sps:$4 sm:$0xff]  }
 0x100   :  { %7940 = vmatpush3.bf16.msra.mxu0 %v8039_v11  ;;  %v8107_v63 = vld [vmem:[#allocation10 + $0x1a4] ss:$16 sps:$4 sm:$0xff]   ;;  %v8108_v2 = vld [vmem:[#allocation10 + $0x1c0] ss:$16 sps:$4 sm:$0xff]  }
 0x101   :  { %7941 = vmatprep.subr.bf16.mxu0 %v9167_v0  ;;  %v8110_v1 = vld [vmem:[#allocation10 + $0x1c4] ss:$16 sps:$4 sm:$0xff]   ;;  %v8111_v4 = vld [vmem:[#allocation10 + $0x1e0] ss:$16 sps:$4 sm:$0xff]  }
 0x102   :  { %431 = vmatpush1.bf16.msra.mxu1 %v8059_v21  ;;  %v8113_v3 = vld [vmem:[#allocation10 + $0x1e4] ss:$16 sps:$4 sm:$0xff]  }
 0x103   :  { %432 = vmatprep.subr.bf16.mxu1 %v8060_v23 }
 0x104   :  { %7942 = vmatpush3.bf16.msra.mxu0 %v8040_v16 }
 0x105   :  { %7943 = vmatprep.subr.bf16.mxu0 %v9167_v0  ;;  %v8105_v0 = vld [vmem:[#allocation10 + $0x1a0] ss:$16 sps:$4 sm:$0xff]  }
 0x106   :  { %433 = vmatpush1.bf16.msra.mxu1 %v8062_v24 }
 0x107   :  { %434 = vmatprep.subr.bf16.mxu1 %v8063_v25 }
 0x108   :  { %7944 = vmatpush3.bf16.msra.mxu0 %v8041_v19 }
 0x10a   :  { %435 = vmatpush1.bf16.msra.mxu1 %v8065_v26 }
 0x10b   :  { %7946 = vmatmul.mubr.bf16.vlgmr.msra.gmra.mrb[0].mxu0 %v225_v22  ;;  %957 = vmatprep.subr.bf16.mxu1 %v8068_v28 }
 0x1de   :  { %v315_v30 = vpop.f32.mrb[0].mxu0 }
 0x1df   :  { %v316_v31 = vadd.f32 %v7039_v29, %v315_v30  ;;  %v7947_v32 = vpop.f32.mrb[1].mxu0 }
 0x1e0   :  { %v318_v33 = vpop.f32.mrb[2].mxu0 }
 0x1e1   :  { %v321_v34 = vmul.f32 0.2, %v316_v31  ;;  %v7948_v35 = vpop.f32.mrb[3].mxu0 }
 0x1e3   :  { %v322_v36 = vmax.f32 %v316_v31, %v321_v34 }
 0x1e5   :  { %v339_v38 = vpack.c.bf16 %v322_v36, %v322_v36 }
 0x1e7   :  { %453 = vmatmul.mubr.bf16.vlgmr.msra.gmra.mrb[0].mxu1 %v339_v38 }
 0x1e8   :  { %958 = vmatpush1.bf16.msra.mxu1 %v8066_v37 }
 0x1e9   :  { %959 = vmatprep.subr.bf16.mxu1 %v8071_v39 }
 0x1ec   :  { %960 = vmatpush1.bf16.msra.mxu1 %v8069_v40 }
 0x1ed   :  { %961 = vmatprep.subr.bf16.mxu1 %v8074_v41 }
 0x1f0   :  { %962 = vmatpush1.bf16.msra.mxu1 %v8072_v42 }
 0x1f1   :  { %963 = vmatprep.subr.bf16.mxu1 %v8077_v43 }
 0x1f4   :  { %964 = vmatpush1.bf16.msra.mxu1 %v8075_v44 }
 0x1f5   :  { %965 = vmatprep.subr.bf16.mxu1 %v8080_v45 }
 0x1f8   :  { %966 = vmatpush1.bf16.msra.mxu1 %v8078_v46  ;;  %v9170_v46 = vmov 1966171168  }
 0x1f9   :  { %967 = vmatprep.subr.bf16.mxu1 %v8083_v47  ;;  %v505_v47 = vunpack.c.l.s4 %v9170_v46  ;;  %v8156_v46 = vld [vmem:[#allocation10 + $0x1c8] ss:$16 sps:$4 sm:$0xff]  }
 0x1fc   :  { %968 = vmatpush1.bf16.msra.mxu1 %v8081_v48  ;;  %v507_v48 = vlaneseq }
 0x1fd   :  { %969 = vmatprep.subr.bf16.mxu1 %v8086_v49  ;;  %v506_v49 = vunpack.c.0.s8 %v505_v47  ;;  %v8161_v47 = vld [vmem:[#allocation10 + $0x1ec] ss:$16 sps:$4 sm:$0xff]  }
 0x200   :  { %970 = vmatpush1.bf16.msra.mxu1 %v8084_v50  ;;  %v9405_v50 = vshrl.u32 %v507_v48, 7  ;;  %v8159_v48 = vld [vmem:[#allocation10 + $0x1e8] ss:$16 sps:$4 sm:$0xff]  }
 0x201   :  { %971 = vmatprep.subr.bf16.mxu1 %v8089_v51 }
 0x204   :  { %972 = vmatpush1.bf16.msra.mxu1 %v8087_v52  ;;  %v9408_v52 = vsub.s32 %v506_v49, %v9405_v50  ;;  %v1239_v49 = vld [vmem:[#allocation15] sm:$0xff] }
 0x205   :  { %973 = vmatprep.subr.bf16.mxu1 %v8092_v53 }
 0x208   :  { %974 = vmatpush1.bf16.msra.mxu1 %v8090_v54 }
 0x209   :  { %975 = vmatprep.subr.bf16.mxu1 %v8095_v55 }
 0x20c   :  { %976 = vmatpush1.bf16.msra.mxu1 %v8093_v56  ;;  %v461_v56 = vld [vmem:[#allocation7] sm:$0x3] }
 0x20d   :  { %977 = vmatprep.subr.bf16.mxu1 %v8098_v57 }
 0x210   :  { %978 = vmatpush1.bf16.msra.mxu1 %v8096_v58  ;;  %v9413_v58 = vsub.s32 0, %v9405_v50 }
 0x211   :  { %979 = vmatprep.subr.bf16.mxu1 %v8101_v59  ;;  %v9416_v59 = vsub.s32 1, %v9405_v50 }
 0x214   :  { %980 = vmatpush1.bf16.msra.mxu1 %v8099_v60 }
 0x215   :  { %981 = vmatprep.subr.bf16.mxu1 %v8104_v61 }
 0x218   :  { %982 = vmatpush1.bf16.msra.mxu1 %v8102_v62 }
 0x219   :  { %983 = vmatprep.subr.bf16.mxu1 %v8107_v63 }
 0x21c   :  { %984 = vmatpush1.bf16.msra.mxu1 %v8105_v0 }
 0x21d   :  { %985 = vmatprep.subr.bf16.mxu1 %v8110_v1 }
 0x220   :  { %986 = vmatpush1.bf16.msra.mxu1 %v8108_v2 }
 0x221   :  { %987 = vmatprep.subr.bf16.mxu1 %v8113_v3 }
 0x224   :  { %988 = vmatpush1.bf16.msra.mxu1 %v8111_v4 }
 0x225   :  { %998 = vmatprep.subr.bf16.mxu1 %v8116_v5  ;;  %v462_v5 = vld [vmem:[#allocation9] sm:$0x3] }
 0x2ba   :  { %v454_v6 = vpop.f32.mrb[0].mxu1 }
 0x2bb   :  { %v463_v7 = vrot.slane %v454_v6, 4  ;;  %v477_v8 = vmul.f32 %v454_v6, %v454_v6  ;;  %v456_v9 = vpop.f32.mrb[1].mxu1 }
 0x2bc   :  { %v469_v10 = vrot.slane %v456_v9, 4  ;;  %v478_v11 = vmul.f32 %v456_v9, %v456_v9  ;;  %v458_v12 = vpop.f32.mrb[2].mxu1 }
 0x2bd   :  { %v464_v13 = vadd.f32 %v463_v7, %v454_v6  ;;  %v479_v14 = vrot.slane %v477_v8, 4  ;;  %v459_v15 = vpop.f32.mrb[3].mxu1 }
 0x2be   :  { %v470_v16 = vadd.f32 %v469_v10, %v456_v9  ;;  %v485_v17 = vrot.slane %v478_v11, 4 }
 0x2bf   :  { %v465_v18 = vrot.slane %v464_v13, 2  ;;  %v480_v19 = vadd.f32 %v479_v14, %v477_v8 }
 0x2c0   :  { %v471_v20 = vrot.slane %v470_v16, 2  ;;  %v486_v21 = vadd.f32 %v485_v17, %v478_v11 }
 0x2c1   :  { %v466_v22 = vadd.f32 %v465_v18, %v464_v13  ;;  %v481_v23 = vrot.slane %v480_v19, 2 }
 0x2c2   :  { %v472_v24 = vadd.f32 %v471_v20, %v470_v16  ;;  %v487_v25 = vrot.slane %v486_v21, 2  ;;  %v8117_v20 = vld [vmem:[#allocation10 + $0x28] ss:$16 sps:$4 sm:$0xff]  }
 0x2c3   :  { %v467_v26 = vrot.slane %v466_v22, 1  ;;  %v482_v27 = vadd.f32 %v481_v23, %v480_v19  ;;  %v8119_v19 = vld [vmem:[#allocation10 + $0x2c] ss:$16 sps:$4 sm:$0xff]  }
 0x2c4   :  { %v473_v28 = vrot.slane %v472_v24, 1  ;;  %v488_v29 = vadd.f32 %v487_v25, %v486_v21  ;;  %v8122_v21 = vld [vmem:[#allocation10 + $0x4c] ss:$16 sps:$4 sm:$0xff]  }
 0x2c5   :  { %v468_v30 = vadd.f32 %v467_v26, %v466_v22  ;;  %v483_v31 = vrot.slane %v482_v27, 1  ;;  %v8120_v22 = vld [vmem:[#allocation10 + $0x48] ss:$16 sps:$4 sm:$0xff]   ;;  %v8125_v23 = vld [vmem:[#allocation10 + $0x6c] ss:$16 sps:$4 sm:$0xff]  }
 0x2c6   :  { %v474_v32 = vadd.f32 %v473_v28, %v472_v24  ;;  %v489_v33 = vrot.slane %v488_v29, 1  ;;  %v8123_v24 = vld [vmem:[#allocation10 + $0x68] ss:$16 sps:$4 sm:$0xff]   ;;  %v8128_v25 = vld [vmem:[#allocation10 + $0x8c] ss:$16 sps:$4 sm:$0xff]  }
 0x2c7   :  { %v475_v34 = vmul.f32 0.125, %v468_v30  ;;  %v484_v35 = vadd.f32 %v483_v31, %v482_v27  ;;  %v8126_v26 = vld [vmem:[#allocation10 + $0x88] ss:$16 sps:$4 sm:$0xff]   ;;  %v8131_v27 = vld [vmem:[#allocation10 + $0xac] ss:$16 sps:$4 sm:$0xff]  }
 0x2c8   :  { %v476_v36 = vmul.f32 0.125, %v474_v32  ;;  %v490_v37 = vadd.f32 %v489_v33, %v488_v29  ;;  %v8129_v28 = vld [vmem:[#allocation10 + $0xa8] ss:$16 sps:$4 sm:$0xff]   ;;  %v8134_v29 = vld [vmem:[#allocation10 + $0xcc] ss:$16 sps:$4 sm:$0xff]  }
 0x2c9   :  { %v491_v38 = vmul.f32 0.125, %v484_v35  ;;  %v493_v39 = vmul.f32 %v475_v34, %v475_v34  ;;  %v8132_v30 = vld [vmem:[#allocation10 + $0xc8] ss:$16 sps:$4 sm:$0xff]   ;;  %v8137_v31 = vld [vmem:[#allocation10 + $0xec] ss:$16 sps:$4 sm:$0xff]  }
 0x2ca   :  { %v492_v40 = vmul.f32 0.125, %v490_v37  ;;  %v494_v41 = vmul.f32 %v476_v36, %v476_v36  ;;  %v8135_v32 = vld [vmem:[#allocation10 + $0xe8] ss:$16 sps:$4 sm:$0xff]   ;;  %v8140_v33 = vld [vmem:[#allocation10 + $0x10c] ss:$16 sps:$4 sm:$0xff]  }
 0x2cb   :  { %v495_v42 = vsub.f32 %v491_v38, %v493_v39  ;;  %v8143_v35 = vld [vmem:[#allocation10 + $0x12c] ss:$16 sps:$4 sm:$0xff]   ;;  %v8144_v38 = vld [vmem:[#allocation10 + $0x148] ss:$16 sps:$4 sm:$0xff]  }
 0x2cc   :  { %v496_v43 = vsub.f32 %v492_v40, %v494_v41  ;;  %v8146_v37 = vld [vmem:[#allocation10 + $0x14c] ss:$16 sps:$4 sm:$0xff]   ;;  %v8147_v40 = vld [vmem:[#allocation10 + $0x168] ss:$16 sps:$4 sm:$0xff]  }
 0x2cd   :  { %v497_v44 = vadd.f32 0.8, %v495_v42  ;;  %v8149_v39 = vld [vmem:[#allocation10 + $0x16c] ss:$16 sps:$4 sm:$0xff]   ;;  %v8150_v42 = vld [vmem:[#allocation10 + $0x188] ss:$16 sps:$4 sm:$0xff]  }
 0x2ce   :  { %v498_v45 = vadd.f32 0.8, %v496_v43  ;;  %v8152_v41 = vld [vmem:[#allocation10 + $0x18c] ss:$16 sps:$4 sm:$0xff]  }
 0x2cf   :  { %8802 = vrsqrt.f32 %v497_v44  ;;  %v8155_v43 = vld [vmem:[#allocation10 + $0x1ac] ss:$16 sps:$4 sm:$0xff]   ;;  %v8153_v44 = vld [vmem:[#allocation10 + $0x1a8] ss:$16 sps:$4 sm:$0xff]  }
 0x2d0   :  { %8804 = vrsqrt.f32 %v498_v45  ;;  %v8158_v45 = vld [vmem:[#allocation10 + $0x1cc] ss:$16 sps:$4 sm:$0xff]  }
 0x2d9   :  { %v8803_v51 = vpop.eup %8802 }
 0x2da   :  { %v8805_v53 = vpop.eup %8804 }
 0x2db   :  { %v503_v54 = vcombine.low %v8803_v51, %v8805_v53  ;;  %v1243_v51 = vld [vmem:[#allocation15 + $0x20] sm:$0xff]  ;;  %v1240_v53 = vld [vmem:[#allocation15 + $0x8] sm:$0xff] }
 0x2dd   :  { %v510_v55 = vrot.slane %v503_v54, %v9408_v52  ;;  %v7129_v54 = vcombine.high %v1239_v49, %v1243_v51 }
 0x2df   :  { %v517_v57 = vrot.slane %v510_v55, %v9408_v52  ;;  %v1244_v55 = vld [vmem:[#allocation15 + $0x28] sm:$0xff]  ;;  %2779 = vmatprep.subr.bf16.mxu0 %v7129_v54 }
 0x2e1   :  { %v519_v60 = vmul.f32 %v517_v57, %v461_v56  ;;  %v7128_v56 = vcombine.low %v1239_v49, %v1243_v51  ;;  %v7130_v57 = vcombine.low %v1240_v53, %v1244_v55  ;;  %v1300_v49 = vld [vmem:[#allocation15 + $0x1e8] sm:$0xff] }
 0x2e3   :  { %v524_v61 = vrot.slane %v519_v60, %v9413_v58  ;;  %v528_v62 = vrot.slane %v519_v60, %v9416_v59  ;;  %v7131_v60 = vcombine.high %v1240_v53, %v1244_v55  ;;  %2780 = vmatpush1.bf16.msra.mxu0 %v7128_v56  ;;  %v1303_v55 = vld [vmem:[#allocation15 + $0x200] sm:$0xff] }
 0x2e4   :  { %v1307_v56 = vld [vmem:[#allocation15 + $0x220] sm:$0xff] }
 0x2e5   :  { %v531_v63 = vmul.f32 %v524_v61, %v475_v34  ;;  %v532_v0 = vmul.f32 %v528_v62, %v476_v36  ;;  %v553_v1 = vmul.f32 %v528_v62, %v456_v9  ;;  %v552_v2 = vmul.f32 %v524_v61, %v454_v6  ;;  %v8114_v9 = vld [vmem:[#allocation10 + $0x8] ss:$16 sps:$4 sm:$0xff]  }
 0x2e6   :  { %v8138_v34 = vld [vmem:[#allocation10 + $0x108] ss:$16 sps:$4 sm:$0xff]  }
 0x2e7   :  { %v535_v3 = vcombine.low %v531_v63, %v532_v0  ;;  %v8141_v36 = vld [vmem:[#allocation10 + $0x128] ss:$16 sps:$4 sm:$0xff]   ;;  %v1248_v63 = vld [vmem:[#allocation15 + $0x48] sm:$0xff] }
 0x2e8   :  { %v1247_v61 = vld [vmem:[#allocation15 + $0x40] sm:$0xff] }
 0x2e9   :  { %v542_v4 = vrot.slane %v535_v3, %v9408_v52  ;;  %v1251_v62 = vld [vmem:[#allocation15 + $0x60] sm:$0xff] }
 0x2ea   :  { %v7137_v0 = vcombine.high %v1247_v61, %v1251_v62 }
 0x2eb   :  { %v549_v7 = vrot.slane %v542_v4, %v9408_v52 }
 0x2ec   :  { %2781 = vmatprep.subr.bf16.mxu0 %v7137_v0 }
 0x2ed   :  { %v551_v8 = vsub.f32 %v462_v5, %v549_v7  ;;  %v1255_v5 = vld [vmem:[#allocation15 + $0x80] sm:$0xff] }
 0x2ee   :  { %v1259_v7 = vld [vmem:[#allocation15 + $0xa0] sm:$0xff] }
 0x2ef   :  { %v562_v10 = vrot.slane %v551_v8, %v9416_v59  ;;  %v558_v11 = vrot.slane %v551_v8, %v9413_v58  ;;  %v1256_v8 = vld [vmem:[#allocation15 + $0x88] sm:$0xff] }
 0x2f1   :  { %v566_v12 = vadd.f32 %v562_v10, %v553_v1  ;;  %v565_v13 = vadd.f32 %v558_v11, %v552_v2  ;;  %v1252_v1 = vld [vmem:[#allocation15 + $0x68] sm:$0xff]  ;;  %v7136_v2 = vcombine.low %v1247_v61, %v1251_v62  ;;  %v7145_v10 = vcombine.high %v1255_v5, %v1259_v7 }
 0x2f2   :  { %v7138_v3 = vcombine.low %v1248_v63, %v1252_v1  ;;  %v7139_v4 = vcombine.high %v1248_v63, %v1252_v1  ;;  %v1260_v11 = vld [vmem:[#allocation15 + $0xa8] sm:$0xff]  ;;  %v7192_v62 = vcombine.low %v1303_v55, %v1307_v56  ;;  %v1311_v1 = vld [vmem:[#allocation15 + $0x240] sm:$0xff] }
 0x2f3   :  { %v568_v14 = vmul.f32 0.2, %v566_v12  ;;  %v567_v15 = vmul.f32 0.2, %v565_v13  ;;  %2782 = vmatpush1.bf16.msra.mxu0 %v7136_v2  ;;  %v1308_v61 = vld [vmem:[#allocation15 + $0x228] sm:$0xff]  ;;  %v1315_v2 = vld [vmem:[#allocation15 + $0x260] sm:$0xff] }
 0x2f4   :  { %2783 = vmatprep.subr.bf16.mxu0 %v7145_v10 }
 0x2f5   :  { %v570_v16 = vmax.f32 %v566_v12, %v568_v14  ;;  %v569_v17 = vmax.f32 %v565_v13, %v567_v15  ;;  %v7144_v12 = vcombine.low %v1255_v5, %v1259_v7  ;;  %v7146_v13 = vcombine.low %v1256_v8, %v1260_v11  ;;  %v1263_v15 = vld [vmem:[#allocation15 + $0xc0] sm:$0xff]  ;;  %v1316_v5 = vld [vmem:[#allocation15 + $0x268] sm:$0xff] }
 0x2f6   :  { %v7147_v14 = vcombine.high %v1256_v8, %v1260_v11  ;;  %v7200_v7 = vcombine.low %v1311_v1, %v1315_v2  ;;  %v1319_v11 = vld [vmem:[#allocation15 + $0x280] sm:$0xff] }
 0x2f7   :  { %v636_v18 = vpack.c.bf16 %v570_v16, %v570_v16  ;;  %v9424_v6 = vpack.c.bf16 %v569_v17, %v569_v17  ;;  %2784 = vmatpush1.bf16.msra.mxu0 %v7144_v12  ;;  %v1267_v16 = vld [vmem:[#allocation15 + $0xe0] sm:$0xff]  ;;  %v1264_v17 = vld [vmem:[#allocation15 + $0xc8] sm:$0xff] }
 0x2f8   :  { %v1323_v12 = vld [vmem:[#allocation15 + $0x2a0] sm:$0xff] }
 0x2f9   :  { %989 = vmatprep.mubr.bf16.mxu1 %v636_v18 }
 0x2fa   :  { %990 = vmatmul.mubr.bf16.vlgmr.msra.gmra.mrb[4].mxu1 %v9424_v6 }
 0x2fb   :  { %999 = vmatpush1.bf16.msra.mxu1 %v8114_v9  ;;  %1030 = vmatprep.mubr.bf16.mxu1 %v636_v18  ;;  %v7153_v18 = vcombine.high %v1263_v15, %v1267_v16  ;;  %v1268_v9 = vld [vmem:[#allocation15 + $0xe8] sm:$0xff] }
 0x2fc   :  { %1000 = vmatprep.subr.bf16.mxu1 %v8119_v19  ;;  %v7154_v19 = vcombine.low %v1264_v17, %v1268_v9 }
 0x2fd   :  { %2785 = vmatprep.subr.bf16.mxu0 %v7153_v18 }
 0x2ff   :  { %1001 = vmatpush1.bf16.msra.mxu1 %v8117_v20  ;;  %v7155_v20 = vcombine.high %v1264_v17, %v1268_v9  ;;  %v1327_v9 = vld [vmem:[#allocation15 + $0x2c0] sm:$0xff] }
 0x300   :  { %1002 = vmatprep.subr.bf16.mxu1 %v8122_v21  ;;  %v1271_v21 = vld [vmem:[#allocation15 + $0x100] sm:$0xff] }
 0x303   :  { %1003 = vmatpush1.bf16.msra.mxu1 %v8120_v22  ;;  %v1275_v22 = vld [vmem:[#allocation15 + $0x120] sm:$0xff] }
 0x304   :  { %1004 = vmatprep.subr.bf16.mxu1 %v8125_v23  ;;  %v1272_v23 = vld [vmem:[#allocation15 + $0x108] sm:$0xff] }
 0x307   :  { %1005 = vmatpush1.bf16.msra.mxu1 %v8123_v24  ;;  %v7161_v24 = vcombine.high %v1271_v21, %v1275_v22 }
 0x308   :  { %1006 = vmatprep.subr.bf16.mxu1 %v8128_v25  ;;  %v1276_v25 = vld [vmem:[#allocation15 + $0x128] sm:$0xff] }
 0x30b   :  { %1007 = vmatpush1.bf16.msra.mxu1 %v8126_v26  ;;  %v7160_v26 = vcombine.low %v1271_v21, %v1275_v22  ;;  %v1332_v21 = vld [vmem:[#allocation15 + $0x2e8] sm:$0xff] }
 0x30c   :  { %1008 = vmatprep.subr.bf16.mxu1 %v8131_v27  ;;  %v7162_v27 = vcombine.low %v1272_v23, %v1276_v25 }
 0x30f   :  { %1009 = vmatpush1.bf16.msra.mxu1 %v8129_v28  ;;  %v7163_v28 = vcombine.high %v1272_v23, %v1276_v25  ;;  %v1335_v25 = vld [vmem:[#allocation15 + $0x300] sm:$0xff] }
 0x310   :  { %1010 = vmatprep.subr.bf16.mxu1 %v8134_v29  ;;  %v1279_v29 = vld [vmem:[#allocation15 + $0x140] sm:$0xff] }
 0x313   :  { %1011 = vmatpush1.bf16.msra.mxu1 %v8132_v30  ;;  %v1283_v30 = vld [vmem:[#allocation15 + $0x160] sm:$0xff] }
 0x314   :  { %1012 = vmatprep.subr.bf16.mxu1 %v8137_v31  ;;  %v1280_v31 = vld [vmem:[#allocation15 + $0x148] sm:$0xff] }
 0x317   :  { %1013 = vmatpush1.bf16.msra.mxu1 %v8135_v32  ;;  %v1284_v32 = vld [vmem:[#allocation15 + $0x168] sm:$0xff] }
 0x318   :  { %1014 = vmatprep.subr.bf16.mxu1 %v8140_v33  ;;  %v7168_v33 = vcombine.low %v1279_v29, %v1283_v30 }
 0x31b   :  { %1015 = vmatpush1.bf16.msra.mxu1 %v8138_v34  ;;  %v7169_v34 = vcombine.high %v1279_v29, %v1283_v30  ;;  %v1340_v29 = vld [vmem:[#allocation15 + $0x328] sm:$0xff] }
 0x31c   :  { %1016 = vmatprep.subr.bf16.mxu1 %v8143_v35  ;;  %v7170_v35 = vcombine.low %v1280_v31, %v1284_v32 }
 0x31f   :  { %1017 = vmatpush1.bf16.msra.mxu1 %v8141_v36  ;;  %v7171_v36 = vcombine.high %v1280_v31, %v1284_v32 }
 0x320   :  { %1018 = vmatprep.subr.bf16.mxu1 %v8146_v37  ;;  %v1287_v37 = vld [vmem:[#allocation15 + $0x180] sm:$0xff] }
 0x323   :  { %1019 = vmatpush1.bf16.msra.mxu1 %v8144_v38  ;;  %v1291_v38 = vld [vmem:[#allocation15 + $0x1a0] sm:$0xff] }
 0x324   :  { %1020 = vmatprep.subr.bf16.mxu1 %v8149_v39  ;;  %v1288_v39 = vld [vmem:[#allocation15 + $0x188] sm:$0xff] }
 0x327   :  { %1021 = vmatpush1.bf16.msra.mxu1 %v8147_v40  ;;  %v7177_v40 = vcombine.high %v1287_v37, %v1291_v38 }
 0x328   :  { %1022 = vmatprep.subr.bf16.mxu1 %v8152_v41  ;;  %v1292_v41 = vld [vmem:[#allocation15 + $0x1a8] sm:$0xff] }
 0x32b   :  { %1023 = vmatpush1.bf16.msra.mxu1 %v8150_v42  ;;  %v7176_v42 = vcombine.low %v1287_v37, %v1291_v38  ;;  %v1348_v37 = vld [vmem:[#allocation15 + $0x368] sm:$0xff] }
 0x32c   :  { %1024 = vmatprep.subr.bf16.mxu1 %v8155_v43  ;;  %v7178_v43 = vcombine.low %v1288_v39, %v1292_v41 }
 0x32f   :  { %1025 = vmatpush1.bf16.msra.mxu1 %v8153_v44  ;;  %v7179_v44 = vcombine.high %v1288_v39, %v1292_v41  ;;  %v1351_v41 = vld [vmem:[#allocation15 + $0x380] sm:$0xff] }
 0x330   :  { %1026 = vmatprep.subr.bf16.mxu1 %v8158_v45  ;;  %v1295_v45 = vld [vmem:[#allocation15 + $0x1c0] sm:$0xff] }
 0x333   :  { %1027 = vmatpush1.bf16.msra.mxu1 %v8156_v46  ;;  %v1299_v46 = vld [vmem:[#allocation15 + $0x1e0] sm:$0xff] }
 0x334   :  { %1028 = vmatprep.subr.bf16.mxu1 %v8161_v47  ;;  %v1296_v47 = vld [vmem:[#allocation15 + $0x1c8] sm:$0xff]  ;;  %v7184_v51 = vcombine.low %v1295_v45, %v1299_v46 }
 0x335   :  { %v7186_v53 = vcombine.low %v1296_v47, %v1300_v49  ;;  %v7187_v54 = vcombine.high %v1296_v47, %v1300_v49  ;;  %v1359_v49 = vld [vmem:[#allocation15 + $0x3c0] sm:$0xff] }
 0x337   :  { %1029 = vmatpush1.bf16.msra.mxu1 %v8159_v48  ;;  %v7185_v48 = vcombine.high %v1295_v45, %v1299_v46  ;;  %v1356_v45 = vld [vmem:[#allocation15 + $0x3a8] sm:$0xff] }
 0x338   :  { %2861 = vmatprep.subr.bf16.mxu1 %v7131_v60  ;;  %v7193_v60 = vcombine.high %v1303_v55, %v1307_v56  ;;  %v1364_v56 = vld [vmem:[#allocation15 + $0x3e8] sm:$0xff] }
 0x33a   :  { %1031 = vmatmul.mubr.bf16.vlgmr.msra.gmra.mrb[8].mxu1 %v9424_v6  ;;  %v7152_v6 = vcombine.low %v1263_v15, %v1267_v16  ;;  %v1324_v15 = vld [vmem:[#allocation15 + $0x2a8] sm:$0xff]  ;;  %v7208_v16 = vcombine.low %v1319_v11, %v1323_v12 }
 0x33b   :  { %2862 = vmatpush1.bf16.msra.mxu1 %v7130_v57  ;;  %v1304_v57 = vld [vmem:[#allocation15 + $0x208] sm:$0xff] }
 0x33c   :  { %2863 = vmatprep.subr.bf16.mxu1 %v7139_v4  ;;  %2786 = vmatpush1.bf16.msra.mxu0 %v7152_v6  ;;  %v7194_v63 = vcombine.low %v1304_v57, %v1308_v61  ;;  %v7195_v0 = vcombine.high %v1304_v57, %v1308_v61  ;;  %v7201_v4 = vcombine.high %v1311_v1, %v1315_v2  ;;  %v1331_v6 = vld [vmem:[#allocation15 + $0x2e0] sm:$0xff] }
 0x33d   :  { %2787 = vmatprep.subr.bf16.mxu0 %v7161_v24  ;;  %v7216_v22 = vcombine.low %v1327_v9, %v1331_v6  ;;  %v9435_v1 = vld [vmem:[#allocation15 + $0x400] sm:$0xff] }
 0x33e   :  { %v9437_v2 = vld [vmem:[#allocation15 + $0x420] sm:$0xff] }
 0x33f   :  { %2864 = vmatpush1.bf16.msra.mxu1 %v7138_v3  ;;  %v1312_v3 = vld [vmem:[#allocation15 + $0x248] sm:$0xff] }
 0x340   :  { %2865 = vmatprep.subr.bf16.mxu1 %v7147_v14  ;;  %2788 = vmatpush1.bf16.msra.mxu0 %v7160_v26  ;;  %v7202_v8 = vcombine.low %v1312_v3, %v1316_v5  ;;  %v7203_v10 = vcombine.high %v1312_v3, %v1316_v5  ;;  %v7209_v14 = vcombine.high %v1319_v11, %v1323_v12  ;;  %v1339_v26 = vld [vmem:[#allocation15 + $0x320] sm:$0xff]  ;;  %v9439_v3 = vld [vmem:[#allocation15 + $0x408] sm:$0xff] }
 0x341   :  { %2789 = vmatprep.subr.bf16.mxu0 %v7169_v34  ;;  %v7224_v30 = vcombine.low %v1335_v25, %v1339_v26  ;;  %v1347_v34 = vld [vmem:[#allocation15 + $0x360] sm:$0xff] }
 0x343   :  { %2866 = vmatpush1.bf16.msra.mxu1 %v7146_v13  ;;  %v1320_v13 = vld [vmem:[#allocation15 + $0x288] sm:$0xff] }
 0x344   :  { %2867 = vmatprep.subr.bf16.mxu1 %v7155_v20  ;;  %2790 = vmatpush1.bf16.msra.mxu0 %v7168_v33  ;;  %v7210_v17 = vcombine.low %v1320_v13, %v1324_v15  ;;  %v7211_v18 = vcombine.high %v1320_v13, %v1324_v15  ;;  %v7217_v20 = vcombine.high %v1327_v9, %v1331_v6  ;;  %v1343_v33 = vld [vmem:[#allocation15 + $0x340] sm:$0xff] }
 0x345   :  { %2791 = vmatprep.subr.bf16.mxu0 %v7177_v40  ;;  %v7232_v38 = vcombine.low %v1343_v33, %v1347_v34 }
 0x347   :  { %2868 = vmatpush1.bf16.msra.mxu1 %v7154_v19  ;;  %v1328_v19 = vld [vmem:[#allocation15 + $0x2c8] sm:$0xff] }
 0x348   :  { %2869 = vmatprep.subr.bf16.mxu1 %v7163_v28  ;;  %2792 = vmatpush1.bf16.msra.mxu0 %v7176_v42  ;;  %v7218_v23 = vcombine.low %v1328_v19, %v1332_v21  ;;  %v7219_v24 = vcombine.high %v1328_v19, %v1332_v21  ;;  %v7225_v28 = vcombine.high %v1335_v25, %v1339_v26  ;;  %v1355_v42 = vld [vmem:[#allocation15 + $0x3a0] sm:$0xff] }
 0x349   :  { %2793 = vmatprep.subr.bf16.mxu0 %v7185_v48  ;;  %v7240_v46 = vcombine.low %v1351_v41, %v1355_v42 }
 0x34b   :  { %2870 = vmatpush1.bf16.msra.mxu1 %v7162_v27  ;;  %v1336_v27 = vld [vmem:[#allocation15 + $0x308] sm:$0xff] }
 0x34c   :  { %2871 = vmatprep.subr.bf16.mxu1 %v7171_v36  ;;  %2794 = vmatpush1.bf16.msra.mxu0 %v7184_v51  ;;  %v7226_v31 = vcombine.low %v1336_v27, %v1340_v29  ;;  %v7227_v32 = vcombine.high %v1336_v27, %v1340_v29  ;;  %v7233_v36 = vcombine.high %v1343_v33, %v1347_v34  ;;  %v1363_v51 = vld [vmem:[#allocation15 + $0x3e0] sm:$0xff] }
 0x34d   :  { %2795 = vmatprep.subr.bf16.mxu0 %v7193_v60  ;;  %v7249_v55 = vcombine.high %v1359_v49, %v1363_v51 }
 0x34f   :  { %2872 = vmatpush1.bf16.msra.mxu1 %v7170_v35  ;;  %v1344_v35 = vld [vmem:[#allocation15 + $0x348] sm:$0xff] }
 0x350   :  { %2873 = vmatprep.subr.bf16.mxu1 %v7179_v44  ;;  %2796 = vmatpush1.bf16.msra.mxu0 %v7192_v62  ;;  %v7234_v39 = vcombine.low %v1344_v35, %v1348_v37  ;;  %v7235_v40 = vcombine.high %v1344_v35, %v1348_v37  ;;  %v7241_v44 = vcombine.high %v1351_v41, %v1355_v42 }
 0x351   :  { %2797 = vmatprep.subr.bf16.mxu0 %v7201_v4 }
 0x353   :  { %2874 = vmatpush1.bf16.msra.mxu1 %v7178_v43  ;;  %v1352_v43 = vld [vmem:[#allocation15 + $0x388] sm:$0xff] }
 0x354   :  { %2875 = vmatprep.subr.bf16.mxu1 %v7187_v54  ;;  %2798 = vmatpush1.bf16.msra.mxu0 %v7200_v7  ;;  %v7242_v47 = vcombine.low %v1352_v43, %v1356_v45  ;;  %v7243_v48 = vcombine.high %v1352_v43, %v1356_v45  ;;  %v7248_v54 = vcombine.low %v1359_v49, %v1363_v51 }
 0x355   :  { %2799 = vmatprep.subr.bf16.mxu0 %v7209_v14  ;;  %v7256_v14 = vcombine.low %v9435_v1, %v9437_v2 }
 0x357   :  { %2876 = vmatpush1.bf16.msra.mxu1 %v7186_v53  ;;  %v1360_v53 = vld [vmem:[#allocation15 + $0x3c8] sm:$0xff] }
 0x358   :  { %2877 = vmatprep.subr.bf16.mxu1 %v7195_v0  ;;  %2800 = vmatpush1.bf16.msra.mxu0 %v7208_v16  ;;  %v7250_v57 = vcombine.low %v1360_v53, %v1364_v56  ;;  %v7251_v60 = vcombine.high %v1360_v53, %v1364_v56 }
 0x359   :  { %2801 = vmatprep.subr.bf16.mxu0 %v7217_v20 }
 0x35b   :  { %2878 = vmatpush1.bf16.msra.mxu1 %v7194_v63 }
 0x35c   :  { %2879 = vmatprep.subr.bf16.mxu1 %v7203_v10  ;;  %2802 = vmatpush1.bf16.msra.mxu0 %v7216_v22  ;;  %v9446_v10 = vld [vmem:[#allocation15 + $0x428] sm:$0xff] }
 0x35d   :  { %2803 = vmatprep.subr.bf16.mxu0 %v7225_v28  ;;  %v7258_v15 = vcombine.low %v9439_v3, %v9446_v10 }
 0x35f   :  { %2880 = vmatpush1.bf16.msra.mxu1 %v7202_v8  ;;  %v7257_v8 = vcombine.high %v9435_v1, %v9437_v2 }
 0x360   :  { %2881 = vmatprep.subr.bf16.mxu1 %v7211_v18  ;;  %2804 = vmatpush1.bf16.msra.mxu0 %v7224_v30  ;;  %v7259_v18 = vcombine.high %v9439_v3, %v9446_v10 }
 0x361   :  { %2805 = vmatprep.subr.bf16.mxu0 %v7233_v36 }
 0x363   :  { %2882 = vmatpush1.bf16.msra.mxu1 %v7210_v17 }
 0x364   :  { %2883 = vmatprep.subr.bf16.mxu1 %v7219_v24  ;;  %2806 = vmatpush1.bf16.msra.mxu0 %v7232_v38 }
 0x365   :  { %2807 = vmatprep.subr.bf16.mxu0 %v7241_v44 }
 0x367   :  { %2884 = vmatpush1.bf16.msra.mxu1 %v7218_v23 }
 0x368   :  { %2885 = vmatprep.subr.bf16.mxu1 %v7227_v32  ;;  %2808 = vmatpush1.bf16.msra.mxu0 %v7240_v46 }
 0x369   :  { %2809 = vmatprep.subr.bf16.mxu0 %v7249_v55 }
 0x36b   :  { %2886 = vmatpush1.bf16.msra.mxu1 %v7226_v31 }
 0x36c   :  { %2887 = vmatprep.subr.bf16.mxu1 %v7235_v40  ;;  %2810 = vmatpush1.bf16.msra.mxu0 %v7248_v54 }
 0x36d   :  { %2820 = vmatprep.subr.bf16.mxu0 %v7257_v8 }
 0x36f   :  { %2888 = vmatpush1.bf16.msra.mxu1 %v7234_v39 }
 0x370   :  { %2889 = vmatprep.subr.bf16.mxu1 %v7243_v48 }
 0x373   :  { %2890 = vmatpush1.bf16.msra.mxu1 %v7242_v47 }
 0x374   :  { %2891 = vmatprep.subr.bf16.mxu1 %v7251_v60 }
 0x377   :  { %2892 = vmatpush1.bf16.msra.mxu1 %v7250_v57 }
 0x378   :  { %2902 = vmatprep.subr.bf16.mxu1 %v7259_v18 }
 0x3cd   :  { %v9428_v61 = vpop.f32.mrb[4].mxu1 }
 0x3ce   :  { %v1041_v62 = vrot.slane %v9428_v61, 4  ;;  %v1069_v63 = vmul.f32 %v9428_v61, %v9428_v61  ;;  %v9433_v0 = vpop.f32.mrb[5].mxu1 }
 0x3cf   :  { %v1047_v4 = vrot.slane %v9433_v0, 4  ;;  %v1070_v5 = vmul.f32 %v9433_v0, %v9433_v0  ;;  %v995_v7 = vpop.f32.mrb[6].mxu1 }
 0x3d0   :  { %v1042_v11 = vadd.f32 %v1041_v62, %v9428_v61  ;;  %v1073_v12 = vrot.slane %v1069_v63, 4  ;;  %v996_v13 = vpop.f32.mrb[7].mxu1 }
 0x3d1   :  { %v1048_v16 = vadd.f32 %v1047_v4, %v9433_v0  ;;  %v1079_v17 = vrot.slane %v1070_v5, 4 }
 0x3d2   :  { %v1043_v9 = vrot.slane %v1042_v11, 2  ;;  %v1074_v6 = vadd.f32 %v1073_v12, %v1069_v63 }
 0x3d3   :  { %v1049_v19 = vrot.slane %v1048_v16, 2  ;;  %v1080_v20 = vadd.f32 %v1079_v17, %v1070_v5 }
 0x3d4   :  { %v1044_v21 = vadd.f32 %v1043_v9, %v1042_v11  ;;  %v1075_v22 = vrot.slane %v1074_v6, 2 }
 0x3d5   :  { %v1050_v23 = vadd.f32 %v1049_v19, %v1048_v16  ;;  %v1081_v24 = vrot.slane %v1080_v20, 2 }
 0x3d6   :  { %v1045_v25 = vrot.slane %v1044_v21, 1  ;;  %v1076_v26 = vadd.f32 %v1075_v22, %v1074_v6 }
 0x3d7   :  { %v1051_v27 = vrot.slane %v1050_v23, 1  ;;  %v1082_v28 = vadd.f32 %v1081_v24, %v1080_v20 }
 0x3d8   :  { %v1046_v29 = vadd.f32 %v1045_v25, %v1044_v21  ;;  %v1077_v30 = vrot.slane %v1076_v26, 1 }
 0x3d9   :  { %v1052_v31 = vadd.f32 %v1051_v27, %v1050_v23  ;;  %v1083_v32 = vrot.slane %v1082_v28, 1 }
 0x3da   :  { %v9456_v33 = vmul.f32 0.125, %v1046_v29  ;;  %v1078_v34 = vadd.f32 %v1077_v30, %v1076_v26 }
 0x3db   :  { %v9458_v35 = vmul.f32 0.125, %v1052_v31  ;;  %v1084_v36 = vadd.f32 %v1083_v32, %v1082_v28 }
 0x3dc   :  { %v1097_v37 = vmul.f32 0.125, %v1078_v34  ;;  %v1101_v38 = vmul.f32 %v9456_v33, %v9456_v33 }
 0x3dd   :  { %v1098_v39 = vmul.f32 0.125, %v1084_v36  ;;  %v1102_v40 = vmul.f32 %v9458_v35, %v9458_v35 }
 0x3de   :  { %v1105_v41 = vsub.f32 %v1097_v37, %v1101_v38 }
 0x3df   :  { %v1106_v42 = vsub.f32 %v1098_v39, %v1102_v40 }
 0x3e0   :  { %v1109_v43 = vadd.f32 0.8, %v1105_v41 }
 0x3e1   :  { %v1110_v44 = vadd.f32 0.8, %v1106_v42 }
 0x3e2   :  { %8806 = vrsqrt.f32 %v1109_v43 }
 0x3e3   :  { %8808 = vrsqrt.f32 %v1110_v44  ;;  %v1039_v44 = vld [vmem:[#allocation12] sm:$0xf] }
 0x3ec   :  { %v8807_v45 = vpop.eup %8806 }
 0x3ed   :  { %v8809_v46 = vpop.eup %8808 }
 0x3ee   :  { %v1121_v47 = vcombine.low %v8807_v45, %v8809_v46  ;;  %v9474_v46 = vsub.s32 2, %v9405_v50 }
 0x3f0   :  { %v1129_v41 = vrot.slane %v1121_v47, %v9408_v52 }
 0x40d   :  { %v9464_v48 = vpop.f32.mrb[8].mxu1 }
 0x40e   :  { %v1053_v49 = vrot.slane %v9464_v48, 4  ;;  %v1071_v51 = vmul.f32 %v9464_v48, %v9464_v48  ;;  %v1034_v53 = vpop.f32.mrb[9].mxu1 }
 0x40f   :  { %v1059_v54 = vrot.slane %v1034_v53, 4  ;;  %v1072_v55 = vmul.f32 %v1034_v53, %v1034_v53  ;;  %v1036_v56 = vpop.f32.mrb[10].mxu1 }
 0x410   :  { %v1054_v57 = vadd.f32 %v1053_v49, %v9464_v48  ;;  %v1085_v60 = vrot.slane %v1071_v51, 4  ;;  %v1037_v62 = vpop.f32.mrb[11].mxu1  ;;  %v9477_v49 = vsub.s32 3, %v9405_v50 }
 0x411   :  { %v1060_v63 = vadd.f32 %v1059_v54, %v1034_v53  ;;  %v1091_v4 = vrot.slane %v1072_v55, 4 }
 0x412   :  { %v1055_v5 = vrot.slane %v1054_v57, 2  ;;  %v1086_v7 = vadd.f32 %v1085_v60, %v1071_v51 }
 0x413   :  { %v1061_v8 = vrot.slane %v1060_v63, 2  ;;  %v1092_v11 = vadd.f32 %v1091_v4, %v1072_v55 }
 0x414   :  { %v1056_v12 = vadd.f32 %v1055_v5, %v1054_v57  ;;  %v1087_v13 = vrot.slane %v1086_v7, 2 }
 0x415   :  { %v1062_v16 = vadd.f32 %v1061_v8, %v1060_v63  ;;  %v1093_v17 = vrot.slane %v1092_v11, 2 }
 0x416   :  { %v1057_v18 = vrot.slane %v1056_v12, 1  ;;  %v1088_v9 = vadd.f32 %v1087_v13, %v1086_v7 }
 0x417   :  { %v1063_v6 = vrot.slane %v1062_v16, 1  ;;  %v1094_v19 = vadd.f32 %v1093_v17, %v1092_v11 }
 0x418   :  { %v1058_v20 = vadd.f32 %v1057_v18, %v1056_v12  ;;  %v1089_v21 = vrot.slane %v1088_v9, 1  ;;  %v1040_v18 = vld [vmem:[#allocation13] sm:$0xf] }
 0x419   :  { %v1064_v22 = vadd.f32 %v1063_v6, %v1062_v16  ;;  %v1095_v23 = vrot.slane %v1094_v19, 1 }
 0x41a   :  { %v1067_v24 = vmul.f32 0.125, %v1058_v20  ;;  %v1090_v25 = vadd.f32 %v1089_v21, %v1088_v9 }
 0x41b   :  { %v1068_v26 = vmul.f32 0.125, %v1064_v22  ;;  %v1096_v27 = vadd.f32 %v1095_v23, %v1094_v19 }
 0x41c   :  { %v1099_v28 = vmul.f32 0.125, %v1090_v25  ;;  %v1103_v29 = vmul.f32 %v1067_v24, %v1067_v24 }
 0x41d   :  { %v1100_v30 = vmul.f32 0.125, %v1096_v27  ;;  %v1104_v31 = vmul.f32 %v1068_v26, %v1068_v26 }
 0x41e   :  { %v1107_v32 = vsub.f32 %v1099_v28, %v1103_v29  ;;  %v1379_v28 = vld [vmem:[#allocation15 + $0x460] sm:$0xff]  ;;  %v1376_v29 = vld [vmem:[#allocation15 + $0x448] sm:$0xff] }
 0x41f   :  { %v1108_v34 = vsub.f32 %v1100_v30, %v1104_v31  ;;  %v1380_v30 = vld [vmem:[#allocation15 + $0x468] sm:$0xff] }
 0x420   :  { %v1111_v36 = vadd.f32 0.8, %v1107_v32 }
 0x421   :  { %v1112_v37 = vadd.f32 0.8, %v1108_v34  ;;  %v1383_v34 = vld [vmem:[#allocation15 + $0x480] sm:$0xff] }
 0x422   :  { %8810 = vrsqrt.f32 %v1111_v36 }
 0x423   :  { %8812 = vrsqrt.f32 %v1112_v37  ;;  %v7267_v37 = vcombine.high %v1376_v29, %v1380_v30 }
 0x42c   :  { %v8811_v38 = vpop.eup %8810 }
 0x42d   :  { %v8813_v39 = vpop.eup %8812 }
 0x42e   :  { %v1122_v40 = vcombine.low %v8811_v38, %v8813_v39  ;;  %v1387_v38 = vld [vmem:[#allocation15 + $0x4a0] sm:$0xff]  ;;  %v1384_v39 = vld [vmem:[#allocation15 + $0x488] sm:$0xff] }
 0x42f   :  { %v7272_v1 = vcombine.low %v1383_v34, %v1387_v38 }
 0x430   :  { %v1136_v42 = vrot.slane %v1122_v40, %v9408_v52  ;;  %v1388_v40 = vld [vmem:[#allocation15 + $0x4a8] sm:$0xff] }
 0x431   :  { %v7274_v2 = vcombine.low %v1384_v39, %v1388_v40 }
 0x432   :  { %v1137_v43 = vcombine.low %v1129_v41, %v1136_v42 }
 0x434   :  { %v1144_v45 = vrot.slane %v1137_v43, %v9408_v52  ;;  %v7266_v43 = vcombine.low %v1376_v29, %v1380_v30  ;;  %v1432_v29 = vld [vmem:[#allocation15 + $0x608] sm:$0xff] }
 0x435   :  { %v1436_v30 = vld [vmem:[#allocation15 + $0x628] sm:$0xff] }
 0x436   :  { %v1146_v51 = vmul.f32 %v1144_v45, %v1039_v44  ;;  %v7273_v44 = vcombine.high %v1383_v34, %v1387_v38  ;;  %v7275_v45 = vcombine.high %v1384_v39, %v1388_v40  ;;  %v7323_v38 = vcombine.high %v1432_v29, %v1436_v30  ;;  %v1439_v39 = vld [vmem:[#allocation15 + $0x640] sm:$0xff] }
 0x437   :  { %v1443_v40 = vld [vmem:[#allocation15 + $0x660] sm:$0xff] }
 0x438   :  { %v1151_v54 = vrot.slane %v1146_v51, %v9413_v58  ;;  %v1155_v55 = vrot.slane %v1146_v51, %v9416_v59  ;;  %v1159_v56 = vrot.slane %v1146_v51, %v9474_v46  ;;  %v1163_v47 = vrot.slane %v1146_v51, %v9477_v49  ;;  %v1391_v51 = vld [vmem:[#allocation15 + $0x4c0] sm:$0xff] }
 0x43a   :  { %v1168_v57 = vmul.f32 %v1151_v54, %v9456_v33  ;;  %v1169_v60 = vmul.f32 %v1155_v55, %v9458_v35  ;;  %v1170_v62 = vmul.f32 %v1159_v56, %v1067_v24  ;;  %v1171_v63 = vmul.f32 %v1163_v47, %v1068_v26  ;;  %v1375_v26 = vld [vmem:[#allocation15 + $0x440] sm:$0xff] }
 0x43b   :  { %v1205_v4 = vmul.f32 %v1163_v47, %v1034_v53  ;;  %v1203_v5 = vmul.f32 %v1155_v55, %v9433_v0  ;;  %v1202_v7 = vmul.f32 %v1151_v54, %v9428_v61  ;;  %v1204_v8 = vmul.f32 %v1159_v56, %v9464_v48  ;;  %v1395_v54 = vld [vmem:[#allocation15 + $0x4e0] sm:$0xff]  ;;  %v1392_v55 = vld [vmem:[#allocation15 + $0x4c8] sm:$0xff] }
 0x43c   :  { %v1176_v11 = vcombine.low %v1168_v57, %v1169_v60  ;;  %v1177_v12 = vcombine.low %v1170_v62, %v1171_v63  ;;  %v7265_v36 = vcombine.high %v1375_v26, %v1379_v28  ;;  %v7264_v42 = vcombine.low %v1375_v26, %v1379_v28  ;;  %v1396_v56 = vld [vmem:[#allocation15 + $0x4e8] sm:$0xff]  ;;  %v1435_v28 = vld [vmem:[#allocation15 + $0x620] sm:$0xff] }
 0x43d   :  { %v7281_v3 = vcombine.high %v1391_v51, %v1395_v54  ;;  %v7283_v10 = vcombine.high %v1392_v55, %v1396_v56  ;;  %v1400_v47 = vld [vmem:[#allocation15 + $0x508] sm:$0xff]  ;;  %v7280_v60 = vcombine.low %v1391_v51, %v1395_v54  ;;  %v7282_v62 = vcombine.low %v1392_v55, %v1396_v56  ;;  %v1447_v55 = vld [vmem:[#allocation15 + $0x680] sm:$0xff] }
 0x43e   :  { %v1184_v13 = vrot.slane %v1176_v11, %v9408_v52  ;;  %v1191_v16 = vrot.slane %v1177_v12, %v9408_v52  ;;  %v1404_v57 = vld [vmem:[#allocation15 + $0x528] sm:$0xff]  ;;  %v7329_v51 = vcombine.high %v1439_v39, %v1443_v40  ;;  %v1451_v56 = vld [vmem:[#allocation15 + $0x6a0] sm:$0xff] }
 0x43f   :  { %v1412_v11 = vld [vmem:[#allocation15 + $0x568] sm:$0xff] }
 0x440   :  { %v1192_v17 = vcombine.low %v1184_v13, %v1191_v16  ;;  %v7290_v13 = vcombine.low %v1400_v47, %v1404_v57 }
 0x442   :  { %v1199_v33 = vrot.slane %v1192_v17, %v9408_v52 }
 0x444   :  { %v1201_v35 = vsub.f32 %v1040_v18, %v1199_v33  ;;  %v1415_v18 = vld [vmem:[#allocation15 + $0x580] sm:$0xff] }
 0x445   :  { %v1419_v33 = vld [vmem:[#allocation15 + $0x5a0] sm:$0xff] }
 0x446   :  { %v1222_v9 = vrot.slane %v1201_v35, %v9477_v49  ;;  %v1214_v53 = vrot.slane %v1201_v35, %v9416_v59  ;;  %v1210_v0 = vrot.slane %v1201_v35, %v9413_v58  ;;  %v1218_v61 = vrot.slane %v1201_v35, %v9474_v46  ;;  %v1416_v35 = vld [vmem:[#allocation15 + $0x588] sm:$0xff] }
 0x448   :  { %v1230_v48 = vadd.f32 %v1222_v9, %v1205_v4  ;;  %v1228_v6 = vadd.f32 %v1214_v53, %v1203_v5  ;;  %v1227_v19 = vadd.f32 %v1210_v0, %v1202_v7  ;;  %v9495_v20 = vadd.f32 %v1218_v61, %v1204_v8  ;;  %v1407_v5 = vld [vmem:[#allocation15 + $0x540] sm:$0xff]  ;;  %v1408_v8 = vld [vmem:[#allocation15 + $0x548] sm:$0xff] }
 0x449   :  { %v7291_v4 = vcombine.high %v1400_v47, %v1404_v57  ;;  %v1411_v7 = vld [vmem:[#allocation15 + $0x560] sm:$0xff]  ;;  %v7299_v17 = vcombine.high %v1408_v8, %v1412_v11  ;;  %v1420_v9 = vld [vmem:[#allocation15 + $0x5a8] sm:$0xff]  ;;  %v7298_v0 = vcombine.low %v1408_v8, %v1412_v11  ;;  %v7305_v61 = vcombine.high %v1415_v18, %v1419_v33 }
 0x44a   :  { %v1234_v21 = vmul.f32 0.2, %v1230_v48  ;;  %v1232_v22 = vmul.f32 0.2, %v1228_v6  ;;  %v1231_v23 = vmul.f32 0.2, %v1227_v19  ;;  %v7297_v16 = vcombine.high %v1407_v5, %v1411_v7 }
 0x44b   :  { %v7296_v53 = vcombine.low %v1407_v5, %v1411_v7  ;;  %v1455_v47 = vld [vmem:[#allocation15 + $0x6c0] sm:$0xff] }
 0x44c   :  { %v1236_v24 = vmax.f32 %v1228_v6, %v1232_v22  ;;  %v1235_v25 = vmax.f32 %v1227_v19, %v1231_v23  ;;  %v1238_v27 = vmax.f32 %v1230_v48, %v1234_v21  ;;  %v7307_v48 = vcombine.high %v1416_v35, %v1420_v9  ;;  %v1423_v6 = vld [vmem:[#allocation15 + $0x5c0] sm:$0xff]  ;;  %v1424_v21 = vld [vmem:[#allocation15 + $0x5c8] sm:$0xff] }
 0x44d   :  { %v1427_v19 = vld [vmem:[#allocation15 + $0x5e0] sm:$0xff]  ;;  %v1428_v22 = vld [vmem:[#allocation15 + $0x5e8] sm:$0xff]  ;;  %v7304_v23 = vcombine.low %v1415_v18, %v1419_v33 }
 0x44e   :  { %v9497_v31 = vpack.c.bf16 %v1236_v24, %v1236_v24  ;;  %v9499_v32 = vpack.c.bf16 %v1235_v25, %v1235_v25  ;;  %v9505_v41 = vpack.c.bf16 %v1238_v27, %v1238_v27  ;;  %v7306_v24 = vcombine.low %v1416_v35, %v1420_v9  ;;  %v1431_v27 = vld [vmem:[#allocation15 + $0x600] sm:$0xff] }
 0x44f   :  { %v7313_v25 = vcombine.high %v1423_v6, %v1427_v19  ;;  %v7315_v26 = vcombine.high %v1424_v21, %v1428_v22  ;;  %v7312_v34 = vcombine.low %v1423_v6, %v1427_v19  ;;  %v1459_v57 = vld [vmem:[#allocation15 + $0x6e0] sm:$0xff] }
 0x450   :  { %2811 = vmatprep.mubr.bf16.mxu0 %v9497_v31  ;;  %2893 = vmatprep.mubr.bf16.mxu1 %v9497_v31  ;;  %v7345_v5 = vcombine.high %v1455_v47, %v1459_v57  ;;  %v1463_v8 = vld [vmem:[#allocation15 + $0x700] sm:$0xff] }
 0x451   :  { %2812 = vmatmul.mubr.bf16.vlgmr.msra.gmra.mrb[4].mxu0 %v9499_v32  ;;  %2894 = vmatmul.mubr.bf16.vlgmr.msra.gmra.mrb[12].mxu1 %v9499_v32  ;;  %v1467_v11 = vld [vmem:[#allocation15 + $0x720] sm:$0xff] }
 0x452   :  { %2821 = vmatpush1.bf16.msra.mxu0 %v7256_v14  ;;  %2903 = vmatpush1.bf16.msra.mxu1 %v7258_v15  ;;  %v1399_v14 = vld [vmem:[#allocation15 + $0x500] sm:$0xff]  ;;  %v7353_v18 = vcombine.high %v1463_v8, %v1467_v11 }
 0x453   :  { %2852 = vmatprep.mubr.bf16.mxu0 %v9505_v41  ;;  %2934 = vmatprep.mubr.bf16.mxu1 %v9505_v41  ;;  %v1403_v15 = vld [vmem:[#allocation15 + $0x520] sm:$0xff] }
 0x454   :  { %2822 = vmatprep.subr.bf16.mxu0 %v7265_v36  ;;  %2904 = vmatprep.subr.bf16.mxu1 %v7267_v37  ;;  %v7289_v63 = vcombine.high %v1399_v14, %v1403_v15  ;;  %v7288_v12 = vcombine.low %v1399_v14, %v1403_v15  ;;  %v7314_v36 = vcombine.low %v1424_v21, %v1428_v22  ;;  %v1471_v35 = vld [vmem:[#allocation15 + $0x740] sm:$0xff] }
 0x455   :  { %v7321_v37 = vcombine.high %v1431_v27, %v1435_v28  ;;  %v7337_v14 = vcombine.high %v1447_v55, %v1451_v56  ;;  %v1475_v9 = vld [vmem:[#allocation15 + $0x760] sm:$0xff] }
 0x456   :  { %2823 = vmatpush1.bf16.msra.mxu0 %v7264_v42  ;;  %2905 = vmatpush1.bf16.msra.mxu1 %v7266_v43  ;;  %v1440_v42 = vld [vmem:[#allocation15 + $0x648] sm:$0xff]  ;;  %v7361_v6 = vcombine.high %v1471_v35, %v1475_v9  ;;  %v1479_v21 = vld [vmem:[#allocation15 + $0x780] sm:$0xff] }
 0x457   :  { %2824 = vmatprep.subr.bf16.mxu0 %v7273_v44  ;;  %2906 = vmatprep.subr.bf16.mxu1 %v7275_v45  ;;  %v1444_v43 = vld [vmem:[#allocation15 + $0x668] sm:$0xff]  ;;  %v7320_v44 = vcombine.low %v1431_v27, %v1435_v28  ;;  %v7322_v45 = vcombine.low %v1432_v29, %v1436_v30  ;;  %v1483_v22 = vld [vmem:[#allocation15 + $0x7a0] sm:$0xff] }
 0x458   :  { %v7331_v54 = vcombine.high %v1440_v42, %v1444_v43  ;;  %v7369_v27 = vcombine.high %v1479_v21, %v1483_v22  ;;  %v1487_v29 = vld [vmem:[#allocation15 + $0x7c0] sm:$0xff] }
 0x459   :  { %v1491_v30 = vld [vmem:[#allocation15 + $0x7e0] sm:$0xff] }
 0x45a   :  { %2825 = vmatpush1.bf16.msra.mxu0 %v7272_v1  ;;  %2907 = vmatpush1.bf16.msra.mxu1 %v7274_v2  ;;  %v1448_v1 = vld [vmem:[#allocation15 + $0x688] sm:$0xff] }
 0x45b   :  { %2826 = vmatprep.subr.bf16.mxu0 %v7281_v3  ;;  %2908 = vmatprep.subr.bf16.mxu1 %v7283_v10  ;;  %v1452_v2 = vld [vmem:[#allocation15 + $0x6a8] sm:$0xff]  ;;  %v7328_v3 = vcombine.low %v1439_v39, %v1443_v40  ;;  %v7330_v10 = vcombine.low %v1440_v42, %v1444_v43  ;;  %v7377_v39 = vcombine.high %v1487_v29, %v1491_v30  ;;  %v1233_v42 = vmul.f32 0.2, %v9495_v20  ;;  %v1241_v43 = vld [vmem:[#allocation15 + $0x10] sm:$0xff] }
 0x45c   :  { %v7339_v15 = vcombine.high %v1448_v1, %v1452_v2 }
 0x45e   :  { %2827 = vmatpush1.bf16.msra.mxu0 %v7280_v60  ;;  %2909 = vmatpush1.bf16.msra.mxu1 %v7282_v62  ;;  %v1456_v60 = vld [vmem:[#allocation15 + $0x6c8] sm:$0xff] }
 0x45f   :  { %2828 = vmatprep.subr.bf16.mxu0 %v7289_v63  ;;  %2910 = vmatprep.subr.bf16.mxu1 %v7291_v4  ;;  %v1460_v62 = vld [vmem:[#allocation15 + $0x6e8] sm:$0xff]  ;;  %v7336_v63 = vcombine.low %v1447_v55, %v1451_v56  ;;  %v7338_v4 = vcombine.low %v1448_v1, %v1452_v2  ;;  %v1237_v56 = vmax.f32 %v9495_v20, %v1233_v42  ;;  %v1258_v20 = vld [vmem:[#allocation15 + $0x98] sm:$0xff] }
 0x460   :  { %v7347_v7 = vcombine.high %v1456_v60, %v1460_v62 }
 0x462   :  { %2829 = vmatpush1.bf16.msra.mxu0 %v7288_v12  ;;  %2911 = vmatpush1.bf16.msra.mxu1 %v7290_v13  ;;  %v1464_v12 = vld [vmem:[#allocation15 + $0x708] sm:$0xff] }
 0x463   :  { %2830 = vmatprep.subr.bf16.mxu0 %v7297_v16  ;;  %2912 = vmatprep.subr.bf16.mxu1 %v7299_v17  ;;  %v1468_v13 = vld [vmem:[#allocation15 + $0x728] sm:$0xff]  ;;  %v7344_v16 = vcombine.low %v1455_v47, %v1459_v57  ;;  %v7346_v17 = vcombine.low %v1456_v60, %v1460_v62  ;;  %v9517_v57 = vpack.c.bf16 %v1237_v56, %v1237_v56 }
 0x464   :  { %v7355_v33 = vcombine.high %v1464_v12, %v1468_v13 }
 0x466   :  { %2831 = vmatpush1.bf16.msra.mxu0 %v7296_v53  ;;  %2913 = vmatpush1.bf16.msra.mxu1 %v7298_v0  ;;  %v1472_v53 = vld [vmem:[#allocation15 + $0x748] sm:$0xff] }
 0x467   :  { %2832 = vmatprep.subr.bf16.mxu0 %v7305_v61  ;;  %2914 = vmatprep.subr.bf16.mxu1 %v7307_v48  ;;  %v1476_v0 = vld [vmem:[#allocation15 + $0x768] sm:$0xff]  ;;  %v7352_v61 = vcombine.low %v1463_v8, %v1467_v11  ;;  %v7354_v48 = vcombine.low %v1464_v12, %v1468_v13 }
 0x468   :  { %v7363_v19 = vcombine.high %v1472_v53, %v1476_v0 }
 0x46a   :  { %2833 = vmatpush1.bf16.msra.mxu0 %v7304_v23  ;;  %2915 = vmatpush1.bf16.msra.mxu1 %v7306_v24  ;;  %v1480_v23 = vld [vmem:[#allocation15 + $0x788] sm:$0xff] }
 0x46b   :  { %2834 = vmatprep.subr.bf16.mxu0 %v7313_v25  ;;  %2916 = vmatprep.subr.bf16.mxu1 %v7315_v26  ;;  %v1484_v24 = vld [vmem:[#allocation15 + $0x7a8] sm:$0xff]  ;;  %v7360_v25 = vcombine.low %v1471_v35, %v1475_v9  ;;  %v7362_v26 = vcombine.low %v1472_v53, %v1476_v0 }
 0x46c   :  { %v7371_v28 = vcombine.high %v1480_v23, %v1484_v24 }
 0x46e   :  { %2835 = vmatpush1.bf16.msra.mxu0 %v7312_v34  ;;  %2917 = vmatpush1.bf16.msra.mxu1 %v7314_v36  ;;  %v1488_v34 = vld [vmem:[#allocation15 + $0x7c8] sm:$0xff] }
 0x46f   :  { %2836 = vmatprep.subr.bf16.mxu0 %v7321_v37  ;;  %2918 = vmatprep.subr.bf16.mxu1 %v7323_v38  ;;  %v1492_v36 = vld [vmem:[#allocation15 + $0x7e8] sm:$0xff]  ;;  %v7368_v37 = vcombine.low %v1479_v21, %v1483_v22  ;;  %v7370_v38 = vcombine.low %v1480_v23, %v1484_v24  ;;  %v1281_v24 = vld [vmem:[#allocation15 + $0x150] sm:$0xff] }
 0x470   :  { %v7379_v40 = vcombine.high %v1488_v34, %v1492_v36  ;;  %v7378_v55 = vcombine.low %v1488_v34, %v1492_v36  ;;  %v1289_v36 = vld [vmem:[#allocation15 + $0x190] sm:$0xff] }
 0x472   :  { %2837 = vmatpush1.bf16.msra.mxu0 %v7320_v44  ;;  %2919 = vmatpush1.bf16.msra.mxu1 %v7322_v45  ;;  %v1245_v44 = vld [vmem:[#allocation15 + $0x30] sm:$0xff]  ;;  %v1242_v45 = vld [vmem:[#allocation15 + $0x18] sm:$0xff] }
 0x473   :  { %2838 = vmatprep.subr.bf16.mxu0 %v7329_v51  ;;  %2920 = vmatprep.subr.bf16.mxu1 %v7331_v54  ;;  %v1246_v51 = vld [vmem:[#allocation15 + $0x38] sm:$0xff]  ;;  %v7376_v54 = vcombine.low %v1487_v29, %v1491_v30  ;;  %v7133_v1 = vcombine.high %v1241_v43, %v1245_v44  ;;  %v7132_v47 = vcombine.low %v1241_v43, %v1245_v44 }
 0x474   :  { %v7135_v2 = vcombine.high %v1242_v45, %v1246_v51  ;;  %v7134_v60 = vcombine.low %v1242_v45, %v1246_v51  ;;  %v1297_v45 = vld [vmem:[#allocation15 + $0x1d0] sm:$0xff] }
 0x475   :  { %v1301_v51 = vld [vmem:[#allocation15 + $0x1f0] sm:$0xff] }
 0x476   :  { %2839 = vmatpush1.bf16.msra.mxu0 %v7328_v3  ;;  %2921 = vmatpush1.bf16.msra.mxu1 %v7330_v10  ;;  %v1249_v3 = vld [vmem:[#allocation15 + $0x50] sm:$0xff] }
 0x477   :  { %2840 = vmatprep.subr.bf16.mxu0 %v7337_v14  ;;  %2922 = vmatprep.subr.bf16.mxu1 %v7339_v15  ;;  %v1253_v10 = vld [vmem:[#allocation15 + $0x70] sm:$0xff]  ;;  %v1250_v14 = vld [vmem:[#allocation15 + $0x58] sm:$0xff] }
 0x478   :  { %v1254_v15 = vld [vmem:[#allocation15 + $0x78] sm:$0xff]  ;;  %v7141_v62 = vcombine.high %v1249_v3, %v1253_v10  ;;  %v7140_v8 = vcombine.low %v1249_v3, %v1253_v10  ;;  %v1305_v10 = vld [vmem:[#allocation15 + $0x210] sm:$0xff] }
 0x479   :  { %v7142_v11 = vcombine.low %v1250_v14, %v1254_v15 }
 0x47a   :  { %2841 = vmatpush1.bf16.msra.mxu0 %v7336_v63  ;;  %2923 = vmatpush1.bf16.msra.mxu1 %v7338_v4  ;;  %v7143_v63 = vcombine.high %v1250_v14, %v1254_v15  ;;  %v1257_v4 = vld [vmem:[#allocation15 + $0x90] sm:$0xff]  ;;  %v1306_v15 = vld [vmem:[#allocation15 + $0x218] sm:$0xff] }
 0x47b   :  { %2842 = vmatprep.subr.bf16.mxu0 %v7345_v5  ;;  %2924 = vmatprep.subr.bf16.mxu1 %v7347_v7  ;;  %v1261_v5 = vld [vmem:[#allocation15 + $0xb0] sm:$0xff]  ;;  %v1262_v7 = vld [vmem:[#allocation15 + $0xb8] sm:$0xff] }
 0x47c   :  { %v7149_v12 = vcombine.high %v1257_v4, %v1261_v5  ;;  %v7151_v13 = vcombine.high %v1258_v20, %v1262_v7  ;;  %v7148_v35 = vcombine.low %v1257_v4, %v1261_v5  ;;  %v7150_v9 = vcombine.low %v1258_v20, %v1262_v7  ;;  %v1309_v14 = vld [vmem:[#allocation15 + $0x230] sm:$0xff]  ;;  %v1314_v7 = vld [vmem:[#allocation15 + $0x258] sm:$0xff] }
 0x47d   :  { %v1313_v5 = vld [vmem:[#allocation15 + $0x250] sm:$0xff] }
 0x47e   :  { %2843 = vmatpush1.bf16.msra.mxu0 %v7344_v16  ;;  %2925 = vmatpush1.bf16.msra.mxu1 %v7346_v17  ;;  %v1265_v16 = vld [vmem:[#allocation15 + $0xd0] sm:$0xff] }
 0x47f   :  { %2844 = vmatprep.subr.bf16.mxu0 %v7353_v18  ;;  %2926 = vmatprep.subr.bf16.mxu1 %v7355_v33  ;;  %v1269_v17 = vld [vmem:[#allocation15 + $0xf0] sm:$0xff]  ;;  %v1266_v18 = vld [vmem:[#allocation15 + $0xd8] sm:$0xff] }
 0x480   :  { %v1270_v33 = vld [vmem:[#allocation15 + $0xf8] sm:$0xff]  ;;  %v7157_v53 = vcombine.high %v1265_v16, %v1269_v17  ;;  %v1317_v20 = vld [vmem:[#allocation15 + $0x270] sm:$0xff] }
 0x481   :  { %v7159_v0 = vcombine.high %v1266_v18, %v1270_v33  ;;  %v7158_v21 = vcombine.low %v1266_v18, %v1270_v33  ;;  %v1325_v18 = vld [vmem:[#allocation15 + $0x2b0] sm:$0xff]  ;;  %v1322_v33 = vld [vmem:[#allocation15 + $0x298] sm:$0xff] }
 0x482   :  { %2845 = vmatpush1.bf16.msra.mxu0 %v7352_v61  ;;  %2927 = vmatpush1.bf16.msra.mxu1 %v7354_v48  ;;  %v1273_v61 = vld [vmem:[#allocation15 + $0x110] sm:$0xff] }
 0x483   :  { %2846 = vmatprep.subr.bf16.mxu0 %v7361_v6  ;;  %2928 = vmatprep.subr.bf16.mxu1 %v7363_v19  ;;  %v1277_v48 = vld [vmem:[#allocation15 + $0x130] sm:$0xff]  ;;  %v1278_v6 = vld [vmem:[#allocation15 + $0x138] sm:$0xff]  ;;  %v7156_v19 = vcombine.low %v1265_v16, %v1269_v17 }
 0x484   :  { %v7165_v22 = vcombine.high %v1273_v61, %v1277_v48  ;;  %v1321_v17 = vld [vmem:[#allocation15 + $0x290] sm:$0xff] }
 0x486   :  { %2847 = vmatpush1.bf16.msra.mxu0 %v7360_v25  ;;  %2929 = vmatpush1.bf16.msra.mxu1 %v7362_v26  ;;  %v1285_v25 = vld [vmem:[#allocation15 + $0x170] sm:$0xff]  ;;  %v1282_v26 = vld [vmem:[#allocation15 + $0x158] sm:$0xff] }
 0x487   :  { %2848 = vmatprep.subr.bf16.mxu0 %v7369_v27  ;;  %2930 = vmatprep.subr.bf16.mxu1 %v7371_v28  ;;  %v1286_v27 = vld [vmem:[#allocation15 + $0x178] sm:$0xff]  ;;  %v7164_v28 = vcombine.low %v1273_v61, %v1277_v48  ;;  %v7173_v30 = vcombine.high %v1281_v24, %v1285_v25  ;;  %v1329_v48 = vld [vmem:[#allocation15 + $0x2d0] sm:$0xff] }
 0x488   :  { %v7175_v34 = vcombine.high %v1282_v26, %v1286_v27  ;;  %v7174_v42 = vcombine.low %v1282_v26, %v1286_v27  ;;  %v1341_v26 = vld [vmem:[#allocation15 + $0x330] sm:$0xff]  ;;  %v1338_v27 = vld [vmem:[#allocation15 + $0x318] sm:$0xff] }
 0x48a   :  { %2849 = vmatpush1.bf16.msra.mxu0 %v7368_v37  ;;  %2931 = vmatpush1.bf16.msra.mxu1 %v7370_v38  ;;  %v1293_v37 = vld [vmem:[#allocation15 + $0x1b0] sm:$0xff]  ;;  %v1290_v38 = vld [vmem:[#allocation15 + $0x198] sm:$0xff] }
 0x48b   :  { %2850 = vmatprep.subr.bf16.mxu0 %v7377_v39  ;;  %2932 = vmatprep.subr.bf16.mxu1 %v7379_v40  ;;  %v1294_v39 = vld [vmem:[#allocation15 + $0x1b8] sm:$0xff]  ;;  %v7172_v40 = vcombine.low %v1281_v24, %v1285_v25  ;;  %v7181_v43 = vcombine.high %v1289_v36, %v1293_v37  ;;  %v7180_v56 = vcombine.low %v1289_v36, %v1293_v37  ;;  %v1337_v25 = vld [vmem:[#allocation15 + $0x310] sm:$0xff] }
 0x48c   :  { %v7183_v44 = vcombine.high %v1290_v38, %v1294_v39  ;;  %v1345_v37 = vld [vmem:[#allocation15 + $0x350] sm:$0xff] }
 0x48e   :  { %2851 = vmatpush1.bf16.msra.mxu0 %v7376_v54  ;;  %2933 = vmatpush1.bf16.msra.mxu1 %v7378_v55  ;;  %v1298_v54 = vld [vmem:[#allocation15 + $0x1d8] sm:$0xff] }
 0x48f   :  { %2943 = vmatprep.subr.bf16.mxu0 %v7133_v1  ;;  %3025 = vmatprep.subr.bf16.mxu1 %v7135_v2  ;;  %v1302_v55 = vld [vmem:[#allocation15 + $0x1f8] sm:$0xff]  ;;  %v7182_v1 = vcombine.low %v1290_v38, %v1294_v39  ;;  %v7189_v2 = vcombine.high %v1297_v45, %v1301_v51  ;;  %v1349_v38 = vld [vmem:[#allocation15 + $0x370] sm:$0xff] }
 0x490   :  { %v7191_v3 = vcombine.high %v1298_v54, %v1302_v55  ;;  %v1346_v39 = vld [vmem:[#allocation15 + $0x358] sm:$0xff] }
 0x491   :  { %2853 = vmatmul.mubr.bf16.vlgmr.msra.gmra.mrb[4].mxu0 %v9517_v57  ;;  %2935 = vmatmul.mubr.bf16.vlgmr.msra.gmra.mrb[12].mxu1 %v9517_v57 }
 0x492   :  { %2944 = vmatpush1.bf16.msra.mxu0 %v7132_v47  ;;  %2975 = vmatprep.mubr.bf16.mxu0 %v9497_v31  ;;  %v1310_v47 = vld [vmem:[#allocation15 + $0x238] sm:$0xff] }
 0x493   :  { %3026 = vmatpush1.bf16.msra.mxu1 %v7134_v60  ;;  %3057 = vmatprep.mubr.bf16.mxu1 %v9497_v31  ;;  %v1274_v31 = vld [vmem:[#allocation15 + $0x118] sm:$0xff]  ;;  %v7188_v60 = vcombine.low %v1297_v45, %v1301_v51  ;;  %v7199_v4 = vcombine.high %v1306_v15, %v1310_v47  ;;  %v1353_v51 = vld [vmem:[#allocation15 + $0x390] sm:$0xff] }
 0x494   :  { %2945 = vmatprep.subr.bf16.mxu0 %v7141_v62  ;;  %3027 = vmatprep.subr.bf16.mxu1 %v7143_v63  ;;  %v7167_v23 = vcombine.high %v1274_v31, %v1278_v6  ;;  %v7166_v29 = vcombine.low %v1274_v31, %v1278_v6  ;;  %v7190_v62 = vcombine.low %v1298_v54, %v1302_v55  ;;  %v1333_v31 = vld [vmem:[#allocation15 + $0x2f0] sm:$0xff]  ;;  %v1330_v6 = vld [vmem:[#allocation15 + $0x2d8] sm:$0xff] }
 0x495   :  { %v7197_v63 = vcombine.high %v1305_v10, %v1309_v14  ;;  %v1357_v54 = vld [vmem:[#allocation15 + $0x3b0] sm:$0xff]  ;;  %v1354_v55 = vld [vmem:[#allocation15 + $0x398] sm:$0xff] }
 0x496   :  { %2946 = vmatpush1.bf16.msra.mxu0 %v7140_v8  ;;  %v1318_v8 = vld [vmem:[#allocation15 + $0x278] sm:$0xff] }
 0x497   :  { %3028 = vmatpush1.bf16.msra.mxu1 %v7142_v11  ;;  %2947 = vmatprep.subr.bf16.mxu0 %v7149_v12  ;;  %v7196_v11 = vcombine.low %v1305_v10, %v1309_v14  ;;  %v7198_v12 = vcombine.low %v1306_v15, %v1310_v47  ;;  %v7207_v16 = vcombine.high %v1314_v7, %v1318_v8  ;;  %v1361_v14 = vld [vmem:[#allocation15 + $0x3d0] sm:$0xff]  ;;  %v1362_v47 = vld [vmem:[#allocation15 + $0x3d8] sm:$0xff] }
 0x498   :  { %3029 = vmatprep.subr.bf16.mxu1 %v7151_v13  ;;  %v7205_v13 = vcombine.high %v1313_v5, %v1317_v20  ;;  %v1365_v15 = vld [vmem:[#allocation15 + $0x3f0] sm:$0xff] }
 0x49a   :  { %2948 = vmatpush1.bf16.msra.mxu0 %v7148_v35  ;;  %v1326_v35 = vld [vmem:[#allocation15 + $0x2b8] sm:$0xff] }
 0x49b   :  { %3030 = vmatpush1.bf16.msra.mxu1 %v7150_v9  ;;  %2949 = vmatprep.subr.bf16.mxu0 %v7157_v53  ;;  %v7204_v9 = vcombine.low %v1313_v5, %v1317_v20  ;;  %v7206_v53 = vcombine.low %v1314_v7, %v1318_v8  ;;  %v7215_v61 = vcombine.high %v1322_v33, %v1326_v35  ;;  %v1369_v20 = vld [vmem:[#allocation15 + $0x410] sm:$0xff]  ;;  %v1370_v8 = vld [vmem:[#allocation15 + $0x418] sm:$0xff] }
 0x49c   :  { %3031 = vmatprep.subr.bf16.mxu1 %v7159_v0  ;;  %v7213_v0 = vcombine.high %v1321_v17, %v1325_v18  ;;  %v1373_v7 = vld [vmem:[#allocation15 + $0x430] sm:$0xff] }
 0x49e   :  { %2950 = vmatpush1.bf16.msra.mxu0 %v7156_v19  ;;  %v1334_v19 = vld [vmem:[#allocation15 + $0x2f8] sm:$0xff] }
 0x49f   :  { %3032 = vmatpush1.bf16.msra.mxu1 %v7158_v21  ;;  %2951 = vmatprep.subr.bf16.mxu0 %v7165_v22  ;;  %v7212_v21 = vcombine.low %v1321_v17, %v1325_v18  ;;  %v7214_v22 = vcombine.low %v1322_v33, %v1326_v35  ;;  %v7223_v24 = vcombine.high %v1330_v6, %v1334_v19  ;;  %v1377_v18 = vld [vmem:[#allocation15 + $0x450] sm:$0xff] }
 0x4a0   :  { %3033 = vmatprep.subr.bf16.mxu1 %v7167_v23  ;;  %v7221_v23 = vcombine.high %v1329_v48, %v1333_v31  ;;  %v1381_v33 = vld [vmem:[#allocation15 + $0x470] sm:$0xff]  ;;  %v7260_v35 = vcombine.low %v1369_v20, %v1373_v7 }
 0x4a2   :  { %2952 = vmatpush1.bf16.msra.mxu0 %v7164_v28  ;;  %v1342_v28 = vld [vmem:[#allocation15 + $0x338] sm:$0xff] }
 0x4a3   :  { %3034 = vmatpush1.bf16.msra.mxu1 %v7166_v29  ;;  %2953 = vmatprep.subr.bf16.mxu0 %v7173_v30  ;;  %v7220_v29 = vcombine.low %v1329_v48, %v1333_v31  ;;  %v7222_v30 = vcombine.low %v1330_v6, %v1334_v19  ;;  %v7231_v36 = vcombine.high %v1338_v27, %v1342_v28  ;;  %v1385_v48 = vld [vmem:[#allocation15 + $0x490] sm:$0xff]  ;;  %v1386_v19 = vld [vmem:[#allocation15 + $0x498] sm:$0xff] }
 0x4a4   :  { %3035 = vmatprep.subr.bf16.mxu1 %v7175_v34  ;;  %v7229_v34 = vcombine.high %v1337_v25, %v1341_v26  ;;  %v1389_v31 = vld [vmem:[#allocation15 + $0x4b0] sm:$0xff] }
 0x4a6   :  { %2954 = vmatpush1.bf16.msra.mxu0 %v7172_v40  ;;  %v1350_v40 = vld [vmem:[#allocation15 + $0x378] sm:$0xff] }
 0x4a7   :  { %3036 = vmatpush1.bf16.msra.mxu1 %v7174_v42  ;;  %2955 = vmatprep.subr.bf16.mxu0 %v7181_v43  ;;  %v7228_v42 = vcombine.low %v1337_v25, %v1341_v26  ;;  %v7230_v43 = vcombine.low %v1338_v27, %v1342_v28  ;;  %v7239_v45 = vcombine.high %v1346_v39, %v1350_v40  ;;  %v1393_v26 = vld [vmem:[#allocation15 + $0x4d0] sm:$0xff]  ;;  %v1394_v28 = vld [vmem:[#allocation15 + $0x4d8] sm:$0xff] }
 0x4a8   :  { %3037 = vmatprep.subr.bf16.mxu1 %v7183_v44  ;;  %v7237_v44 = vcombine.high %v1345_v37, %v1349_v38  ;;  %v1397_v27 = vld [vmem:[#allocation15 + $0x4f0] sm:$0xff] }
 0x4aa   :  { %2956 = vmatpush1.bf16.msra.mxu0 %v7180_v56  ;;  %v1358_v56 = vld [vmem:[#allocation15 + $0x3b8] sm:$0xff] }
 0x4ab   :  { %3038 = vmatpush1.bf16.msra.mxu1 %v7182_v1  ;;  %2957 = vmatprep.subr.bf16.mxu0 %v7189_v2  ;;  %v7236_v1 = vcombine.low %v1345_v37, %v1349_v38  ;;  %v7238_v2 = vcombine.low %v1346_v39, %v1350_v40  ;;  %v7247_v10 = vcombine.high %v1354_v55, %v1358_v56  ;;  %v1401_v37 = vld [vmem:[#allocation15 + $0x510] sm:$0xff]  ;;  %v1402_v39 = vld [vmem:[#allocation15 + $0x518] sm:$0xff] }
 0x4ac   :  { %3039 = vmatprep.subr.bf16.mxu1 %v7191_v3  ;;  %v7245_v3 = vcombine.high %v1353_v51, %v1357_v54  ;;  %v1405_v38 = vld [vmem:[#allocation15 + $0x530] sm:$0xff]  ;;  %v1406_v40 = vld [vmem:[#allocation15 + $0x538] sm:$0xff] }
 0x4ae   :  { %2958 = vmatpush1.bf16.msra.mxu0 %v7188_v60  ;;  %v1366_v60 = vld [vmem:[#allocation15 + $0x3f8] sm:$0xff] }
 0x4af   :  { %3040 = vmatpush1.bf16.msra.mxu1 %v7190_v62  ;;  %2959 = vmatprep.subr.bf16.mxu0 %v7197_v63  ;;  %v7244_v62 = vcombine.low %v1353_v51, %v1357_v54  ;;  %v7246_v63 = vcombine.low %v1354_v55, %v1358_v56  ;;  %v7255_v5 = vcombine.high %v1362_v47, %v1366_v60  ;;  %v1413_v51 = vld [vmem:[#allocation15 + $0x570] sm:$0xff]  ;;  %v1410_v54 = vld [vmem:[#allocation15 + $0x558] sm:$0xff] }
 0x4b0   :  { %3041 = vmatprep.subr.bf16.mxu1 %v7199_v4  ;;  %v7253_v4 = vcombine.high %v1361_v14, %v1365_v15  ;;  %v1414_v55 = vld [vmem:[#allocation15 + $0x578] sm:$0xff]  ;;  %v7292_v56 = vcombine.low %v1401_v37, %v1405_v38 }
 0x4b2   :  { %2960 = vmatpush1.bf16.msra.mxu0 %v7196_v11  ;;  %v1374_v11 = vld [vmem:[#allocation15 + $0x438] sm:$0xff] }
 0x4b3   :  { %3042 = vmatpush1.bf16.msra.mxu1 %v7198_v12  ;;  %2961 = vmatprep.subr.bf16.mxu0 %v7205_v13  ;;  %v7252_v12 = vcombine.low %v1361_v14, %v1365_v15  ;;  %v7254_v13 = vcombine.low %v1362_v47, %v1366_v60  ;;  %v7263_v17 = vcombine.high %v1370_v8, %v1374_v11  ;;  %v1421_v14 = vld [vmem:[#allocation15 + $0x5b0] sm:$0xff]  ;;  %v1418_v15 = vld [vmem:[#allocation15 + $0x598] sm:$0xff] }
 0x4b4   :  { %3043 = vmatprep.subr.bf16.mxu1 %v7207_v16  ;;  %v7261_v16 = vcombine.high %v1369_v20, %v1373_v7  ;;  %v1422_v47 = vld [vmem:[#allocation15 + $0x5b8] sm:$0xff]  ;;  %v1429_v20 = vld [vmem:[#allocation15 + $0x5f0] sm:$0xff] }
 0x4b5   :  { %v1426_v7 = vld [vmem:[#allocation15 + $0x5d8] sm:$0xff] }
 0x4b6   :  { %2962 = vmatpush1.bf16.msra.mxu0 %v7204_v9  ;;  %v1378_v9 = vld [vmem:[#allocation15 + $0x458] sm:$0xff] }
 0x4b7   :  { %3044 = vmatpush1.bf16.msra.mxu1 %v7206_v53  ;;  %2963 = vmatprep.subr.bf16.mxu0 %v7213_v0  ;;  %v1382_v53 = vld [vmem:[#allocation15 + $0x478] sm:$0xff]  ;;  %v7262_v0 = vcombine.low %v1370_v8, %v1374_v11 }
 0x4b8   :  { %3045 = vmatprep.subr.bf16.mxu1 %v7215_v61  ;;  %v7269_v61 = vcombine.high %v1377_v18, %v1381_v33  ;;  %v7271_v6 = vcombine.high %v1378_v9, %v1382_v53  ;;  %v1430_v8 = vld [vmem:[#allocation15 + $0x5f8] sm:$0xff] }
 0x4ba   :  { %2964 = vmatpush1.bf16.msra.mxu0 %v7212_v21  ;;  %v1390_v21 = vld [vmem:[#allocation15 + $0x4b8] sm:$0xff] }
 0x4bb   :  { %3046 = vmatpush1.bf16.msra.mxu1 %v7214_v22  ;;  %2965 = vmatprep.subr.bf16.mxu0 %v7221_v23  ;;  %v7268_v22 = vcombine.low %v1377_v18, %v1381_v33  ;;  %v7270_v23 = vcombine.low %v1378_v9, %v1382_v53  ;;  %v7279_v25 = vcombine.high %v1386_v19, %v1390_v21  ;;  %v1437_v18 = vld [vmem:[#allocation15 + $0x630] sm:$0xff]  ;;  %v1434_v33 = vld [vmem:[#allocation15 + $0x618] sm:$0xff] }
 0x4bc   :  { %3047 = vmatprep.subr.bf16.mxu1 %v7223_v24  ;;  %v7277_v24 = vcombine.high %v1385_v48, %v1389_v31  ;;  %v7318_v53 = vcombine.low %v1426_v7, %v1430_v8 }
 0x4be   :  { %2966 = vmatpush1.bf16.msra.mxu0 %v7220_v29  ;;  %v1398_v29 = vld [vmem:[#allocation15 + $0x4f8] sm:$0xff] }
 0x4bf   :  { %3048 = vmatpush1.bf16.msra.mxu1 %v7222_v30  ;;  %2967 = vmatprep.subr.bf16.mxu0 %v7229_v34  ;;  %v7276_v30 = vcombine.low %v1385_v48, %v1389_v31  ;;  %v7285_v34 = vcombine.high %v1393_v26, %v1397_v27  ;;  %v1441_v48 = vld [vmem:[#allocation15 + $0x650] sm:$0xff] }
 0x4c0   :  { %3049 = vmatprep.subr.bf16.mxu1 %v7231_v36  ;;  %v7287_v36 = vcombine.high %v1394_v28, %v1398_v29  ;;  %v1445_v31 = vld [vmem:[#allocation15 + $0x670] sm:$0xff] }
 0x4c2   :  { %2968 = vmatpush1.bf16.msra.mxu0 %v7228_v42  ;;  %v7286_v42 = vcombine.low %v1394_v28, %v1398_v29  ;;  %v1454_v28 = vld [vmem:[#allocation15 + $0x6b8] sm:$0xff]  ;;  %v7332_v29 = vcombine.low %v1441_v48, %v1445_v31 }
 0x4c3   :  { %3050 = vmatpush1.bf16.msra.mxu1 %v7230_v43  ;;  %2969 = vmatprep.subr.bf16.mxu0 %v7237_v44  ;;  %v7293_v43 = vcombine.high %v1401_v37, %v1405_v38  ;;  %v7295_v44 = vcombine.high %v1402_v39, %v1406_v40  ;;  %v1461_v37 = vld [vmem:[#allocation15 + $0x6f0] sm:$0xff]  ;;  %v1458_v38 = vld [vmem:[#allocation15 + $0x6d8] sm:$0xff] }
 0x4c4   :  { %3051 = vmatprep.subr.bf16.mxu1 %v7239_v45  ;;  %v1409_v45 = vld [vmem:[#allocation15 + $0x550] sm:$0xff] }
 0x4c5   :  { %v7300_v60 = vcombine.low %v1409_v45, %v1413_v51 }
 0x4c6   :  { %2970 = vmatpush1.bf16.msra.mxu0 %v7236_v1  ;;  %v7294_v1 = vcombine.low %v1402_v39, %v1406_v40  ;;  %v1462_v39 = vld [vmem:[#allocation15 + $0x6f8] sm:$0xff] }
 0x4c7   :  { %3052 = vmatpush1.bf16.msra.mxu1 %v7238_v2  ;;  %2971 = vmatprep.subr.bf16.mxu0 %v7245_v3  ;;  %v7301_v2 = vcombine.high %v1409_v45, %v1413_v51  ;;  %v7303_v3 = vcombine.high %v1410_v54, %v1414_v55  ;;  %v1469_v45 = vld [vmem:[#allocation15 + $0x730] sm:$0xff]  ;;  %v1466_v51 = vld [vmem:[#allocation15 + $0x718] sm:$0xff] }
 0x4c8   :  { %3053 = vmatprep.subr.bf16.mxu1 %v7247_v10  ;;  %v1417_v10 = vld [vmem:[#allocation15 + $0x590] sm:$0xff] }
 0x4c9   :  { %v7308_v11 = vcombine.low %v1417_v10, %v1421_v14 }
 0x4ca   :  { %2972 = vmatpush1.bf16.msra.mxu0 %v7244_v62  ;;  %v7302_v62 = vcombine.low %v1410_v54, %v1414_v55  ;;  %v1470_v54 = vld [vmem:[#allocation15 + $0x738] sm:$0xff] }
 0x4cb   :  { %3054 = vmatpush1.bf16.msra.mxu1 %v7246_v63  ;;  %2973 = vmatprep.subr.bf16.mxu0 %v7253_v4  ;;  %v7309_v63 = vcombine.high %v1417_v10, %v1421_v14  ;;  %v7311_v4 = vcombine.high %v1418_v15, %v1422_v47  ;;  %v1477_v10 = vld [vmem:[#allocation15 + $0x770] sm:$0xff]  ;;  %v1474_v14 = vld [vmem:[#allocation15 + $0x758] sm:$0xff] }
 0x4cc   :  { %3055 = vmatprep.subr.bf16.mxu1 %v7255_v5  ;;  %v1425_v5 = vld [vmem:[#allocation15 + $0x5d0] sm:$0xff] }
 0x4cd   :  { %v7316_v9 = vcombine.low %v1425_v5, %v1429_v20 }
 0x4ce   :  { %2974 = vmatpush1.bf16.msra.mxu0 %v7252_v12  ;;  %v7310_v12 = vcombine.low %v1418_v15, %v1422_v47  ;;  %v1478_v15 = vld [vmem:[#allocation15 + $0x778] sm:$0xff] }
 0x4cf   :  { %3056 = vmatpush1.bf16.msra.mxu1 %v7254_v13  ;;  %2984 = vmatprep.subr.bf16.mxu0 %v7261_v16  ;;  %v7317_v13 = vcombine.high %v1425_v5, %v1429_v20  ;;  %v7319_v16 = vcombine.high %v1426_v7, %v1430_v8  ;;  %v1485_v5 = vld [vmem:[#allocation15 + $0x7b0] sm:$0xff]  ;;  %v1482_v20 = vld [vmem:[#allocation15 + $0x798] sm:$0xff] }
 0x4d0   :  { %3066 = vmatprep.subr.bf16.mxu1 %v7263_v17  ;;  %v1433_v17 = vld [vmem:[#allocation15 + $0x610] sm:$0xff]  ;;  %v1486_v7 = vld [vmem:[#allocation15 + $0x7b8] sm:$0xff] }
 0x4d1   :  { %2976 = vmatmul.mubr.bf16.vlgmr.msra.gmra.mrb[8].mxu0 %v9499_v32 }
 0x4d2   :  { %3058 = vmatmul.mubr.bf16.vlgmr.msra.gmra.mrb[16].mxu1 %v9499_v32  ;;  %2985 = vmatpush1.bf16.msra.mxu0 %v7260_v35  ;;  %v7278_v32 = vcombine.low %v1386_v19, %v1390_v21  ;;  %v1438_v35 = vld [vmem:[#allocation15 + $0x638] sm:$0xff]  ;;  %v7324_v21 = vcombine.low %v1433_v17, %v1437_v18 }
 0x4d3   :  { %3016 = vmatprep.mubr.bf16.mxu0 %v9505_v41  ;;  %3067 = vmatpush1.bf16.msra.mxu1 %v7262_v0  ;;  %v7325_v0 = vcombine.high %v1433_v17, %v1437_v18  ;;  %v1446_v19 = vld [vmem:[#allocation15 + $0x678] sm:$0xff]  ;;  %v1493_v17 = vld [vmem:[#allocation15 + $0x7f0] sm:$0xff] }
 0x4d4   :  { %3098 = vmatprep.mubr.bf16.mxu1 %v9505_v41  ;;  %2986 = vmatprep.subr.bf16.mxu0 %v7269_v61  ;;  %v7284_v41 = vcombine.low %v1393_v26, %v1397_v27  ;;  %v7327_v61 = vcombine.high %v1434_v33, %v1438_v35  ;;  %v1453_v26 = vld [vmem:[#allocation15 + $0x6b0] sm:$0xff]  ;;  %v1450_v27 = vld [vmem:[#allocation15 + $0x698] sm:$0xff] }
 0x4d5   :  { %3068 = vmatprep.subr.bf16.mxu1 %v7271_v6  ;;  %v1442_v6 = vld [vmem:[#allocation15 + $0x658] sm:$0xff] }
 0x4d6   :  { %2987 = vmatpush1.bf16.msra.mxu0 %v7268_v22  ;;  %v7326_v22 = vcombine.low %v1434_v33, %v1438_v35  ;;  %v1490_v18 = vld [vmem:[#allocation15 + $0x7d8] sm:$0xff] }
 0x4d7   :  { %3069 = vmatpush1.bf16.msra.mxu1 %v7270_v23  ;;  %2988 = vmatprep.subr.bf16.mxu0 %v7277_v24  ;;  %v7333_v23 = vcombine.high %v1441_v48, %v1445_v31  ;;  %v7335_v24 = vcombine.high %v1442_v6, %v1446_v19  ;;  %v1494_v33 = vld [vmem:[#allocation15 + $0x7f8] sm:$0xff] }
 0x4d8   :  { %3070 = vmatprep.subr.bf16.mxu1 %v7279_v25  ;;  %v1449_v25 = vld [vmem:[#allocation15 + $0x690] sm:$0xff]  ;;  %v7382_v48 = vcombine.low %v1490_v18, %v1494_v33 }
 0x4d9   :  { %v7340_v40 = vcombine.low %v1449_v25, %v1453_v26 }
 0x4da   :  { %2989 = vmatpush1.bf16.msra.mxu0 %v7276_v30  ;;  %v7334_v30 = vcombine.low %v1442_v6, %v1446_v19 }
 0x4db   :  { %3071 = vmatpush1.bf16.msra.mxu1 %v7278_v32  ;;  %2990 = vmatprep.subr.bf16.mxu0 %v7285_v34  ;;  %v7341_v32 = vcombine.high %v1449_v25, %v1453_v26  ;;  %v7343_v34 = vcombine.high %v1450_v27, %v1454_v28 }
 0x4dc   :  { %3072 = vmatprep.subr.bf16.mxu1 %v7287_v36  ;;  %v1457_v36 = vld [vmem:[#allocation15 + $0x6d0] sm:$0xff] }
 0x4dd   :  { %v7348_v55 = vcombine.low %v1457_v36, %v1461_v37 }
 0x4de   :  { %2991 = vmatpush1.bf16.msra.mxu0 %v7284_v41  ;;  %v7342_v41 = vcombine.low %v1450_v27, %v1454_v28 }
 0x4df   :  { %3073 = vmatpush1.bf16.msra.mxu1 %v7286_v42  ;;  %2992 = vmatprep.subr.bf16.mxu0 %v7293_v43  ;;  %v7349_v42 = vcombine.high %v1457_v36, %v1461_v37  ;;  %v7351_v43 = vcombine.high %v1458_v38, %v1462_v39 }
 0x4e0   :  { %3074 = vmatprep.subr.bf16.mxu1 %v7295_v44  ;;  %v1465_v44 = vld [vmem:[#allocation15 + $0x710] sm:$0xff] }
 0x4e1   :  { %v7356_v47 = vcombine.low %v1465_v44, %v1469_v45 }
 0x4e2   :  { %2993 = vmatpush1.bf16.msra.mxu0 %v7292_v56  ;;  %v7350_v56 = vcombine.low %v1458_v38, %v1462_v39 }
 0x4e3   :  { %3075 = vmatpush1.bf16.msra.mxu1 %v7294_v1  ;;  %2994 = vmatprep.subr.bf16.mxu0 %v7301_v2  ;;  %v7357_v1 = vcombine.high %v1465_v44, %v1469_v45  ;;  %v7359_v2 = vcombine.high %v1466_v51, %v1470_v54 }
 0x4e4   :  { %3076 = vmatprep.subr.bf16.mxu1 %v7303_v3  ;;  %v1473_v3 = vld [vmem:[#allocation15 + $0x750] sm:$0xff] }
 0x4e5   :  { %v7364_v8 = vcombine.low %v1473_v3, %v1477_v10 }
 0x4e6   :  { %2995 = vmatpush1.bf16.msra.mxu0 %v7300_v60  ;;  %v7358_v60 = vcombine.low %v1466_v51, %v1470_v54 }
 0x4e7   :  { %3077 = vmatpush1.bf16.msra.mxu1 %v7302_v62  ;;  %2996 = vmatprep.subr.bf16.mxu0 %v7309_v63  ;;  %v7365_v62 = vcombine.high %v1473_v3, %v1477_v10  ;;  %v7367_v63 = vcombine.high %v1474_v14, %v1478_v15 }
 0x4e8   :  { %3078 = vmatprep.subr.bf16.mxu1 %v7311_v4  ;;  %v1481_v4 = vld [vmem:[#allocation15 + $0x790] sm:$0xff] }
 0x4e9   :  { %v7372_v35 = vcombine.low %v1481_v4, %v1485_v5 }
 0x4ea   :  { %2997 = vmatpush1.bf16.msra.mxu0 %v7308_v11  ;;  %v7366_v11 = vcombine.low %v1474_v14, %v1478_v15 }
 0x4eb   :  { %3079 = vmatpush1.bf16.msra.mxu1 %v7310_v12  ;;  %2998 = vmatprep.subr.bf16.mxu0 %v7317_v13  ;;  %v7373_v12 = vcombine.high %v1481_v4, %v1485_v5  ;;  %v7375_v13 = vcombine.high %v1482_v20, %v1486_v7 }
 0x4ec   :  { %3080 = vmatprep.subr.bf16.mxu1 %v7319_v16  ;;  %v1489_v16 = vld [vmem:[#allocation15 + $0x7d0] sm:$0xff] }
 0x4ee   :  { %2999 = vmatpush1.bf16.msra.mxu0 %v7316_v9  ;;  %v7374_v9 = vcombine.low %v1482_v20, %v1486_v7 }
 0x4ef   :  { %3081 = vmatpush1.bf16.msra.mxu1 %v7318_v53  ;;  %3000 = vmatprep.subr.bf16.mxu0 %v7325_v0  ;;  %v7381_v53 = vcombine.high %v1489_v16, %v1493_v17  ;;  %v7383_v0 = vcombine.high %v1490_v18, %v1494_v33  ;;  %v8162_v18 = vld [vmem:[#allocation19] ss:$28 sps:$4 sm:$0xff]   ;;  %v8165_v33 = vld [vmem:[#allocation19 + $0x8] ss:$28 sps:$4 sm:$0xff]  }
 0x4f0   :  { %3082 = vmatprep.subr.bf16.mxu1 %v7327_v61  ;;  %v7380_v61 = vcombine.low %v1489_v16, %v1493_v17 }
 0x4f2   :  { %3001 = vmatpush1.bf16.msra.mxu0 %v7324_v21 }
 0x4f3   :  { %3083 = vmatpush1.bf16.msra.mxu1 %v7326_v22  ;;  %3002 = vmatprep.subr.bf16.mxu0 %v7333_v23 }
 0x4f4   :  { %3084 = vmatprep.subr.bf16.mxu1 %v7335_v24 }
 0x4f6   :  { %3003 = vmatpush1.bf16.msra.mxu0 %v7332_v29 }
 0x4f7   :  { %3085 = vmatpush1.bf16.msra.mxu1 %v7334_v30  ;;  %3004 = vmatprep.subr.bf16.mxu0 %v7341_v32 }
 0x4f8   :  { %3086 = vmatprep.subr.bf16.mxu1 %v7343_v34 }
 0x4fa   :  { %3005 = vmatpush1.bf16.msra.mxu0 %v7340_v40 }
 0x4fb   :  { %3087 = vmatpush1.bf16.msra.mxu1 %v7342_v41  ;;  %3006 = vmatprep.subr.bf16.mxu0 %v7349_v42 }
 0x4fc   :  { %3088 = vmatprep.subr.bf16.mxu1 %v7351_v43 }
 0x4fe   :  { %3007 = vmatpush1.bf16.msra.mxu0 %v7348_v55 }
 0x4ff   :  { %3089 = vmatpush1.bf16.msra.mxu1 %v7350_v56  ;;  %3008 = vmatprep.subr.bf16.mxu0 %v7357_v1 }
 0x500   :  { %3090 = vmatprep.subr.bf16.mxu1 %v7359_v2 }
 0x502   :  { %3009 = vmatpush1.bf16.msra.mxu0 %v7356_v47 }
 0x503   :  { %3091 = vmatpush1.bf16.msra.mxu1 %v7358_v60  ;;  %3010 = vmatprep.subr.bf16.mxu0 %v7365_v62 }
 0x504   :  { %3092 = vmatprep.subr.bf16.mxu1 %v7367_v63 }
 0x506   :  { %3011 = vmatpush1.bf16.msra.mxu0 %v7364_v8  ;;  %v8164_v8 = vld [vmem:[#allocation19 + $0x4] ss:$28 sps:$4 sm:$0xff]  }
 0x507   :  { %3093 = vmatpush1.bf16.msra.mxu1 %v7366_v11  ;;  %3012 = vmatprep.subr.bf16.mxu0 %v7373_v12  ;;  %v8167_v11 = vld [vmem:[#allocation19 + $0xc] ss:$28 sps:$4 sm:$0xff]  }
 0x508   :  { %3094 = vmatprep.subr.bf16.mxu1 %v7375_v13 }
 0x50a   :  { %3013 = vmatpush1.bf16.msra.mxu0 %v7372_v35 }
 0x50b   :  { %3095 = vmatpush1.bf16.msra.mxu1 %v7374_v9  ;;  %3014 = vmatprep.subr.bf16.mxu0 %v7381_v53 }
 0x50c   :  { %3096 = vmatprep.subr.bf16.mxu1 %v7383_v0 }
 0x50e   :  { %3015 = vmatpush1.bf16.msra.mxu0 %v7380_v61 }
 0x50f   :  { %3097 = vmatpush1.bf16.msra.mxu1 %v7382_v48  ;;  %6362 = vmatprep.subr.bf16.mxu0 %v8164_v8  ;;  %v8186_v8 = vld [vmem:[#allocation19 + $0xe0] ss:$28 sps:$4 sm:$0xff]  }
 0x510   :  { %6526 = vmatprep.subr.bf16.mxu1 %v8167_v11  ;;  %v8189_v11 = vld [vmem:[#allocation19 + $0xe8] ss:$28 sps:$4 sm:$0xff]  }
 0x511   :  { %3017 = vmatmul.mubr.bf16.vlgmr.msra.gmra.mrb[8].mxu0 %v9517_v57 }
 0x512   :  { %3099 = vmatmul.mubr.bf16.vlgmr.msra.gmra.mrb[16].mxu1 %v9517_v57  ;;  %6363 = vmatpush1.bf16.msra.mxu0 %v8162_v18 }
 0x513   :  { %6527 = vmatpush1.bf16.msra.mxu1 %v8165_v33 }
 0x564   :  { %v9529_v31 = vpop.f32.mrb[4].mxu0  ;;  %v9531_v6 = vpop.f32.mrb[12].mxu1 }
 0x565   :  { %v3109_v19 = vrot.slane %v9529_v31, 4  ;;  %v3165_v21 = vmul.f32 %v9529_v31, %v9529_v31  ;;  %v3121_v22 = vrot.slane %v9531_v6, 4  ;;  %v3167_v23 = vmul.f32 %v9531_v6, %v9531_v6  ;;  %v9539_v24 = vpop.f32.mrb[5].mxu0  ;;  %v9541_v25 = vpop.f32.mrb[13].mxu1 }
 0x566   :  { %v3115_v57 = vrot.slane %v9539_v24, 4  ;;  %v3166_v26 = vmul.f32 %v9539_v24, %v9539_v24  ;;  %v3127_v27 = vrot.slane %v9541_v25, 4  ;;  %v3168_v28 = vmul.f32 %v9541_v25, %v9541_v25  ;;  %v2858_v29 = vpop.f32.mrb[6].mxu0  ;;  %v2940_v30 = vpop.f32.mrb[14].mxu1 }
 0x567   :  { %v3110_v32 = vadd.f32 %v3109_v19, %v9529_v31  ;;  %v3173_v34 = vrot.slane %v3165_v21, 4  ;;  %v3122_v36 = vadd.f32 %v3121_v22, %v9531_v6  ;;  %v3185_v37 = vrot.slane %v3167_v23, 4  ;;  %v2859_v38 = vpop.f32.mrb[7].mxu0  ;;  %v2941_v39 = vpop.f32.mrb[15].mxu1 }
 0x568   :  { %v3116_v40 = vadd.f32 %v3115_v57, %v9539_v24  ;;  %v3179_v41 = vrot.slane %v3166_v26, 4  ;;  %v3128_v42 = vadd.f32 %v3127_v27, %v9541_v25  ;;  %v3191_v43 = vrot.slane %v3168_v28, 4  ;;  %v8170_v27 = vld [vmem:[#allocation19 + $0x3c] ss:$28 sps:$4 sm:$0xff]  }
 0x569   :  { %v3111_v44 = vrot.slane %v3110_v32, 2  ;;  %v3174_v45 = vadd.f32 %v3173_v34, %v3165_v21  ;;  %v3123_v51 = vrot.slane %v3122_v36, 2  ;;  %v3186_v54 = vadd.f32 %v3185_v37, %v3167_v23  ;;  %v8171_v37 = vld [vmem:[#allocation19 + $0x40] ss:$28 sps:$4 sm:$0xff]   ;;  %6364 = vmatprep.subr.bf16.mxu0 %v8170_v27  ;;  %v8206_v27 = vld [vmem:[#allocation19 + $0x18c] ss:$28 sps:$4 sm:$0xff]  }
 0x56a   :  { %v3117_v55 = vrot.slane %v3116_v40, 2  ;;  %v3180_v56 = vadd.f32 %v3179_v41, %v3166_v26  ;;  %v3129_v1 = vrot.slane %v3128_v42, 2  ;;  %v3192_v2 = vadd.f32 %v3191_v43, %v3168_v28  ;;  %v8173_v28 = vld [vmem:[#allocation19 + $0x44] ss:$28 sps:$4 sm:$0xff]  }
 0x56b   :  { %v3112_v3 = vadd.f32 %v3111_v44, %v3110_v32  ;;  %v3175_v10 = vrot.slane %v3174_v45, 2  ;;  %v3124_v14 = vadd.f32 %v3123_v51, %v3122_v36  ;;  %v3187_v15 = vrot.slane %v3186_v54, 2  ;;  %v8168_v36 = vld [vmem:[#allocation19 + $0x38] ss:$28 sps:$4 sm:$0xff]   ;;  %6528 = vmatprep.subr.bf16.mxu1 %v8173_v28 }
 0x56c   :  { %v3118_v47 = vadd.f32 %v3117_v55, %v3116_v40  ;;  %v3181_v60 = vrot.slane %v3180_v56, 2  ;;  %v3130_v62 = vadd.f32 %v3129_v1, %v3128_v42  ;;  %v3193_v63 = vrot.slane %v3192_v2, 2  ;;  %6365 = vmatpush1.bf16.msra.mxu0 %v8168_v36  ;;  %6529 = vmatpush1.bf16.msra.mxu1 %v8171_v37  ;;  %v8176_v55 = vld [vmem:[#allocation19 + $0x74] ss:$28 sps:$4 sm:$0xff]   ;;  %v8212_v37 = vld [vmem:[#allocation19 + $0x1c4] ss:$28 sps:$4 sm:$0xff]  }
 0x56d   :  { %v3113_v4 = vrot.slane %v3112_v3, 1  ;;  %v3176_v5 = vadd.f32 %v3175_v10, %v3174_v45  ;;  %v3125_v20 = vrot.slane %v3124_v14, 1  ;;  %v3188_v7 = vadd.f32 %v3187_v15, %v3186_v54  ;;  %v8177_v10 = vld [vmem:[#allocation19 + $0x78] ss:$28 sps:$4 sm:$0xff]   ;;  %6366 = vmatprep.subr.bf16.mxu0 %v8176_v55 }
 0x56e   :  { %v3119_v12 = vrot.slane %v3118_v47, 1  ;;  %v3182_v13 = vadd.f32 %v3181_v60, %v3180_v56  ;;  %v3131_v16 = vrot.slane %v3130_v62, 1  ;;  %v3194_v17 = vadd.f32 %v3193_v63, %v3192_v2  ;;  %v8179_v56 = vld [vmem:[#allocation19 + $0x7c] ss:$28 sps:$4 sm:$0xff]   ;;  %v8185_v63 = vld [vmem:[#allocation19 + $0xb4] ss:$28 sps:$4 sm:$0xff]  }
 0x56f   :  { %v3114_v35 = vadd.f32 %v3113_v4, %v3112_v3  ;;  %v3177_v9 = vrot.slane %v3176_v5, 1  ;;  %v3126_v53 = vadd.f32 %v3125_v20, %v3124_v14  ;;  %v3189_v0 = vrot.slane %v3188_v7, 1  ;;  %v8174_v3 = vld [vmem:[#allocation19 + $0x70] ss:$28 sps:$4 sm:$0xff]   ;;  %6530 = vmatprep.subr.bf16.mxu1 %v8179_v56  ;;  %v8180_v4 = vld [vmem:[#allocation19 + $0xa8] ss:$28 sps:$4 sm:$0xff]  }
 0x570   :  { %v3120_v61 = vadd.f32 %v3119_v12, %v3118_v47  ;;  %v3183_v48 = vrot.slane %v3182_v13, 1  ;;  %v3132_v19 = vadd.f32 %v3131_v16, %v3130_v62  ;;  %v3195_v21 = vrot.slane %v3194_v17, 1  ;;  %6367 = vmatpush1.bf16.msra.mxu0 %v8174_v3  ;;  %6531 = vmatpush1.bf16.msra.mxu1 %v8177_v10  ;;  %v8182_v62 = vld [vmem:[#allocation19 + $0xac] ss:$28 sps:$4 sm:$0xff]   ;;  %v8188_v20 = vld [vmem:[#allocation19 + $0xe4] ss:$28 sps:$4 sm:$0xff]  }
 0x571   :  { %v9553_v22 = vmul.f32 0.125, %v3114_v35  ;;  %v3178_v23 = vadd.f32 %v3177_v9, %v3176_v5  ;;  %v9555_v57 = vmul.f32 0.125, %v3126_v53  ;;  %v3190_v26 = vadd.f32 %v3189_v0, %v3188_v7  ;;  %v8183_v5 = vld [vmem:[#allocation19 + $0xb0] ss:$28 sps:$4 sm:$0xff]   ;;  %6368 = vmatprep.subr.bf16.mxu0 %v8182_v62  ;;  %6532 = vmatprep.subr.bf16.mxu1 %v8185_v63  ;;  %v8194_v12 = vld [vmem:[#allocation19 + $0x11c] ss:$28 sps:$4 sm:$0xff]  }
 0x572   :  { %v9557_v29 = vmul.f32 0.125, %v3120_v61  ;;  %v3184_v30 = vadd.f32 %v3183_v48, %v3182_v13  ;;  %v9559_v32 = vmul.f32 0.125, %v3132_v19  ;;  %v3196_v34 = vadd.f32 %v3195_v21, %v3194_v17  ;;  %v8191_v7 = vld [vmem:[#allocation19 + $0xec] ss:$28 sps:$4 sm:$0xff]   ;;  %v8197_v13 = vld [vmem:[#allocation19 + $0x124] ss:$28 sps:$4 sm:$0xff]  }
 0x573   :  { %v3221_v38 = vmul.f32 0.125, %v3178_v23  ;;  %v3229_v39 = vmul.f32 %v9553_v22, %v9553_v22  ;;  %v3223_v40 = vmul.f32 0.125, %v3190_v26  ;;  %v3231_v41 = vmul.f32 %v9555_v57, %v9555_v57  ;;  %v8192_v16 = vld [vmem:[#allocation19 + $0x118] ss:$28 sps:$4 sm:$0xff]   ;;  %v8195_v17 = vld [vmem:[#allocation19 + $0x120] ss:$28 sps:$4 sm:$0xff]  }
 0x574   :  { %v3222_v42 = vmul.f32 0.125, %v3184_v30  ;;  %v3230_v43 = vmul.f32 %v9557_v29, %v9557_v29  ;;  %v3224_v44 = vmul.f32 0.125, %v3196_v34  ;;  %v3232_v45 = vmul.f32 %v9559_v32, %v9559_v32  ;;  %6369 = vmatpush1.bf16.msra.mxu0 %v8180_v4  ;;  %6533 = vmatpush1.bf16.msra.mxu1 %v8183_v5  ;;  %v8200_v9 = vld [vmem:[#allocation19 + $0x154] ss:$28 sps:$4 sm:$0xff]   ;;  %v8203_v53 = vld [vmem:[#allocation19 + $0x15c] ss:$28 sps:$4 sm:$0xff]  }
 0x575   :  { %v3237_v51 = vsub.f32 %v3221_v38, %v3229_v39  ;;  %v3239_v54 = vsub.f32 %v3223_v40, %v3231_v41  ;;  %6370 = vmatprep.subr.bf16.mxu0 %v8188_v20  ;;  %6534 = vmatprep.subr.bf16.mxu1 %v8191_v7  ;;  %v8198_v48 = vld [vmem:[#allocation19 + $0x150] ss:$28 sps:$4 sm:$0xff]   ;;  %v8201_v19 = vld [vmem:[#allocation19 + $0x158] ss:$28 sps:$4 sm:$0xff]   ;;  %v8204_v30 = vld [vmem:[#allocation19 + $0x188] ss:$28 sps:$4 sm:$0xff]  }
 0x576   :  { %v3238_v1 = vsub.f32 %v3222_v42, %v3230_v43  ;;  %v3240_v2 = vsub.f32 %v3224_v44, %v3232_v45  ;;  %v8209_v28 = vld [vmem:[#allocation19 + $0x194] ss:$28 sps:$4 sm:$0xff]   ;;  %v8215_v38 = vld [vmem:[#allocation19 + $0x1cc] ss:$28 sps:$4 sm:$0xff]   ;;  %v8210_v39 = vld [vmem:[#allocation19 + $0x1c0] ss:$28 sps:$4 sm:$0xff]  }
 0x577   :  { %v3245_v14 = vadd.f32 0.8, %v3237_v51  ;;  %v3247_v15 = vadd.f32 0.8, %v3239_v54  ;;  %v8207_v34 = vld [vmem:[#allocation19 + $0x190] ss:$28 sps:$4 sm:$0xff]  }
 0x578   :  { %v3246_v47 = vadd.f32 0.8, %v3238_v1  ;;  %v3248_v60 = vadd.f32 0.8, %v3240_v2  ;;  %6371 = vmatpush1.bf16.msra.mxu0 %v8186_v8  ;;  %6535 = vmatpush1.bf16.msra.mxu1 %v8189_v11  ;;  %v8213_v40 = vld [vmem:[#allocation19 + $0x1c8] ss:$28 sps:$4 sm:$0xff]  }
 0x579   :  { %8814 = vrsqrt.f32 %v3245_v14  ;;  %6372 = vmatprep.subr.bf16.mxu0 %v8194_v12  ;;  %6536 = vmatprep.subr.bf16.mxu1 %v8197_v13  ;;  %v8218_v41 = vld [vmem:[#allocation19 + $0x1fc] ss:$28 sps:$4 sm:$0xff]   ;;  %v8221_v42 = vld [vmem:[#allocation19 + $0x204] ss:$28 sps:$4 sm:$0xff]   ;;  %v8224_v45 = vld [vmem:[#allocation19 + $0x234] ss:$28 sps:$4 sm:$0xff]  }
 0x57a   :  { %8816 = vrsqrt.f32 %v3247_v15  ;;  %v8216_v43 = vld [vmem:[#allocation19 + $0x1f8] ss:$28 sps:$4 sm:$0xff]   ;;  %v8219_v44 = vld [vmem:[#allocation19 + $0x200] ss:$28 sps:$4 sm:$0xff]   ;;  %v8222_v54 = vld [vmem:[#allocation19 + $0x230] ss:$28 sps:$4 sm:$0xff]  }
 0x57b   :  { %8818 = vrsqrt.f32 %v3246_v47  ;;  %v8227_v51 = vld [vmem:[#allocation19 + $0x23c] ss:$28 sps:$4 sm:$0xff]   ;;  %v8230_v56 = vld [vmem:[#allocation19 + $0x26c] ss:$28 sps:$4 sm:$0xff]   ;;  %v8233_v1 = vld [vmem:[#allocation19 + $0x274] ss:$28 sps:$4 sm:$0xff]  }
 0x57c   :  { %8820 = vrsqrt.f32 %v3248_v60  ;;  %6373 = vmatpush1.bf16.msra.mxu0 %v8192_v16  ;;  %6537 = vmatpush1.bf16.msra.mxu1 %v8195_v17  ;;  %v8225_v55 = vld [vmem:[#allocation19 + $0x238] ss:$28 sps:$4 sm:$0xff]   ;;  %v8228_v2 = vld [vmem:[#allocation19 + $0x268] ss:$28 sps:$4 sm:$0xff]   ;;  %v8231_v3 = vld [vmem:[#allocation19 + $0x270] ss:$28 sps:$4 sm:$0xff]  }
 0x57d   :  { %6374 = vmatprep.subr.bf16.mxu0 %v8200_v9  ;;  %6538 = vmatprep.subr.bf16.mxu1 %v8203_v53  ;;  %v8236_v10 = vld [vmem:[#allocation19 + $0x2a4] ss:$28 sps:$4 sm:$0xff]   ;;  %v8239_v14 = vld [vmem:[#allocation19 + $0x2ac] ss:$28 sps:$4 sm:$0xff]   ;;  %v8242_v60 = vld [vmem:[#allocation19 + $0x2dc] ss:$28 sps:$4 sm:$0xff]  }
 0x57e   :  { %v8234_v15 = vld [vmem:[#allocation19 + $0x2a0] ss:$28 sps:$4 sm:$0xff]   ;;  %v8237_v47 = vld [vmem:[#allocation19 + $0x2a8] ss:$28 sps:$4 sm:$0xff]   ;;  %v8240_v63 = vld [vmem:[#allocation19 + $0x2d8] ss:$28 sps:$4 sm:$0xff]  }
 0x57f   :  { %v8245_v62 = vld [vmem:[#allocation19 + $0x2e4] ss:$28 sps:$4 sm:$0xff]   ;;  %v8248_v5 = vld [vmem:[#allocation19 + $0x314] ss:$28 sps:$4 sm:$0xff]   ;;  %v8251_v20 = vld [vmem:[#allocation19 + $0x31c] ss:$28 sps:$4 sm:$0xff]  }
 0x580   :  { %6375 = vmatpush1.bf16.msra.mxu0 %v8198_v48  ;;  %6539 = vmatpush1.bf16.msra.mxu1 %v8201_v19  ;;  %v8243_v4 = vld [vmem:[#allocation19 + $0x2e0] ss:$28 sps:$4 sm:$0xff]   ;;  %v8246_v7 = vld [vmem:[#allocation19 + $0x310] ss:$28 sps:$4 sm:$0xff]   ;;  %v8249_v8 = vld [vmem:[#allocation19 + $0x318] ss:$28 sps:$4 sm:$0xff]  }
 0x581   :  { %6376 = vmatprep.subr.bf16.mxu0 %v8206_v27  ;;  %6540 = vmatprep.subr.bf16.mxu1 %v8209_v28  ;;  %v8252_v11 = vld [vmem:[#allocation19 + $0x348] ss:$28 sps:$4 sm:$0xff]   ;;  %v8255_v13 = vld [vmem:[#allocation19 + $0x350] ss:$28 sps:$4 sm:$0xff]  }
 0x582   :  { %v8254_v12 = vld [vmem:[#allocation19 + $0x34c] ss:$28 sps:$4 sm:$0xff]   ;;  %v8257_v16 = vld [vmem:[#allocation19 + $0x354] ss:$28 sps:$4 sm:$0xff]   ;;  %v8260_v17 = vld [vmem:[#allocation19 + $0x384] ss:$28 sps:$4 sm:$0xff]  }
 0x583   :  { %v8815_v18 = vpop.eup %8814 }
 0x584   :  { %v8817_v33 = vpop.eup %8816  ;;  %6377 = vmatpush1.bf16.msra.mxu0 %v8204_v30  ;;  %6541 = vmatpush1.bf16.msra.mxu1 %v8207_v34 }
 0x585   :  { %v8819_v35 = vpop.eup %8818  ;;  %6378 = vmatprep.subr.bf16.mxu0 %v8212_v37  ;;  %6542 = vmatprep.subr.bf16.mxu1 %v8215_v38 }
 0x586   :  { %v8821_v0 = vpop.eup %8820  ;;  %v3269_v61 = vcombine.low %v8815_v18, %v8819_v35  ;;  %v8263_v18 = vld [vmem:[#allocation19 + $0x38c] ss:$28 sps:$4 sm:$0xff]  }
 0x587   :  { %v3270_v21 = vcombine.low %v8817_v33, %v8821_v0 }
 0x588   :  { %v9570_v23 = vrot.slane %v3269_v61, %v9408_v52  ;;  %6379 = vmatpush1.bf16.msra.mxu0 %v8210_v39  ;;  %6543 = vmatpush1.bf16.msra.mxu1 %v8213_v40 }
 0x589   :  { %v9573_v26 = vrot.slane %v3270_v21, %v9408_v52  ;;  %6380 = vmatprep.subr.bf16.mxu0 %v8218_v41  ;;  %6544 = vmatprep.subr.bf16.mxu1 %v8221_v42 }
 0x58b   :  { %v3301_v36 = vcombine.low %v9570_v23, %v9573_v26 }
 0x58c   :  { %6381 = vmatpush1.bf16.msra.mxu0 %v8216_v43  ;;  %6545 = vmatpush1.bf16.msra.mxu1 %v8219_v44 }
 0x58d   :  { %6382 = vmatprep.subr.bf16.mxu0 %v8224_v45  ;;  %6546 = vmatprep.subr.bf16.mxu1 %v8227_v51 }
 0x590   :  { %6383 = vmatpush1.bf16.msra.mxu0 %v8222_v54  ;;  %6547 = vmatpush1.bf16.msra.mxu1 %v8225_v55 }
 0x591   :  { %6384 = vmatprep.subr.bf16.mxu0 %v8230_v56  ;;  %6548 = vmatprep.subr.bf16.mxu1 %v8233_v1 }
 0x594   :  { %6385 = vmatpush1.bf16.msra.mxu0 %v8228_v2  ;;  %6549 = vmatpush1.bf16.msra.mxu1 %v8231_v3 }
 0x595   :  { %6386 = vmatprep.subr.bf16.mxu0 %v8236_v10  ;;  %6550 = vmatprep.subr.bf16.mxu1 %v8239_v14 }
 0x598   :  { %6387 = vmatpush1.bf16.msra.mxu0 %v8234_v15  ;;  %6551 = vmatpush1.bf16.msra.mxu1 %v8237_v47 }
 0x599   :  { %6388 = vmatprep.subr.bf16.mxu0 %v8242_v60  ;;  %6552 = vmatprep.subr.bf16.mxu1 %v8245_v62 }
 0x59c   :  { %6389 = vmatpush1.bf16.msra.mxu0 %v8240_v63  ;;  %6553 = vmatpush1.bf16.msra.mxu1 %v8243_v4 }
 0x59d   :  { %6390 = vmatprep.subr.bf16.mxu0 %v8248_v5  ;;  %6554 = vmatprep.subr.bf16.mxu1 %v8251_v20 }
 0x5a0   :  { %6391 = vmatpush1.bf16.msra.mxu0 %v8246_v7  ;;  %6555 = vmatpush1.bf16.msra.mxu1 %v8249_v8 }
 0x5a1   :  { %6392 = vmatprep.subr.bf16.mxu0 %v8254_v12  ;;  %6556 = vmatprep.subr.bf16.mxu1 %v8257_v16 }
 0x5a4   :  { %6393 = vmatpush1.bf16.msra.mxu0 %v8252_v11  ;;  %6557 = vmatpush1.bf16.msra.mxu1 %v8255_v13 }
 0x5a5   :  { %6403 = vmatprep.subr.bf16.mxu0 %v8260_v17  ;;  %6567 = vmatprep.subr.bf16.mxu1 %v8263_v18 }
 0x5e4   :  { %v9577_v33 = vpop.f32.mrb[8].mxu0 }
 0x5e5   :  { %v3133_v35 = vrot.slane %v9577_v33, 4  ;;  %v3169_v9 = vmul.f32 %v9577_v33, %v9577_v33  ;;  %v9582_v53 = vpop.f32.mrb[16].mxu1  ;;  %v9584_v0 = vpop.f32.mrb[9].mxu0 }
 0x5e6   :  { %v3145_v61 = vrot.slane %v9582_v53, 4  ;;  %v3171_v48 = vmul.f32 %v9582_v53, %v9582_v53  ;;  %v3139_v19 = vrot.slane %v9584_v0, 4  ;;  %v3170_v21 = vmul.f32 %v9584_v0, %v9584_v0  ;;  %v9592_v27 = vpop.f32.mrb[17].mxu1  ;;  %v3022_v28 = vpop.f32.mrb[10].mxu0 }
 0x5e7   :  { %v3134_v30 = vadd.f32 %v3133_v35, %v9577_v33  ;;  %v3197_v34 = vrot.slane %v3169_v9, 4  ;;  %v3151_v37 = vrot.slane %v9592_v27, 4  ;;  %v3172_v38 = vmul.f32 %v9592_v27, %v9592_v27  ;;  %v3104_v39 = vpop.f32.mrb[18].mxu1  ;;  %v3023_v40 = vpop.f32.mrb[11].mxu0 }
 0x5e8   :  { %v3146_v41 = vadd.f32 %v3145_v61, %v9582_v53  ;;  %v3209_v42 = vrot.slane %v3171_v48, 4  ;;  %v3140_v43 = vadd.f32 %v3139_v19, %v9584_v0  ;;  %v3203_v44 = vrot.slane %v3170_v21, 4  ;;  %v3105_v45 = vpop.f32.mrb[19].mxu1 }
 0x5e9   :  { %v3135_v51 = vrot.slane %v3134_v30, 2  ;;  %v3198_v54 = vadd.f32 %v3197_v34, %v3169_v9  ;;  %v3152_v55 = vadd.f32 %v3151_v37, %v9592_v27  ;;  %v3215_v56 = vrot.slane %v3172_v38, 4 }
 0x5ea   :  { %v3147_v1 = vrot.slane %v3146_v41, 2  ;;  %v3210_v2 = vadd.f32 %v3209_v42, %v3171_v48  ;;  %v3141_v3 = vrot.slane %v3140_v43, 2  ;;  %v3204_v10 = vadd.f32 %v3203_v44, %v3170_v21 }
 0x5eb   :  { %v3136_v14 = vadd.f32 %v3135_v51, %v3134_v30  ;;  %v3199_v15 = vrot.slane %v3198_v54, 2  ;;  %v3153_v47 = vrot.slane %v3152_v55, 2  ;;  %v3216_v60 = vadd.f32 %v3215_v56, %v3172_v38 }
 0x5ec   :  { %v3148_v62 = vadd.f32 %v3147_v1, %v3146_v41  ;;  %v3211_v63 = vrot.slane %v3210_v2, 2  ;;  %v3142_v4 = vadd.f32 %v3141_v3, %v3140_v43  ;;  %v3205_v5 = vrot.slane %v3204_v10, 2 }
 0x5ed   :  { %v3137_v20 = vrot.slane %v3136_v14, 1  ;;  %v3200_v7 = vadd.f32 %v3199_v15, %v3198_v54  ;;  %v3154_v8 = vadd.f32 %v3153_v47, %v3152_v55  ;;  %v3217_v11 = vrot.slane %v3216_v60, 2 }
 0x5ee   :  { %v3149_v12 = vrot.slane %v3148_v62, 1  ;;  %v3212_v13 = vadd.f32 %v3211_v63, %v3210_v2  ;;  %v3143_v16 = vrot.slane %v3142_v4, 1  ;;  %v3206_v17 = vadd.f32 %v3205_v5, %v3204_v10 }
 0x5ef   :  { %v3138_v18 = vadd.f32 %v3137_v20, %v3136_v14  ;;  %v3201_v35 = vrot.slane %v3200_v7, 1  ;;  %v3155_v9 = vrot.slane %v3154_v8, 1  ;;  %v3218_v61 = vadd.f32 %v3217_v11, %v3216_v60 }
 0x5f0   :  { %v3150_v48 = vadd.f32 %v3149_v12, %v3148_v62  ;;  %v3213_v19 = vrot.slane %v3212_v13, 1  ;;  %v3144_v21 = vadd.f32 %v3143_v16, %v3142_v4  ;;  %v3207_v28 = vrot.slane %v3206_v17, 1 }
 0x5f1   :  { %v3161_v30 = vmul.f32 0.125, %v3138_v18  ;;  %v3202_v34 = vadd.f32 %v3201_v35, %v3200_v7  ;;  %v3156_v37 = vadd.f32 %v3155_v9, %v3154_v8  ;;  %v3219_v38 = vrot.slane %v3218_v61, 1  ;;  %v3107_v9 = vld [vmem:[#allocation16] sm:$0xff] }
 0x5f2   :  { %v3163_v39 = vmul.f32 0.125, %v3150_v48  ;;  %v3214_v40 = vadd.f32 %v3213_v19, %v3212_v13  ;;  %v3162_v41 = vmul.f32 0.125, %v3144_v21  ;;  %v3208_v42 = vadd.f32 %v3207_v28, %v3206_v17 }
 0x5f3   :  { %v3225_v43 = vmul.f32 0.125, %v3202_v34  ;;  %v3233_v44 = vmul.f32 %v3161_v30, %v3161_v30  ;;  %v3164_v45 = vmul.f32 0.125, %v3156_v37  ;;  %v3220_v51 = vadd.f32 %v3219_v38, %v3218_v61 }
 0x5f4   :  { %v3227_v54 = vmul.f32 0.125, %v3214_v40  ;;  %v3235_v55 = vmul.f32 %v3163_v39, %v3163_v39  ;;  %v3226_v56 = vmul.f32 0.125, %v3208_v42  ;;  %v3234_v1 = vmul.f32 %v3162_v41, %v3162_v41 }
 0x5f5   :  { %v3241_v2 = vsub.f32 %v3225_v43, %v3233_v44  ;;  %v3228_v3 = vmul.f32 0.125, %v3220_v51  ;;  %v3236_v10 = vmul.f32 %v3164_v45, %v3164_v45  ;;  %v3309_v18 = vrot.slane %v3301_v36, %v9408_v52 }
 0x5f6   :  { %v3243_v14 = vsub.f32 %v3227_v54, %v3235_v55  ;;  %v3242_v15 = vsub.f32 %v3226_v56, %v3234_v1  ;;  %v9609_v48 = vsub.s32 4, %v9405_v50  ;;  %v9612_v19 = vsub.s32 5, %v9405_v50 }
 0x5f7   :  { %v3249_v47 = vadd.f32 0.8, %v3241_v2  ;;  %v3244_v60 = vsub.f32 %v3228_v3, %v3236_v10  ;;  %v9615_v21 = vsub.s32 6, %v9405_v50  ;;  %v3351_v28 = vsub.s32 7, %v9405_v50 }
 0x5f8   :  { %v3251_v62 = vadd.f32 0.8, %v3243_v14  ;;  %v3250_v63 = vadd.f32 0.8, %v3242_v15 }
 0x5f9   :  { %8822 = vrsqrt.f32 %v3249_v47  ;;  %v3252_v4 = vadd.f32 0.8, %v3244_v60 }
 0x5fa   :  { %8824 = vrsqrt.f32 %v3251_v62 }
 0x5fb   :  { %8826 = vrsqrt.f32 %v3250_v63 }
 0x5fc   :  { %8828 = vrsqrt.f32 %v3252_v4  ;;  %v3108_v4 = vld [vmem:[#allocation18] sm:$0xff] }
 0x603   :  { %v8823_v5 = vpop.eup %8822 }
 0x604   :  { %v8825_v20 = vpop.eup %8824 }
 0x605   :  { %v8827_v7 = vpop.eup %8826 }
 0x606   :  { %v8829_v8 = vpop.eup %8828  ;;  %v3271_v11 = vcombine.low %v8823_v5, %v8827_v7 }
 0x607   :  { %v3272_v12 = vcombine.low %v8825_v20, %v8829_v8 }
 0x608   :  { %v3293_v13 = vrot.slane %v3271_v11, %v9408_v52 }
 0x609   :  { %v3300_v16 = vrot.slane %v3272_v12, %v9408_v52 }
 0x60b   :  { %v3302_v17 = vcombine.low %v3293_v13, %v3300_v16 }
 0x60d   :  { %v3316_v35 = vrot.slane %v3302_v17, %v9408_v52 }
 0x60f   :  { %v3317_v61 = vcombine.low %v3309_v18, %v3316_v35 }
 0x611   :  { %v3319_v34 = vmul.f32 %v3317_v61, %v3107_v9 }
 0x613   :  { %v3324_v37 = vrot.slane %v3319_v34, %v9413_v58  ;;  %v3328_v23 = vrot.slane %v3319_v34, %v9416_v59  ;;  %v3332_v26 = vrot.slane %v3319_v34, %v9474_v46  ;;  %v3336_v36 = vrot.slane %v3319_v34, %v9477_v49 }
 0x614   :  { %v3340_v38 = vrot.slane %v3319_v34, %v9609_v48  ;;  %v3344_v40 = vrot.slane %v3319_v34, %v9612_v19  ;;  %v3348_v42 = vrot.slane %v3319_v34, %v9615_v21  ;;  %v3352_v43 = vrot.slane %v3319_v34, %v3351_v28 }
 0x615   :  { %v3361_v44 = vmul.f32 %v3324_v37, %v9553_v22  ;;  %v3362_v50 = vmul.f32 %v3328_v23, %v9557_v29  ;;  %v3363_v51 = vmul.f32 %v3332_v26, %v9555_v57  ;;  %v3364_v54 = vmul.f32 %v3336_v36, %v9559_v32 }
 0x616   :  { %v3365_v55 = vmul.f32 %v3340_v38, %v3161_v30  ;;  %v3366_v56 = vmul.f32 %v3344_v40, %v3162_v41  ;;  %v3367_v1 = vmul.f32 %v3348_v42, %v3163_v39  ;;  %v3368_v2 = vmul.f32 %v3352_v43, %v3164_v45 }
 0x617   :  { %v3377_v3 = vcombine.low %v3361_v44, %v3362_v50  ;;  %v3378_v10 = vcombine.low %v3363_v51, %v3364_v54  ;;  %v3435_v14 = vmul.f32 %v3352_v43, %v9592_v27  ;;  %v3429_v15 = vmul.f32 %v3328_v23, %v9539_v24  ;;  %v8266_v44 = vld [vmem:[#allocation19 + $0x3bc] ss:$28 sps:$4 sm:$0xff]   ;;  %v8269_v50 = vld [vmem:[#allocation19 + $0x3c4] ss:$28 sps:$4 sm:$0xff]  }
 0x618   :  { %v3379_v47 = vcombine.low %v3365_v55, %v3366_v56  ;;  %v3380_v60 = vcombine.low %v3367_v1, %v3368_v2  ;;  %v3428_v22 = vmul.f32 %v3324_v37, %v9529_v31  ;;  %v3431_v29 = vmul.f32 %v3336_v36, %v9541_v25  ;;  %v8264_v54 = vld [vmem:[#allocation19 + $0x3b8] ss:$28 sps:$4 sm:$0xff]   ;;  %v8267_v55 = vld [vmem:[#allocation19 + $0x3c0] ss:$28 sps:$4 sm:$0xff]   ;;  %v8270_v2 = vld [vmem:[#allocation19 + $0x3f0] ss:$28 sps:$4 sm:$0xff]  }
 0x619   :  { %v3387_v57 = vrot.slane %v3377_v3, %v9408_v52  ;;  %v3394_v32 = vrot.slane %v3378_v10, %v9408_v52  ;;  %v3430_v30 = vmul.f32 %v3332_v26, %v9531_v6  ;;  %v3433_v39 = vmul.f32 %v3344_v40, %v9584_v0  ;;  %v8258_v40 = vld [vmem:[#allocation19 + $0x380] ss:$28 sps:$4 sm:$0xff]   ;;  %v8272_v56 = vld [vmem:[#allocation19 + $0x3f4] ss:$28 sps:$4 sm:$0xff]   ;;  %v8278_v10 = vld [vmem:[#allocation19 + $0x42c] ss:$28 sps:$4 sm:$0xff]  }
 0x61a   :  { %v3401_v41 = vrot.slane %v3379_v47, %v9408_v52  ;;  %v3408_v27 = vrot.slane %v3380_v60, %v9408_v52  ;;  %v3432_v24 = vmul.f32 %v3340_v38, %v9577_v33  ;;  %v3434_v45 = vmul.f32 %v3348_v42, %v9582_v53  ;;  %v8261_v42 = vld [vmem:[#allocation19 + $0x388] ss:$28 sps:$4 sm:$0xff]   ;;  %v8275_v1 = vld [vmem:[#allocation19 + $0x3fc] ss:$28 sps:$4 sm:$0xff]   ;;  %v8279_v47 = vld [vmem:[#allocation19 + $0x430] ss:$28 sps:$4 sm:$0xff]  }
 0x61b   :  { %v3409_v62 = vcombine.low %v3387_v57, %v3394_v32  ;;  %v8273_v3 = vld [vmem:[#allocation19 + $0x3f8] ss:$28 sps:$4 sm:$0xff]   ;;  %v8284_v60 = vld [vmem:[#allocation19 + $0x464] ss:$28 sps:$4 sm:$0xff]  }
 0x61c   :  { %v3410_v31 = vcombine.low %v3401_v41, %v3408_v27  ;;  %v8285_v57 = vld [vmem:[#allocation19 + $0x468] ss:$28 sps:$4 sm:$0xff]   ;;  %v8290_v32 = vld [vmem:[#allocation19 + $0x49c] ss:$28 sps:$4 sm:$0xff]   ;;  %v8296_v27 = vld [vmem:[#allocation19 + $0x4d4] ss:$28 sps:$4 sm:$0xff]  }
 0x61d   :  { %v3417_v25 = vrot.slane %v3409_v62, %v9408_v52  ;;  %v8291_v41 = vld [vmem:[#allocation19 + $0x4a0] ss:$28 sps:$4 sm:$0xff]   ;;  %v8297_v62 = vld [vmem:[#allocation19 + $0x4d8] ss:$28 sps:$4 sm:$0xff]  }
 0x61e   :  { %v3424_v63 = vrot.slane %v3410_v31, %v9408_v52  ;;  %v8302_v31 = vld [vmem:[#allocation19 + $0x50c] ss:$28 sps:$4 sm:$0xff]  }
 0x620   :  { %v3425_v5 = vcombine.low %v3417_v25, %v3424_v63  ;;  %v8305_v25 = vld [vmem:[#allocation19 + $0x514] ss:$28 sps:$4 sm:$0xff]   ;;  %v8300_v63 = vld [vmem:[#allocation19 + $0x508] ss:$28 sps:$4 sm:$0xff]  }
 0x622   :  { %v3427_v20 = vsub.f32 %v3108_v4, %v3425_v5  ;;  %v8303_v4 = vld [vmem:[#allocation19 + $0x510] ss:$28 sps:$4 sm:$0xff]   ;;  %v8308_v5 = vld [vmem:[#allocation19 + $0x544] ss:$28 sps:$4 sm:$0xff]  }
 0x624   :  { %v3468_v6 = vrot.slane %v3427_v20, %v3351_v28  ;;  %v3444_v0 = vrot.slane %v3427_v20, %v9416_v59  ;;  %v3440_v7 = vrot.slane %v3427_v20, %v9413_v58  ;;  %v3452_v8 = vrot.slane %v3427_v20, %v9477_v49 }
 0x625   :  { %v3448_v33 = vrot.slane %v3427_v20, %v9474_v46  ;;  %v3460_v53 = vrot.slane %v3427_v20, %v9612_v19  ;;  %v3456_v11 = vrot.slane %v3427_v20, %v9609_v48  ;;  %v3464_v12 = vrot.slane %v3427_v20, %v9615_v21  ;;  %v8311_v20 = vld [vmem:[#allocation19 + $0x54c] ss:$28 sps:$4 sm:$0xff]  }
 0x626   :  { %v9650_v13 = vadd.f32 %v3468_v6, %v3435_v14  ;;  %v3478_v52 = vadd.f32 %v3444_v0, %v3429_v15  ;;  %v3477_v16 = vadd.f32 %v3440_v7, %v3428_v22  ;;  %v3480_v17 = vadd.f32 %v3452_v8, %v3431_v29  ;;  %v8281_v14 = vld [vmem:[#allocation19 + $0x434] ss:$28 sps:$4 sm:$0xff]   ;;  %v8276_v15 = vld [vmem:[#allocation19 + $0x428] ss:$28 sps:$4 sm:$0xff]   ;;  %v8282_v29 = vld [vmem:[#allocation19 + $0x460] ss:$28 sps:$4 sm:$0xff]  }
 0x627   :  { %v9652_v18 = vadd.f32 %v3448_v33, %v3430_v30  ;;  %v9654_v35 = vadd.f32 %v3460_v53, %v3433_v39  ;;  %v9656_v9 = vadd.f32 %v3456_v11, %v3432_v24  ;;  %v9658_v61 = vadd.f32 %v3464_v12, %v3434_v45  ;;  %v8287_v22 = vld [vmem:[#allocation19 + $0x46c] ss:$28 sps:$4 sm:$0xff]   ;;  %v8293_v30 = vld [vmem:[#allocation19 + $0x4a4] ss:$28 sps:$4 sm:$0xff]   ;;  %v8288_v39 = vld [vmem:[#allocation19 + $0x498] ss:$28 sps:$4 sm:$0xff]  }
 0x628   :  { %v3486_v28 = vmul.f32 0.2, %v3478_v52  ;;  %v3485_v34 = vmul.f32 0.2, %v3477_v16  ;;  %v3488_v37 = vmul.f32 0.2, %v3480_v17 }
 0x629   :  { %v8299_v24 = vld [vmem:[#allocation19 + $0x4dc] ss:$28 sps:$4 sm:$0xff]   ;;  %v8294_v45 = vld [vmem:[#allocation19 + $0x4d0] ss:$28 sps:$4 sm:$0xff]   ;;  %v8309_v0 = vld [vmem:[#allocation19 + $0x548] ss:$28 sps:$4 sm:$0xff]  }
 0x62a   :  { %v3494_v23 = vmax.f32 %v3478_v52, %v3486_v28  ;;  %v3493_v26 = vmax.f32 %v3477_v16, %v3485_v34  ;;  %v3496_v36 = vmax.f32 %v3480_v17, %v3488_v37  ;;  %v8306_v6 = vld [vmem:[#allocation19 + $0x540] ss:$28 sps:$4 sm:$0xff]   ;;  %v8312_v33 = vld [vmem:[#allocation19 + $0x578] ss:$28 sps:$4 sm:$0xff]   ;;  %v8318_v52 = vld [vmem:[#allocation19 + $0x5b0] ss:$28 sps:$4 sm:$0xff]  }
 0x62b   :  { %v8314_v7 = vld [vmem:[#allocation19 + $0x57c] ss:$28 sps:$4 sm:$0xff]   ;;  %v8317_v8 = vld [vmem:[#allocation19 + $0x584] ss:$28 sps:$4 sm:$0xff]   ;;  %v8320_v11 = vld [vmem:[#allocation19 + $0x5b4] ss:$28 sps:$4 sm:$0xff]  }
 0x62c   :  { %v9660_v38 = vpack.c.bf16 %v3494_v23, %v3494_v23  ;;  %v9662_v43 = vpack.c.bf16 %v3493_v26, %v3493_v26  ;;  %v9668_v51 = vpack.c.bf16 %v3496_v36, %v3496_v36  ;;  %v8315_v53 = vld [vmem:[#allocation19 + $0x580] ss:$28 sps:$4 sm:$0xff]   ;;  %v8321_v16 = vld [vmem:[#allocation19 + $0x5b8] ss:$28 sps:$4 sm:$0xff]   ;;  %v8326_v17 = vld [vmem:[#allocation19 + $0x5ec] ss:$28 sps:$4 sm:$0xff]  }
 0x62d   :  { %v8323_v12 = vld [vmem:[#allocation19 + $0x5bc] ss:$28 sps:$4 sm:$0xff]   ;;  %v8329_v28 = vld [vmem:[#allocation19 + $0x5f4] ss:$28 sps:$4 sm:$0xff]   ;;  %v8324_v34 = vld [vmem:[#allocation19 + $0x5e8] ss:$28 sps:$4 sm:$0xff]  }
 0x62e   :  { %6394 = vmatprep.mubr.bf16.mxu0 %v9660_v38  ;;  %6558 = vmatprep.mubr.bf16.mxu1 %v9660_v38  ;;  %v8327_v37 = vld [vmem:[#allocation19 + $0x5f0] ss:$28 sps:$4 sm:$0xff]   ;;  %v8332_v23 = vld [vmem:[#allocation19 + $0x624] ss:$28 sps:$4 sm:$0xff]  }
 0x62f   :  { %6395 = vmatmul.mubr.bf16.vlgmr.msra.gmra.mrb[12].mxu0 %v9662_v43  ;;  %6559 = vmatmul.mubr.bf16.vlgmr.msra.gmra.mrb[20].mxu1 %v9662_v43  ;;  %v8335_v26 = vld [vmem:[#allocation19 + $0x62c] ss:$28 sps:$4 sm:$0xff]   ;;  %v8330_v36 = vld [vmem:[#allocation19 + $0x620] ss:$28 sps:$4 sm:$0xff]  }
 0x630   :  { %6404 = vmatpush1.bf16.msra.mxu0 %v8258_v40  ;;  %6568 = vmatpush1.bf16.msra.mxu1 %v8261_v42  ;;  %v8333_v40 = vld [vmem:[#allocation19 + $0x628] ss:$28 sps:$4 sm:$0xff]   ;;  %v8338_v42 = vld [vmem:[#allocation19 + $0x65c] ss:$28 sps:$4 sm:$0xff]  }
 0x631   :  { %6435 = vmatprep.mubr.bf16.mxu0 %v9668_v51  ;;  %6599 = vmatprep.mubr.bf16.mxu1 %v9668_v51 }
 0x632   :  { %6405 = vmatprep.subr.bf16.mxu0 %v8266_v44  ;;  %6569 = vmatprep.subr.bf16.mxu1 %v8269_v50  ;;  %v8341_v44 = vld [vmem:[#allocation19 + $0x664] ss:$28 sps:$4 sm:$0xff]   ;;  %v8336_v50 = vld [vmem:[#allocation19 + $0x658] ss:$28 sps:$4 sm:$0xff]  }
 0x634   :  { %6406 = vmatpush1.bf16.msra.mxu0 %v8264_v54  ;;  %6570 = vmatpush1.bf16.msra.mxu1 %v8267_v55  ;;  %v8339_v54 = vld [vmem:[#allocation19 + $0x660] ss:$28 sps:$4 sm:$0xff]   ;;  %v8344_v55 = vld [vmem:[#allocation19 + $0x694] ss:$28 sps:$4 sm:$0xff]  }
 0x635   :  { %6407 = vmatprep.subr.bf16.mxu0 %v8272_v56  ;;  %6571 = vmatprep.subr.bf16.mxu1 %v8275_v1  ;;  %v8347_v56 = vld [vmem:[#allocation19 + $0x69c] ss:$28 sps:$4 sm:$0xff]   ;;  %v8342_v1 = vld [vmem:[#allocation19 + $0x690] ss:$28 sps:$4 sm:$0xff]  }
 0x638   :  { %6408 = vmatpush1.bf16.msra.mxu0 %v8270_v2  ;;  %6572 = vmatpush1.bf16.msra.mxu1 %v8273_v3  ;;  %v8345_v2 = vld [vmem:[#allocation19 + $0x698] ss:$28 sps:$4 sm:$0xff]   ;;  %v8350_v3 = vld [vmem:[#allocation19 + $0x6cc] ss:$28 sps:$4 sm:$0xff]  }
 0x639   :  { %6409 = vmatprep.subr.bf16.mxu0 %v8278_v10  ;;  %6573 = vmatprep.subr.bf16.mxu1 %v8281_v14  ;;  %v8353_v10 = vld [vmem:[#allocation19 + $0x6d4] ss:$28 sps:$4 sm:$0xff]   ;;  %v3487_v14 = vmul.f32 0.2, %v9652_v18 }
 0x63c   :  { %6410 = vmatpush1.bf16.msra.mxu0 %v8276_v15  ;;  %6574 = vmatpush1.bf16.msra.mxu1 %v8279_v47  ;;  %v3490_v15 = vmul.f32 0.2, %v9654_v35  ;;  %v8348_v47 = vld [vmem:[#allocation19 + $0x6c8] ss:$28 sps:$4 sm:$0xff]  }
 0x63d   :  { %6411 = vmatprep.subr.bf16.mxu0 %v8284_v60  ;;  %6575 = vmatprep.subr.bf16.mxu1 %v8287_v22  ;;  %v8351_v60 = vld [vmem:[#allocation19 + $0x6d0] ss:$28 sps:$4 sm:$0xff]   ;;  %v3495_v22 = vmax.f32 %v9652_v18, %v3487_v14  ;;  %v8360_v18 = vld [vmem:[#allocation19 + $0x738] ss:$28 sps:$4 sm:$0xff]  }
 0x63e   :  { %v8417_v14 = vld [vmem:[#allocation19 + $0x938] ss:$28 sps:$4 sm:$0xff]  }
 0x640   :  { %6412 = vmatpush1.bf16.msra.mxu0 %v8282_v29  ;;  %6576 = vmatpush1.bf16.msra.mxu1 %v8285_v57  ;;  %v8356_v29 = vld [vmem:[#allocation19 + $0x704] ss:$28 sps:$4 sm:$0xff]   ;;  %v8359_v57 = vld [vmem:[#allocation19 + $0x70c] ss:$28 sps:$4 sm:$0xff]  }
 0x641   :  { %6413 = vmatprep.subr.bf16.mxu0 %v8290_v32  ;;  %6577 = vmatprep.subr.bf16.mxu1 %v8293_v30  ;;  %v3498_v32 = vmax.f32 %v9654_v35, %v3490_v15  ;;  %v8354_v30 = vld [vmem:[#allocation19 + $0x700] ss:$28 sps:$4 sm:$0xff]   ;;  %v8422_v15 = vld [vmem:[#allocation19 + $0x96c] ss:$28 sps:$4 sm:$0xff]  }
 0x642   :  { %v8363_v35 = vld [vmem:[#allocation19 + $0x740] ss:$28 sps:$4 sm:$0xff]  }
 0x644   :  { %6414 = vmatpush1.bf16.msra.mxu0 %v8288_v39  ;;  %6578 = vmatpush1.bf16.msra.mxu1 %v8291_v41  ;;  %v9676_v39 = vpack.c.bf16 %v3495_v22, %v3495_v22  ;;  %v8357_v41 = vld [vmem:[#allocation19 + $0x708] ss:$28 sps:$4 sm:$0xff]   ;;  %v8423_v22 = vld [vmem:[#allocation19 + $0x970] ss:$28 sps:$4 sm:$0xff]  }
 0x645   :  { %6415 = vmatprep.subr.bf16.mxu0 %v8296_v27  ;;  %6579 = vmatprep.subr.bf16.mxu1 %v8299_v24  ;;  %v9678_v27 = vpack.c.bf16 %v3498_v32, %v3498_v32  ;;  %v8362_v24 = vld [vmem:[#allocation19 + $0x73c] ss:$28 sps:$4 sm:$0xff]  }
 0x646   :  { %v8426_v32 = vld [vmem:[#allocation19 + $0x9a0] ss:$28 sps:$4 sm:$0xff]  }
 0x648   :  { %6416 = vmatpush1.bf16.msra.mxu0 %v8294_v45  ;;  %6580 = vmatpush1.bf16.msra.mxu1 %v8297_v62  ;;  %v8365_v45 = vld [vmem:[#allocation19 + $0x744] ss:$28 sps:$4 sm:$0xff]   ;;  %v8368_v62 = vld [vmem:[#allocation19 + $0x774] ss:$28 sps:$4 sm:$0xff]  }
 0x649   :  { %6417 = vmatprep.subr.bf16.mxu0 %v8302_v31  ;;  %6581 = vmatprep.subr.bf16.mxu1 %v8305_v25  ;;  %v8371_v31 = vld [vmem:[#allocation19 + $0x77c] ss:$28 sps:$4 sm:$0xff]   ;;  %v8366_v25 = vld [vmem:[#allocation19 + $0x770] ss:$28 sps:$4 sm:$0xff]  }
 0x64c   :  { %6418 = vmatpush1.bf16.msra.mxu0 %v8300_v63  ;;  %6582 = vmatpush1.bf16.msra.mxu1 %v8303_v4  ;;  %v8369_v63 = vld [vmem:[#allocation19 + $0x778] ss:$28 sps:$4 sm:$0xff]   ;;  %v8374_v4 = vld [vmem:[#allocation19 + $0x7ac] ss:$28 sps:$4 sm:$0xff]  }
 0x64d   :  { %6419 = vmatprep.subr.bf16.mxu0 %v8308_v5  ;;  %6583 = vmatprep.subr.bf16.mxu1 %v8311_v20  ;;  %v8377_v5 = vld [vmem:[#allocation19 + $0x7b4] ss:$28 sps:$4 sm:$0xff]   ;;  %v8372_v20 = vld [vmem:[#allocation19 + $0x7a8] ss:$28 sps:$4 sm:$0xff]  }
 0x650   :  { %6420 = vmatpush1.bf16.msra.mxu0 %v8306_v6  ;;  %6584 = vmatpush1.bf16.msra.mxu1 %v8309_v0  ;;  %v8375_v6 = vld [vmem:[#allocation19 + $0x7b0] ss:$28 sps:$4 sm:$0xff]   ;;  %v8380_v0 = vld [vmem:[#allocation19 + $0x7e4] ss:$28 sps:$4 sm:$0xff]  }
 0x651   :  { %6421 = vmatprep.subr.bf16.mxu0 %v8314_v7  ;;  %6585 = vmatprep.subr.bf16.mxu1 %v8317_v8  ;;  %v8383_v7 = vld [vmem:[#allocation19 + $0x7ec] ss:$28 sps:$4 sm:$0xff]   ;;  %v8378_v8 = vld [vmem:[#allocation19 + $0x7e0] ss:$28 sps:$4 sm:$0xff]  }
 0x654   :  { %6422 = vmatpush1.bf16.msra.mxu0 %v8312_v33  ;;  %6586 = vmatpush1.bf16.msra.mxu1 %v8315_v53  ;;  %v8381_v33 = vld [vmem:[#allocation19 + $0x7e8] ss:$28 sps:$4 sm:$0xff]   ;;  %v8386_v53 = vld [vmem:[#allocation19 + $0x81c] ss:$28 sps:$4 sm:$0xff]  }
 0x655   :  { %6423 = vmatprep.subr.bf16.mxu0 %v8320_v11  ;;  %6587 = vmatprep.subr.bf16.mxu1 %v8323_v12  ;;  %v8389_v11 = vld [vmem:[#allocation19 + $0x824] ss:$28 sps:$4 sm:$0xff]   ;;  %v8384_v12 = vld [vmem:[#allocation19 + $0x818] ss:$28 sps:$4 sm:$0xff]  }
 0x658   :  { %6424 = vmatpush1.bf16.msra.mxu0 %v8318_v52  ;;  %6588 = vmatpush1.bf16.msra.mxu1 %v8321_v16  ;;  %v8387_v52 = vld [vmem:[#allocation19 + $0x820] ss:$28 sps:$4 sm:$0xff]   ;;  %v8392_v16 = vld [vmem:[#allocation19 + $0x854] ss:$28 sps:$4 sm:$0xff]  }
 0x659   :  { %6425 = vmatprep.subr.bf16.mxu0 %v8326_v17  ;;  %6589 = vmatprep.subr.bf16.mxu1 %v8329_v28  ;;  %v8395_v17 = vld [vmem:[#allocation19 + $0x85c] ss:$28 sps:$4 sm:$0xff]   ;;  %v8390_v28 = vld [vmem:[#allocation19 + $0x850] ss:$28 sps:$4 sm:$0xff]  }
 0x65c   :  { %6426 = vmatpush1.bf16.msra.mxu0 %v8324_v34  ;;  %6590 = vmatpush1.bf16.msra.mxu1 %v8327_v37  ;;  %v8393_v34 = vld [vmem:[#allocation19 + $0x858] ss:$28 sps:$4 sm:$0xff]   ;;  %v8398_v37 = vld [vmem:[#allocation19 + $0x88c] ss:$28 sps:$4 sm:$0xff]  }
 0x65d   :  { %6427 = vmatprep.subr.bf16.mxu0 %v8332_v23  ;;  %6591 = vmatprep.subr.bf16.mxu1 %v8335_v26  ;;  %v8401_v23 = vld [vmem:[#allocation19 + $0x894] ss:$28 sps:$4 sm:$0xff]   ;;  %v8396_v26 = vld [vmem:[#allocation19 + $0x888] ss:$28 sps:$4 sm:$0xff]  }
 0x660   :  { %6428 = vmatpush1.bf16.msra.mxu0 %v8330_v36  ;;  %6592 = vmatpush1.bf16.msra.mxu1 %v8333_v40  ;;  %v8399_v36 = vld [vmem:[#allocation19 + $0x890] ss:$28 sps:$4 sm:$0xff]   ;;  %v8404_v40 = vld [vmem:[#allocation19 + $0x8c4] ss:$28 sps:$4 sm:$0xff]  }
 0x661   :  { %6429 = vmatprep.subr.bf16.mxu0 %v8338_v42  ;;  %6593 = vmatprep.subr.bf16.mxu1 %v8341_v44  ;;  %v8407_v42 = vld [vmem:[#allocation19 + $0x8cc] ss:$28 sps:$4 sm:$0xff]   ;;  %v8402_v44 = vld [vmem:[#allocation19 + $0x8c0] ss:$28 sps:$4 sm:$0xff]  }
 0x664   :  { %6430 = vmatpush1.bf16.msra.mxu0 %v8336_v50  ;;  %6594 = vmatpush1.bf16.msra.mxu1 %v8339_v54  ;;  %v8405_v50 = vld [vmem:[#allocation19 + $0x8c8] ss:$28 sps:$4 sm:$0xff]   ;;  %v8410_v54 = vld [vmem:[#allocation19 + $0x8fc] ss:$28 sps:$4 sm:$0xff]  }
 0x665   :  { %6431 = vmatprep.subr.bf16.mxu0 %v8344_v55  ;;  %6595 = vmatprep.subr.bf16.mxu1 %v8347_v56  ;;  %v8413_v55 = vld [vmem:[#allocation19 + $0x904] ss:$28 sps:$4 sm:$0xff]   ;;  %v8408_v56 = vld [vmem:[#allocation19 + $0x8f8] ss:$28 sps:$4 sm:$0xff]  }
 0x668   :  { %6432 = vmatpush1.bf16.msra.mxu0 %v8342_v1  ;;  %6596 = vmatpush1.bf16.msra.mxu1 %v8345_v2  ;;  %v8411_v1 = vld [vmem:[#allocation19 + $0x900] ss:$28 sps:$4 sm:$0xff]   ;;  %v8416_v2 = vld [vmem:[#allocation19 + $0x934] ss:$28 sps:$4 sm:$0xff]  }
 0x669   :  { %6433 = vmatprep.subr.bf16.mxu0 %v8350_v3  ;;  %6597 = vmatprep.subr.bf16.mxu1 %v8353_v10  ;;  %v8419_v3 = vld [vmem:[#allocation19 + $0x93c] ss:$28 sps:$4 sm:$0xff]   ;;  %v8414_v10 = vld [vmem:[#allocation19 + $0x930] ss:$28 sps:$4 sm:$0xff]  }
 0x66c   :  { %6434 = vmatpush1.bf16.msra.mxu0 %v8348_v47  ;;  %6598 = vmatpush1.bf16.msra.mxu1 %v8351_v60  ;;  %v8425_v47 = vld [vmem:[#allocation19 + $0x974] ss:$28 sps:$4 sm:$0xff]   ;;  %v8420_v60 = vld [vmem:[#allocation19 + $0x968] ss:$28 sps:$4 sm:$0xff]  }
 0x66d   :  { %6444 = vmatprep.subr.bf16.mxu0 %v8356_v29  ;;  %6608 = vmatprep.subr.bf16.mxu1 %v8359_v57  ;;  %v8428_v29 = vld [vmem:[#allocation19 + $0x9a4] ss:$28 sps:$4 sm:$0xff]   ;;  %v8431_v57 = vld [vmem:[#allocation19 + $0x9ac] ss:$28 sps:$4 sm:$0xff]  }
 0x66f   :  { %6436 = vmatmul.mubr.bf16.vlgmr.msra.gmra.mrb[12].mxu0 %v9676_v39  ;;  %6600 = vmatmul.mubr.bf16.vlgmr.msra.gmra.mrb[20].mxu1 %v9676_v39 }
 0x670   :  { %6445 = vmatpush1.bf16.msra.mxu0 %v8354_v30  ;;  %6476 = vmatprep.mubr.bf16.mxu0 %v9678_v27  ;;  %v8429_v30 = vld [vmem:[#allocation19 + $0x9a8] ss:$28 sps:$4 sm:$0xff]  }
 0x671   :  { %6609 = vmatpush1.bf16.msra.mxu1 %v8357_v41  ;;  %6640 = vmatprep.mubr.bf16.mxu1 %v9678_v27  ;;  %v8434_v41 = vld [vmem:[#allocation19 + $0x9dc] ss:$28 sps:$4 sm:$0xff]  }
 0x672   :  { %6446 = vmatprep.subr.bf16.mxu0 %v8362_v24  ;;  %6610 = vmatprep.subr.bf16.mxu1 %v8365_v45  ;;  %v8437_v24 = vld [vmem:[#allocation19 + $0x9e4] ss:$28 sps:$4 sm:$0xff]   ;;  %v8432_v45 = vld [vmem:[#allocation19 + $0x9d8] ss:$28 sps:$4 sm:$0xff]  }
 0x674   :  { %6447 = vmatpush1.bf16.msra.mxu0 %v8360_v18  ;;  %v8435_v18 = vld [vmem:[#allocation19 + $0x9e0] ss:$28 sps:$4 sm:$0xff]  }
 0x675   :  { %6611 = vmatpush1.bf16.msra.mxu1 %v8363_v35  ;;  %6448 = vmatprep.subr.bf16.mxu0 %v8368_v62  ;;  %v8440_v35 = vld [vmem:[#allocation19 + $0xa14] ss:$28 sps:$4 sm:$0xff]   ;;  %v8443_v62 = vld [vmem:[#allocation19 + $0xa1c] ss:$28 sps:$4 sm:$0xff]  }
 0x676   :  { %6612 = vmatprep.subr.bf16.mxu1 %v8371_v31  ;;  %v8438_v31 = vld [vmem:[#allocation19 + $0xa10] ss:$28 sps:$4 sm:$0xff]  }
 0x678   :  { %6449 = vmatpush1.bf16.msra.mxu0 %v8366_v25  ;;  %v8441_v25 = vld [vmem:[#allocation19 + $0xa18] ss:$28 sps:$4 sm:$0xff]  }
 0x679   :  { %6613 = vmatpush1.bf16.msra.mxu1 %v8369_v63  ;;  %6450 = vmatprep.subr.bf16.mxu0 %v8374_v4  ;;  %v8446_v63 = vld [vmem:[#allocation19 + $0xa4c] ss:$28 sps:$4 sm:$0xff]   ;;  %v3489_v4 = vmul.f32 0.2, %v9656_v9 }
 0x67a   :  { %6614 = vmatprep.subr.bf16.mxu1 %v8377_v5  ;;  %v8449_v5 = vld [vmem:[#allocation19 + $0xa54] ss:$28 sps:$4 sm:$0xff]  }
 0x67c   :  { %6451 = vmatpush1.bf16.msra.mxu0 %v8372_v20  ;;  %v3492_v20 = vmul.f32 0.2, %v9650_v13 }
 0x67d   :  { %6615 = vmatpush1.bf16.msra.mxu1 %v8375_v6  ;;  %6452 = vmatprep.subr.bf16.mxu0 %v8380_v0  ;;  %v8444_v6 = vld [vmem:[#allocation19 + $0xa48] ss:$28 sps:$4 sm:$0xff]   ;;  %v8447_v0 = vld [vmem:[#allocation19 + $0xa50] ss:$28 sps:$4 sm:$0xff]  }
 0x67e   :  { %6616 = vmatprep.subr.bf16.mxu1 %v8383_v7  ;;  %v3497_v7 = vmax.f32 %v9656_v9, %v3489_v4  ;;  %v8456_v9 = vld [vmem:[#allocation19 + $0xab8] ss:$28 sps:$4 sm:$0xff]   ;;  %v8510_v4 = vld [vmem:[#allocation19 + $0xcb0] ss:$28 sps:$4 sm:$0xff]  }
 0x680   :  { %6453 = vmatpush1.bf16.msra.mxu0 %v8378_v8  ;;  %v8452_v8 = vld [vmem:[#allocation19 + $0xa84] ss:$28 sps:$4 sm:$0xff]  }
 0x681   :  { %6617 = vmatpush1.bf16.msra.mxu1 %v8381_v33  ;;  %6454 = vmatprep.subr.bf16.mxu0 %v8386_v53  ;;  %v8455_v33 = vld [vmem:[#allocation19 + $0xa8c] ss:$28 sps:$4 sm:$0xff]   ;;  %v3500_v53 = vmax.f32 %v9650_v13, %v3492_v20  ;;  %v8459_v13 = vld [vmem:[#allocation19 + $0xac0] ss:$28 sps:$4 sm:$0xff]  }
 0x682   :  { %6618 = vmatprep.subr.bf16.mxu1 %v8389_v11  ;;  %v8450_v11 = vld [vmem:[#allocation19 + $0xa80] ss:$28 sps:$4 sm:$0xff]   ;;  %v8518_v20 = vld [vmem:[#allocation19 + $0xcec] ss:$28 sps:$4 sm:$0xff]  }
 0x684   :  { %6455 = vmatpush1.bf16.msra.mxu0 %v8384_v12  ;;  %v9688_v12 = vpack.c.bf16 %v3497_v7, %v3497_v7  ;;  %v8519_v7 = vld [vmem:[#allocation19 + $0xcf0] ss:$28 sps:$4 sm:$0xff]  }
 0x685   :  { %6619 = vmatpush1.bf16.msra.mxu1 %v8387_v52  ;;  %6456 = vmatprep.subr.bf16.mxu0 %v8392_v16  ;;  %v8453_v52 = vld [vmem:[#allocation19 + $0xa88] ss:$28 sps:$4 sm:$0xff]   ;;  %v8458_v16 = vld [vmem:[#allocation19 + $0xabc] ss:$28 sps:$4 sm:$0xff]  }
 0x686   :  { %6620 = vmatprep.subr.bf16.mxu1 %v8395_v17  ;;  %v9691_v17 = vpack.c.bf16 %v3500_v53, %v3500_v53  ;;  %v8522_v53 = vld [vmem:[#allocation19 + $0xd20] ss:$28 sps:$4 sm:$0xff]  }
 0x688   :  { %6457 = vmatpush1.bf16.msra.mxu0 %v8390_v28  ;;  %v8461_v28 = vld [vmem:[#allocation19 + $0xac4] ss:$28 sps:$4 sm:$0xff]  }
 0x689   :  { %6621 = vmatpush1.bf16.msra.mxu1 %v8393_v34  ;;  %6458 = vmatprep.subr.bf16.mxu0 %v8398_v37  ;;  %v8464_v34 = vld [vmem:[#allocation19 + $0xaf4] ss:$28 sps:$4 sm:$0xff]   ;;  %v8467_v37 = vld [vmem:[#allocation19 + $0xafc] ss:$28 sps:$4 sm:$0xff]  }
 0x68a   :  { %6622 = vmatprep.subr.bf16.mxu1 %v8401_v23  ;;  %v8462_v23 = vld [vmem:[#allocation19 + $0xaf0] ss:$28 sps:$4 sm:$0xff]  }
 0x68c   :  { %6459 = vmatpush1.bf16.msra.mxu0 %v8396_v26  ;;  %v8465_v26 = vld [vmem:[#allocation19 + $0xaf8] ss:$28 sps:$4 sm:$0xff]  }
 0x68d   :  { %6623 = vmatpush1.bf16.msra.mxu1 %v8399_v36  ;;  %6460 = vmatprep.subr.bf16.mxu0 %v8404_v40  ;;  %v8470_v36 = vld [vmem:[#allocation19 + $0xb2c] ss:$28 sps:$4 sm:$0xff]   ;;  %v8473_v40 = vld [vmem:[#allocation19 + $0xb34] ss:$28 sps:$4 sm:$0xff]  }
 0x68e   :  { %6624 = vmatprep.subr.bf16.mxu1 %v8407_v42  ;;  %v8468_v42 = vld [vmem:[#allocation19 + $0xb28] ss:$28 sps:$4 sm:$0xff]  }
 0x690   :  { %6461 = vmatpush1.bf16.msra.mxu0 %v8402_v44  ;;  %v8471_v44 = vld [vmem:[#allocation19 + $0xb30] ss:$28 sps:$4 sm:$0xff]  }
 0x691   :  { %6625 = vmatpush1.bf16.msra.mxu1 %v8405_v50  ;;  %6462 = vmatprep.subr.bf16.mxu0 %v8410_v54  ;;  %v8476_v50 = vld [vmem:[#allocation19 + $0xb64] ss:$28 sps:$4 sm:$0xff]   ;;  %v8479_v54 = vld [vmem:[#allocation19 + $0xb6c] ss:$28 sps:$4 sm:$0xff]  }
 0x692   :  { %6626 = vmatprep.subr.bf16.mxu1 %v8413_v55  ;;  %v8474_v55 = vld [vmem:[#allocation19 + $0xb60] ss:$28 sps:$4 sm:$0xff]  }
 0x694   :  { %6463 = vmatpush1.bf16.msra.mxu0 %v8408_v56  ;;  %v8477_v56 = vld [vmem:[#allocation19 + $0xb68] ss:$28 sps:$4 sm:$0xff]  }
 0x695   :  { %6627 = vmatpush1.bf16.msra.mxu1 %v8411_v1  ;;  %6464 = vmatprep.subr.bf16.mxu0 %v8416_v2  ;;  %v8482_v1 = vld [vmem:[#allocation19 + $0xb9c] ss:$28 sps:$4 sm:$0xff]   ;;  %v8485_v2 = vld [vmem:[#allocation19 + $0xba4] ss:$28 sps:$4 sm:$0xff]  }
 0x696   :  { %6628 = vmatprep.subr.bf16.mxu1 %v8419_v3  ;;  %v8480_v3 = vld [vmem:[#allocation19 + $0xb98] ss:$28 sps:$4 sm:$0xff]  }
 0x698   :  { %6465 = vmatpush1.bf16.msra.mxu0 %v8414_v10  ;;  %v8483_v10 = vld [vmem:[#allocation19 + $0xba0] ss:$28 sps:$4 sm:$0xff]  }
 0x699   :  { %6629 = vmatpush1.bf16.msra.mxu1 %v8417_v14  ;;  %6466 = vmatprep.subr.bf16.mxu0 %v8422_v15  ;;  %v8488_v14 = vld [vmem:[#allocation19 + $0xbd4] ss:$28 sps:$4 sm:$0xff]   ;;  %v8491_v15 = vld [vmem:[#allocation19 + $0xbdc] ss:$28 sps:$4 sm:$0xff]  }
 0x69a   :  { %6630 = vmatprep.subr.bf16.mxu1 %v8425_v47  ;;  %v8486_v47 = vld [vmem:[#allocation19 + $0xbd0] ss:$28 sps:$4 sm:$0xff]  }
 0x69c   :  { %6467 = vmatpush1.bf16.msra.mxu0 %v8420_v60  ;;  %v8489_v60 = vld [vmem:[#allocation19 + $0xbd8] ss:$28 sps:$4 sm:$0xff]  }
 0x69d   :  { %6631 = vmatpush1.bf16.msra.mxu1 %v8423_v22  ;;  %6468 = vmatprep.subr.bf16.mxu0 %v8428_v29  ;;  %v8494_v22 = vld [vmem:[#allocation19 + $0xc0c] ss:$28 sps:$4 sm:$0xff]   ;;  %v8497_v29 = vld [vmem:[#allocation19 + $0xc14] ss:$28 sps:$4 sm:$0xff]  }
 0x69e   :  { %6632 = vmatprep.subr.bf16.mxu1 %v8431_v57  ;;  %v8492_v57 = vld [vmem:[#allocation19 + $0xc08] ss:$28 sps:$4 sm:$0xff]  }
 0x6a0   :  { %6469 = vmatpush1.bf16.msra.mxu0 %v8426_v32  ;;  %v8495_v32 = vld [vmem:[#allocation19 + $0xc10] ss:$28 sps:$4 sm:$0xff]  }
 0x6a1   :  { %6633 = vmatpush1.bf16.msra.mxu1 %v8429_v30  ;;  %6470 = vmatprep.subr.bf16.mxu0 %v8434_v41  ;;  %v8500_v30 = vld [vmem:[#allocation19 + $0xc44] ss:$28 sps:$4 sm:$0xff]   ;;  %v8503_v41 = vld [vmem:[#allocation19 + $0xc4c] ss:$28 sps:$4 sm:$0xff]  }
 0x6a2   :  { %6634 = vmatprep.subr.bf16.mxu1 %v8437_v24  ;;  %v8498_v24 = vld [vmem:[#allocation19 + $0xc40] ss:$28 sps:$4 sm:$0xff]  }
 0x6a4   :  { %6471 = vmatpush1.bf16.msra.mxu0 %v8432_v45  ;;  %v8501_v45 = vld [vmem:[#allocation19 + $0xc48] ss:$28 sps:$4 sm:$0xff]  }
 0x6a5   :  { %6635 = vmatpush1.bf16.msra.mxu1 %v8435_v18  ;;  %6472 = vmatprep.subr.bf16.mxu0 %v8440_v35  ;;  %v8506_v18 = vld [vmem:[#allocation19 + $0xc7c] ss:$28 sps:$4 sm:$0xff]   ;;  %v8509_v35 = vld [vmem:[#allocation19 + $0xc84] ss:$28 sps:$4 sm:$0xff]  }
 0x6a6   :  { %6636 = vmatprep.subr.bf16.mxu1 %v8443_v62  ;;  %v8504_v62 = vld [vmem:[#allocation19 + $0xc78] ss:$28 sps:$4 sm:$0xff]  }
 0x6a8   :  { %6473 = vmatpush1.bf16.msra.mxu0 %v8438_v31  ;;  %v8507_v31 = vld [vmem:[#allocation19 + $0xc80] ss:$28 sps:$4 sm:$0xff]  }
 0x6a9   :  { %6637 = vmatpush1.bf16.msra.mxu1 %v8441_v25  ;;  %6474 = vmatprep.subr.bf16.mxu0 %v8446_v63  ;;  %v8512_v25 = vld [vmem:[#allocation19 + $0xcb4] ss:$28 sps:$4 sm:$0xff]   ;;  %v8515_v63 = vld [vmem:[#allocation19 + $0xcbc] ss:$28 sps:$4 sm:$0xff]  }
 0x6aa   :  { %6638 = vmatprep.subr.bf16.mxu1 %v8449_v5  ;;  %v8513_v5 = vld [vmem:[#allocation19 + $0xcb8] ss:$28 sps:$4 sm:$0xff]  }
 0x6ac   :  { %6475 = vmatpush1.bf16.msra.mxu0 %v8444_v6  ;;  %v8521_v6 = vld [vmem:[#allocation19 + $0xcf4] ss:$28 sps:$4 sm:$0xff]  }
 0x6ad   :  { %6639 = vmatpush1.bf16.msra.mxu1 %v8447_v0  ;;  %6485 = vmatprep.subr.bf16.mxu0 %v8452_v8  ;;  %v8516_v0 = vld [vmem:[#allocation19 + $0xce8] ss:$28 sps:$4 sm:$0xff]  }
 0x6ae   :  { %6649 = vmatprep.subr.bf16.mxu1 %v8455_v33  ;;  %v8524_v8 = vld [vmem:[#allocation19 + $0xd24] ss:$28 sps:$4 sm:$0xff]   ;;  %v8527_v33 = vld [vmem:[#allocation19 + $0xd2c] ss:$28 sps:$4 sm:$0xff]  }
 0x6af   :  { %6477 = vmatmul.mubr.bf16.vlgmr.msra.gmra.mrb[12].mxu0 %v9688_v12 }
 0x6b0   :  { %6641 = vmatmul.mubr.bf16.vlgmr.msra.gmra.mrb[20].mxu1 %v9688_v12  ;;  %6486 = vmatpush1.bf16.msra.mxu0 %v8450_v11  ;;  %v8525_v11 = vld [vmem:[#allocation19 + $0xd28] ss:$28 sps:$4 sm:$0xff]  }
 0x6b1   :  { %6517 = vmatprep.mubr.bf16.mxu0 %v9691_v17  ;;  %6650 = vmatpush1.bf16.msra.mxu1 %v8453_v52  ;;  %v8530_v52 = vld [vmem:[#allocation19 + $0xd5c] ss:$28 sps:$4 sm:$0xff]  }
 0x6b2   :  { %6681 = vmatprep.mubr.bf16.mxu1 %v9691_v17  ;;  %6487 = vmatprep.subr.bf16.mxu0 %v8458_v16  ;;  %v8533_v16 = vld [vmem:[#allocation19 + $0xd64] ss:$28 sps:$4 sm:$0xff]  }
 0x6b3   :  { %6651 = vmatprep.subr.bf16.mxu1 %v8461_v28  ;;  %v8528_v28 = vld [vmem:[#allocation19 + $0xd58] ss:$28 sps:$4 sm:$0xff]  }
 0x6b4   :  { %6488 = vmatpush1.bf16.msra.mxu0 %v8456_v9  ;;  %v8531_v9 = vld [vmem:[#allocation19 + $0xd60] ss:$28 sps:$4 sm:$0xff]  }
 0x6b5   :  { %6652 = vmatpush1.bf16.msra.mxu1 %v8459_v13  ;;  %6489 = vmatprep.subr.bf16.mxu0 %v8464_v34  ;;  %v8536_v13 = vld [vmem:[#allocation19 + $0xd94] ss:$28 sps:$4 sm:$0xff]   ;;  %v8539_v34 = vld [vmem:[#allocation19 + $0xd9c] ss:$28 sps:$4 sm:$0xff]  }
 0x6b6   :  { %6653 = vmatprep.subr.bf16.mxu1 %v8467_v37  ;;  %v8534_v37 = vld [vmem:[#allocation19 + $0xd90] ss:$28 sps:$4 sm:$0xff]  }
 0x6b8   :  { %6490 = vmatpush1.bf16.msra.mxu0 %v8462_v23  ;;  %v8537_v23 = vld [vmem:[#allocation19 + $0xd98] ss:$28 sps:$4 sm:$0xff]  }
 0x6b9   :  { %6654 = vmatpush1.bf16.msra.mxu1 %v8465_v26  ;;  %6491 = vmatprep.subr.bf16.mxu0 %v8470_v36  ;;  %v8542_v26 = vld [vmem:[#allocation19 + $0xdcc] ss:$28 sps:$4 sm:$0xff]   ;;  %v3491_v36 = vmul.f32 0.2, %v9658_v61 }
 0x6ba   :  { %6655 = vmatprep.subr.bf16.mxu1 %v8473_v40  ;;  %v8545_v40 = vld [vmem:[#allocation19 + $0xdd4] ss:$28 sps:$4 sm:$0xff]  }
 0x6bc   :  { %6492 = vmatpush1.bf16.msra.mxu0 %v8468_v42  ;;  %v8540_v42 = vld [vmem:[#allocation19 + $0xdc8] ss:$28 sps:$4 sm:$0xff]  }
 0x6bd   :  { %6656 = vmatpush1.bf16.msra.mxu1 %v8471_v44  ;;  %6493 = vmatprep.subr.bf16.mxu0 %v8476_v50  ;;  %v8543_v44 = vld [vmem:[#allocation19 + $0xdd0] ss:$28 sps:$4 sm:$0xff]   ;;  %v3499_v50 = vmax.f32 %v9658_v61, %v3491_v36  ;;  %v8604_v36 = vld [vmem:[#allocation19 + $0x600] ss:$28 sps:$4 sm:$0xff]  }
 0x6be   :  { %6657 = vmatprep.subr.bf16.mxu1 %v8479_v54  ;;  %v8548_v54 = vld [vmem:[#allocation19 + $0x14] ss:$28 sps:$4 sm:$0xff]  }
 0x6bf   :  { %v8555_v61 = vld [vmem:[#allocation19 + $0x50] ss:$28 sps:$4 sm:$0xff]  }
 0x6c0   :  { %6494 = vmatpush1.bf16.msra.mxu0 %v8474_v55  ;;  %v8549_v55 = vld [vmem:[#allocation19 + $0x1d8] ss:$28 sps:$4 sm:$0xff]  }
 0x6c1   :  { %6658 = vmatpush1.bf16.msra.mxu1 %v8477_v56  ;;  %6495 = vmatprep.subr.bf16.mxu0 %v8482_v1  ;;  %v8546_v56 = vld [vmem:[#allocation19 + $0x10] ss:$28 sps:$4 sm:$0xff]   ;;  %v9698_v1 = vpack.c.bf16 %v3499_v50, %v3499_v50  ;;  %v8609_v50 = vld [vmem:[#allocation19 + $0x638] ss:$28 sps:$4 sm:$0xff]  }
 0x6c2   :  { %6659 = vmatprep.subr.bf16.mxu1 %v8485_v2  ;;  %v8550_v2 = vld [vmem:[#allocation19 + $0x18] ss:$28 sps:$4 sm:$0xff]  }
 0x6c4   :  { %6496 = vmatpush1.bf16.msra.mxu0 %v8480_v3  ;;  %v8553_v3 = vld [vmem:[#allocation19 + $0x4c] ss:$28 sps:$4 sm:$0xff]  }
 0x6c5   :  { %6660 = vmatpush1.bf16.msra.mxu1 %v8483_v10  ;;  %6497 = vmatprep.subr.bf16.mxu0 %v8488_v14  ;;  %v8554_v10 = vld [vmem:[#allocation19 + $0x210] ss:$28 sps:$4 sm:$0xff]   ;;  %v8551_v14 = vld [vmem:[#allocation19 + $0x48] ss:$28 sps:$4 sm:$0xff]  }
 0x6c6   :  { %6661 = vmatprep.subr.bf16.mxu1 %v8491_v15  ;;  %v8558_v15 = vld [vmem:[#allocation19 + $0x84] ss:$28 sps:$4 sm:$0xff]  }
 0x6c8   :  { %6498 = vmatpush1.bf16.msra.mxu0 %v8486_v47  ;;  %v8559_v47 = vld [vmem:[#allocation19 + $0x248] ss:$28 sps:$4 sm:$0xff]  }
 0x6c9   :  { %6662 = vmatpush1.bf16.msra.mxu1 %v8489_v60  ;;  %6499 = vmatprep.subr.bf16.mxu0 %v8494_v22  ;;  %v8556_v60 = vld [vmem:[#allocation19 + $0x80] ss:$28 sps:$4 sm:$0xff]   ;;  %v8560_v22 = vld [vmem:[#allocation19 + $0x88] ss:$28 sps:$4 sm:$0xff]  }
 0x6ca   :  { %6663 = vmatprep.subr.bf16.mxu1 %v8497_v29  ;;  %v8563_v29 = vld [vmem:[#allocation19 + $0xbc] ss:$28 sps:$4 sm:$0xff]  }
 0x6cc   :  { %6500 = vmatpush1.bf16.msra.mxu0 %v8492_v57  ;;  %v8564_v57 = vld [vmem:[#allocation19 + $0x280] ss:$28 sps:$4 sm:$0xff]  }
 0x6cd   :  { %6664 = vmatpush1.bf16.msra.mxu1 %v8495_v32  ;;  %6501 = vmatprep.subr.bf16.mxu0 %v8500_v30  ;;  %v8561_v32 = vld [vmem:[#allocation19 + $0xb8] ss:$28 sps:$4 sm:$0xff]   ;;  %v8565_v30 = vld [vmem:[#allocation19 + $0xc0] ss:$28 sps:$4 sm:$0xff]  }
 0x6ce   :  { %6665 = vmatprep.subr.bf16.mxu1 %v8503_v41  ;;  %v8568_v41 = vld [vmem:[#allocation19 + $0xf4] ss:$28 sps:$4 sm:$0xff]  }
 0x6d0   :  { %6502 = vmatpush1.bf16.msra.mxu0 %v8498_v24  ;;  %v8569_v24 = vld [vmem:[#allocation19 + $0x2b8] ss:$28 sps:$4 sm:$0xff]  }
 0x6d1   :  { %6666 = vmatpush1.bf16.msra.mxu1 %v8501_v45  ;;  %6503 = vmatprep.subr.bf16.mxu0 %v8506_v18  ;;  %v8570_v45 = vld [vmem:[#allocation19 + $0xf8] ss:$28 sps:$4 sm:$0xff]   ;;  %v8573_v18 = vld [vmem:[#allocation19 + $0x12c] ss:$28 sps:$4 sm:$0xff]  }
 0x6d2   :  { %6667 = vmatprep.subr.bf16.mxu1 %v8509_v35  ;;  %v8574_v35 = vld [vmem:[#allocation19 + $0x2f0] ss:$28 sps:$4 sm:$0xff]  }
 0x6d4   :  { %6504 = vmatpush1.bf16.msra.mxu0 %v8504_v62  ;;  %v8571_v62 = vld [vmem:[#allocation19 + $0x128] ss:$28 sps:$4 sm:$0xff]  }
 0x6d5   :  { %6668 = vmatpush1.bf16.msra.mxu1 %v8507_v31  ;;  %6505 = vmatprep.subr.bf16.mxu0 %v8512_v25  ;;  %v8575_v31 = vld [vmem:[#allocation19 + $0x130] ss:$28 sps:$4 sm:$0xff]   ;;  %v8578_v25 = vld [vmem:[#allocation19 + $0x164] ss:$28 sps:$4 sm:$0xff]  }
 0x6d6   :  { %6669 = vmatprep.subr.bf16.mxu1 %v8515_v63  ;;  %v8579_v63 = vld [vmem:[#allocation19 + $0x328] ss:$28 sps:$4 sm:$0xff]  }
 0x6d8   :  { %6506 = vmatpush1.bf16.msra.mxu0 %v8510_v4  ;;  %v8576_v4 = vld [vmem:[#allocation19 + $0x160] ss:$28 sps:$4 sm:$0xff]  }
 0x6d9   :  { %6670 = vmatpush1.bf16.msra.mxu1 %v8513_v5  ;;  %6507 = vmatprep.subr.bf16.mxu0 %v8518_v20  ;;  %v8580_v5 = vld [vmem:[#allocation19 + $0x168] ss:$28 sps:$4 sm:$0xff]   ;;  %v8583_v20 = vld [vmem:[#allocation19 + $0x19c] ss:$28 sps:$4 sm:$0xff]  }
 0x6da   :  { %6671 = vmatprep.subr.bf16.mxu1 %v8521_v6  ;;  %v8584_v6 = vld [vmem:[#allocation19 + $0x360] ss:$28 sps:$4 sm:$0xff]  }
 0x6dc   :  { %6508 = vmatpush1.bf16.msra.mxu0 %v8516_v0  ;;  %v8581_v0 = vld [vmem:[#allocation19 + $0x198] ss:$28 sps:$4 sm:$0xff]  }
 0x6dd   :  { %6672 = vmatpush1.bf16.msra.mxu1 %v8519_v7  ;;  %6509 = vmatprep.subr.bf16.mxu0 %v8524_v8  ;;  %v8585_v7 = vld [vmem:[#allocation19 + $0x1a0] ss:$28 sps:$4 sm:$0xff]   ;;  %v8588_v8 = vld [vmem:[#allocation19 + $0x1d4] ss:$28 sps:$4 sm:$0xff]  }
 0x6de   :  { %6673 = vmatprep.subr.bf16.mxu1 %v8527_v33  ;;  %v8589_v33 = vld [vmem:[#allocation19 + $0x558] ss:$28 sps:$4 sm:$0xff]  }
 0x6e0   :  { %6510 = vmatpush1.bf16.msra.mxu0 %v8522_v53  ;;  %v8586_v53 = vld [vmem:[#allocation19 + $0x1d0] ss:$28 sps:$4 sm:$0xff]  }
 0x6e1   :  { %6674 = vmatpush1.bf16.msra.mxu1 %v8525_v11  ;;  %6511 = vmatprep.subr.bf16.mxu0 %v8530_v52  ;;  %v8590_v11 = vld [vmem:[#allocation19 + $0x398] ss:$28 sps:$4 sm:$0xff]   ;;  %v8593_v52 = vld [vmem:[#allocation19 + $0x20c] ss:$28 sps:$4 sm:$0xff]  }
 0x6e2   :  { %6675 = vmatprep.subr.bf16.mxu1 %v8533_v16  ;;  %v8594_v16 = vld [vmem:[#allocation19 + $0x590] ss:$28 sps:$4 sm:$0xff]  }
 0x6e4   :  { %6512 = vmatpush1.bf16.msra.mxu0 %v8528_v28  ;;  %v8591_v28 = vld [vmem:[#allocation19 + $0x208] ss:$28 sps:$4 sm:$0xff]  }
 0x6e5   :  { %6676 = vmatpush1.bf16.msra.mxu1 %v8531_v9  ;;  %6513 = vmatprep.subr.bf16.mxu0 %v8536_v13  ;;  %v8595_v9 = vld [vmem:[#allocation19 + $0x3d0] ss:$28 sps:$4 sm:$0xff]   ;;  %v8598_v13 = vld [vmem:[#allocation19 + $0x244] ss:$28 sps:$4 sm:$0xff]  }
 0x6e6   :  { %6677 = vmatprep.subr.bf16.mxu1 %v8539_v34  ;;  %v8599_v34 = vld [vmem:[#allocation19 + $0x5c8] ss:$28 sps:$4 sm:$0xff]  }
 0x6e8   :  { %6514 = vmatpush1.bf16.msra.mxu0 %v8534_v37  ;;  %v8596_v37 = vld [vmem:[#allocation19 + $0x240] ss:$28 sps:$4 sm:$0xff]  }
 0x6e9   :  { %6678 = vmatpush1.bf16.msra.mxu1 %v8537_v23  ;;  %6515 = vmatprep.subr.bf16.mxu0 %v8542_v26  ;;  %v8600_v23 = vld [vmem:[#allocation19 + $0x408] ss:$28 sps:$4 sm:$0xff]   ;;  %v8603_v26 = vld [vmem:[#allocation19 + $0x27c] ss:$28 sps:$4 sm:$0xff]  }
 0x6ea   :  { %6679 = vmatprep.subr.bf16.mxu1 %v8545_v40  ;;  %v8601_v40 = vld [vmem:[#allocation19 + $0x278] ss:$28 sps:$4 sm:$0xff]  }
 0x6ec   :  { %6516 = vmatpush1.bf16.msra.mxu0 %v8540_v42  ;;  %v8605_v42 = vld [vmem:[#allocation19 + $0x440] ss:$28 sps:$4 sm:$0xff]  }
 0x6ed   :  { %6680 = vmatpush1.bf16.msra.mxu1 %v8543_v44  ;;  %6690 = vmatprep.subr.bf16.mxu0 %v8548_v54  ;;  %v8608_v44 = vld [vmem:[#allocation19 + $0x2b4] ss:$28 sps:$4 sm:$0xff]  }
 0x6ee   :  { %7841 = vmatprep.subr.bf16.mxu1 %v8549_v55  ;;  %v8606_v54 = vld [vmem:[#allocation19 + $0x2b0] ss:$28 sps:$4 sm:$0xff]   ;;  %v8610_v55 = vld [vmem:[#allocation19 + $0x478] ss:$28 sps:$4 sm:$0xff]  }
 0x6ef   :  { %6518 = vmatmul.mubr.bf16.vlgmr.msra.gmra.mrb[12].mxu0 %v9698_v1 }
 0x6f0   :  { %6682 = vmatmul.mubr.bf16.vlgmr.msra.gmra.mrb[20].mxu1 %v9698_v1  ;;  %6691 = vmatpush1.bf16.msra.mxu0 %v8546_v56  ;;  %v8613_v56 = vld [vmem:[#allocation19 + $0x2ec] ss:$28 sps:$4 sm:$0xff]  }
 0x6f1   :  { %6722 = vmatprep.mubr.bf16.mxu0 %v9660_v38  ;;  %7842 = vmatpush3.bf16.msra.mxu1 %v8550_v2  ;;  %v8614_v2 = vld [vmem:[#allocation19 + $0x670] ss:$28 sps:$4 sm:$0xff]  }
 0x6f2   :  { %6886 = vmatprep.mubr.bf16.mxu1 %v9660_v38  ;;  %6692 = vmatprep.subr.bf16.mxu0 %v8553_v3  ;;  %v8566_v38 = vld [vmem:[#allocation19 + $0xf0] ss:$28 sps:$4 sm:$0xff]   ;;  %v8611_v3 = vld [vmem:[#allocation19 + $0x2e8] ss:$28 sps:$4 sm:$0xff]  }
 0x6f3   :  { %7843 = vmatprep.subr.bf16.mxu1 %v8554_v10  ;;  %v8615_v10 = vld [vmem:[#allocation19 + $0x4b0] ss:$28 sps:$4 sm:$0xff]  }
 0x6f4   :  { %6693 = vmatpush1.bf16.msra.mxu0 %v8551_v14  ;;  %v8618_v14 = vld [vmem:[#allocation19 + $0x324] ss:$28 sps:$4 sm:$0xff]  }
 0x6f5   :  { %7844 = vmatpush3.bf16.msra.mxu1 %v8555_v61  ;;  %6694 = vmatprep.subr.bf16.mxu0 %v8558_v15  ;;  %v8619_v61 = vld [vmem:[#allocation19 + $0x6a8] ss:$28 sps:$4 sm:$0xff]   ;;  %v8616_v15 = vld [vmem:[#allocation19 + $0x320] ss:$28 sps:$4 sm:$0xff]  }
 0x6f6   :  { %7845 = vmatprep.subr.bf16.mxu1 %v8559_v47  ;;  %v8620_v47 = vld [vmem:[#allocation19 + $0x4e8] ss:$28 sps:$4 sm:$0xff]  }
 0x6f8   :  { %6695 = vmatpush1.bf16.msra.mxu0 %v8556_v60  ;;  %v8623_v60 = vld [vmem:[#allocation19 + $0x35c] ss:$28 sps:$4 sm:$0xff]  }
 0x6f9   :  { %7846 = vmatpush3.bf16.msra.mxu1 %v8560_v22  ;;  %6696 = vmatprep.subr.bf16.mxu0 %v8563_v29  ;;  %v8624_v22 = vld [vmem:[#allocation19 + $0x6e0] ss:$28 sps:$4 sm:$0xff]   ;;  %v8621_v29 = vld [vmem:[#allocation19 + $0x358] ss:$28 sps:$4 sm:$0xff]  }
 0x6fa   :  { %7847 = vmatprep.subr.bf16.mxu1 %v8564_v57  ;;  %v8625_v57 = vld [vmem:[#allocation19 + $0x520] ss:$28 sps:$4 sm:$0xff]  }
 0x6fc   :  { %6697 = vmatpush1.bf16.msra.mxu0 %v8561_v32  ;;  %v8628_v32 = vld [vmem:[#allocation19 + $0x394] ss:$28 sps:$4 sm:$0xff]  }
 0x6fd   :  { %7848 = vmatpush3.bf16.msra.mxu1 %v8565_v30  ;;  %6698 = vmatprep.subr.bf16.mxu0 %v8568_v41  ;;  %v8629_v30 = vld [vmem:[#allocation19 + $0x8d8] ss:$28 sps:$4 sm:$0xff]   ;;  %v8626_v41 = vld [vmem:[#allocation19 + $0x390] ss:$28 sps:$4 sm:$0xff]  }
 0x6fe   :  { %7849 = vmatprep.subr.bf16.mxu1 %v8569_v24  ;;  %v8630_v24 = vld [vmem:[#allocation19 + $0x718] ss:$28 sps:$4 sm:$0xff]  }
 0x700   :  { %6699 = vmatpush1.bf16.msra.mxu0 %v8566_v38  ;;  %v8633_v38 = vld [vmem:[#allocation19 + $0x3cc] ss:$28 sps:$4 sm:$0xff]  }
 0x701   :  { %7850 = vmatpush3.bf16.msra.mxu1 %v8570_v45  ;;  %6700 = vmatprep.subr.bf16.mxu0 %v8573_v18  ;;  %v8634_v45 = vld [vmem:[#allocation19 + $0x910] ss:$28 sps:$4 sm:$0xff]   ;;  %v8631_v18 = vld [vmem:[#allocation19 + $0x3c8] ss:$28 sps:$4 sm:$0xff]  }
 0x702   :  { %7851 = vmatprep.subr.bf16.mxu1 %v8574_v35  ;;  %v8635_v35 = vld [vmem:[#allocation19 + $0x750] ss:$28 sps:$4 sm:$0xff]  }
 0x704   :  { %6701 = vmatpush1.bf16.msra.mxu0 %v8571_v62  ;;  %v8638_v62 = vld [vmem:[#allocation19 + $0x404] ss:$28 sps:$4 sm:$0xff]  }
 0x705   :  { %7852 = vmatpush3.bf16.msra.mxu1 %v8575_v31  ;;  %6702 = vmatprep.subr.bf16.mxu0 %v8578_v25  ;;  %v8639_v31 = vld [vmem:[#allocation19 + $0x948] ss:$28 sps:$4 sm:$0xff]   ;;  %v8636_v25 = vld [vmem:[#allocation19 + $0x400] ss:$28 sps:$4 sm:$0xff]  }
 0x706   :  { %7853 = vmatprep.subr.bf16.mxu1 %v8579_v63  ;;  %v8643_v63 = vld [vmem:[#allocation19 + $0x43c] ss:$28 sps:$4 sm:$0xff]  }
 0x708   :  { %6703 = vmatpush1.bf16.msra.mxu0 %v8576_v4  ;;  %v8644_v4 = vld [vmem:[#allocation19 + $0x980] ss:$28 sps:$4 sm:$0xff]  }
 0x709   :  { %7854 = vmatpush3.bf16.msra.mxu1 %v8580_v5  ;;  %6704 = vmatprep.subr.bf16.mxu0 %v8583_v20  ;;  %v8641_v5 = vld [vmem:[#allocation19 + $0x438] ss:$28 sps:$4 sm:$0xff]  }
 0x70a   :  { %7855 = vmatprep.subr.bf16.mxu1 %v8584_v6  ;;  %v8648_v20 = vld [vmem:[#allocation19 + $0x474] ss:$28 sps:$4 sm:$0xff]  }
 0x70b   :  { %v8649_v6 = vld [vmem:[#allocation19 + $0x9b8] ss:$28 sps:$4 sm:$0xff]  }
 0x70c   :  { %6705 = vmatpush1.bf16.msra.mxu0 %v8581_v0  ;;  %v8646_v0 = vld [vmem:[#allocation19 + $0x470] ss:$28 sps:$4 sm:$0xff]  }
 0x70d   :  { %7856 = vmatpush3.bf16.msra.mxu1 %v8585_v7  ;;  %6706 = vmatprep.subr.bf16.mxu0 %v8588_v8  ;;  %v8650_v7 = vld [vmem:[#allocation19 + $0x7f8] ss:$28 sps:$4 sm:$0xff]   ;;  %v8653_v8 = vld [vmem:[#allocation19 + $0x4ac] ss:$28 sps:$4 sm:$0xff]  }
 0x70e   :  { %7863 = vmatprep.subr.bf16.mxu1 %v8589_v33  ;;  %v8654_v33 = vld [vmem:[#allocation19 + $0x9f0] ss:$28 sps:$4 sm:$0xff]  }
 0x710   :  { %6887 = vmatmul.mubr.bf16.vlgmr.msra.gmra.mrb[24].mxu1 %v9662_v43  ;;  %6707 = vmatpush1.bf16.msra.mxu0 %v8586_v53  ;;  %v8651_v53 = vld [vmem:[#allocation19 + $0x4a8] ss:$28 sps:$4 sm:$0xff]  }
 0x711   :  { %7864 = vmatpush3.bf16.msra.mxu1 %v8590_v11  ;;  %6926 = vmatprep.mubr.bf16.mxu1 %v9668_v51  ;;  %v8655_v11 = vld [vmem:[#allocation19 + $0x830] ss:$28 sps:$4 sm:$0xff]  }
 0x712   :  { %6708 = vmatprep.subr.bf16.mxu0 %v8593_v52  ;;  %7865 = vmatprep.subr.bf16.mxu1 %v8594_v16  ;;  %v8658_v52 = vld [vmem:[#allocation19 + $0x4e4] ss:$28 sps:$4 sm:$0xff]  }
 0x713   :  { %v8659_v16 = vld [vmem:[#allocation19 + $0xa28] ss:$28 sps:$4 sm:$0xff]  }
 0x714   :  { %6709 = vmatpush1.bf16.msra.mxu0 %v8591_v28  ;;  %v8656_v28 = vld [vmem:[#allocation19 + $0x4e0] ss:$28 sps:$4 sm:$0xff]  }
 0x715   :  { %7866 = vmatpush3.bf16.msra.mxu1 %v8595_v9  ;;  %6710 = vmatprep.subr.bf16.mxu0 %v8598_v13  ;;  %v8660_v9 = vld [vmem:[#allocation19 + $0x868] ss:$28 sps:$4 sm:$0xff]   ;;  %v8663_v13 = vld [vmem:[#allocation19 + $0x51c] ss:$28 sps:$4 sm:$0xff]  }
 0x716   :  { %7867 = vmatprep.subr.bf16.mxu1 %v8599_v34  ;;  %v8664_v34 = vld [vmem:[#allocation19 + $0xa60] ss:$28 sps:$4 sm:$0xff]  }
 0x718   :  { %6711 = vmatpush1.bf16.msra.mxu0 %v8596_v37  ;;  %v8661_v37 = vld [vmem:[#allocation19 + $0x518] ss:$28 sps:$4 sm:$0xff]  }
 0x719   :  { %7868 = vmatpush3.bf16.msra.mxu1 %v8600_v23  ;;  %6712 = vmatprep.subr.bf16.mxu0 %v8603_v26  ;;  %v8665_v23 = vld [vmem:[#allocation19 + $0x8a0] ss:$28 sps:$4 sm:$0xff]   ;;  %v8668_v26 = vld [vmem:[#allocation19 + $0x554] ss:$28 sps:$4 sm:$0xff]  }
 0x71a   :  { %7869 = vmatprep.subr.bf16.mxu1 %v8604_v36  ;;  %v8669_v36 = vld [vmem:[#allocation19 + $0xc58] ss:$28 sps:$4 sm:$0xff]  }
 0x71c   :  { %6713 = vmatpush1.bf16.msra.mxu0 %v8601_v40  ;;  %v8666_v40 = vld [vmem:[#allocation19 + $0x550] ss:$28 sps:$4 sm:$0xff]  }
 0x71d   :  { %7870 = vmatpush3.bf16.msra.mxu1 %v8605_v42  ;;  %6714 = vmatprep.subr.bf16.mxu0 %v8608_v44  ;;  %v8670_v42 = vld [vmem:[#allocation19 + $0xa98] ss:$28 sps:$4 sm:$0xff]   ;;  %v8673_v44 = vld [vmem:[#allocation19 + $0x58c] ss:$28 sps:$4 sm:$0xff]  }
 0x71e   :  { %7871 = vmatprep.subr.bf16.mxu1 %v8609_v50  ;;  %v8674_v50 = vld [vmem:[#allocation19 + $0xc90] ss:$28 sps:$4 sm:$0xff]  }
 0x720   :  { %6715 = vmatpush1.bf16.msra.mxu0 %v8606_v54  ;;  %v8671_v54 = vld [vmem:[#allocation19 + $0x588] ss:$28 sps:$4 sm:$0xff]  }
 0x721   :  { %7872 = vmatpush3.bf16.msra.mxu1 %v8610_v55  ;;  %6716 = vmatprep.subr.bf16.mxu0 %v8613_v56  ;;  %v8675_v55 = vld [vmem:[#allocation19 + $0xad0] ss:$28 sps:$4 sm:$0xff]   ;;  %v8678_v56 = vld [vmem:[#allocation19 + $0x5c4] ss:$28 sps:$4 sm:$0xff]  }
 0x722   :  { %7873 = vmatprep.subr.bf16.mxu1 %v8614_v2  ;;  %v8679_v2 = vld [vmem:[#allocation19 + $0xcc8] ss:$28 sps:$4 sm:$0xff]  }
 0x724   :  { %6717 = vmatpush1.bf16.msra.mxu0 %v8611_v3  ;;  %v8676_v3 = vld [vmem:[#allocation19 + $0x5c0] ss:$28 sps:$4 sm:$0xff]  }
 0x725   :  { %7874 = vmatpush3.bf16.msra.mxu1 %v8615_v10  ;;  %6718 = vmatprep.subr.bf16.mxu0 %v8618_v14  ;;  %v8680_v10 = vld [vmem:[#allocation19 + $0xb08] ss:$28 sps:$4 sm:$0xff]   ;;  %v8683_v14 = vld [vmem:[#allocation19 + $0x5fc] ss:$28 sps:$4 sm:$0xff]  }
 0x726   :  { %7875 = vmatprep.subr.bf16.mxu1 %v8619_v61  ;;  %v8684_v61 = vld [vmem:[#allocation19 + $0xd00] ss:$28 sps:$4 sm:$0xff]  }
 0x728   :  { %6719 = vmatpush1.bf16.msra.mxu0 %v8616_v15  ;;  %v8681_v15 = vld [vmem:[#allocation19 + $0x5f8] ss:$28 sps:$4 sm:$0xff]  }
 0x729   :  { %7876 = vmatpush3.bf16.msra.mxu1 %v8620_v47  ;;  %6720 = vmatprep.subr.bf16.mxu0 %v8623_v60  ;;  %v8685_v47 = vld [vmem:[#allocation19 + $0xb40] ss:$28 sps:$4 sm:$0xff]   ;;  %v8688_v60 = vld [vmem:[#allocation19 + $0x634] ss:$28 sps:$4 sm:$0xff]  }
 0x72a   :  { %7877 = vmatprep.subr.bf16.mxu1 %v8624_v22  ;;  %v8689_v22 = vld [vmem:[#allocation19 + $0xd38] ss:$28 sps:$4 sm:$0xff]  }
 0x72c   :  { %6721 = vmatpush1.bf16.msra.mxu0 %v8621_v29  ;;  %v8686_v29 = vld [vmem:[#allocation19 + $0x630] ss:$28 sps:$4 sm:$0xff]  }
 0x72d   :  { %7878 = vmatpush3.bf16.msra.mxu1 %v8625_v57  ;;  %6731 = vmatprep.subr.bf16.mxu0 %v8628_v32  ;;  %v8690_v57 = vld [vmem:[#allocation19 + $0xb78] ss:$28 sps:$4 sm:$0xff]   ;;  %v8693_v32 = vld [vmem:[#allocation19 + $0x66c] ss:$28 sps:$4 sm:$0xff]  }
 0x72e   :  { %7885 = vmatprep.subr.bf16.mxu1 %v8629_v30  ;;  %v8694_v30 = vld [vmem:[#allocation19 + $0xd70] ss:$28 sps:$4 sm:$0xff]  }
 0x72f   :  { %6723 = vmatmul.mubr.bf16.vlgmr.msra.gmra.mrb[16].mxu0 %v9662_v43  ;;  %v8640_v43 = vld [vmem:[#allocation19 + $0x788] ss:$28 sps:$4 sm:$0xff]  }
 0x730   :  { %6927 = vmatmul.mubr.bf16.vlgmr.msra.gmra.mrb[28].mxu1 %v9676_v39  ;;  %6732 = vmatpush1.bf16.msra.mxu0 %v8626_v41  ;;  %v8691_v41 = vld [vmem:[#allocation19 + $0x668] ss:$28 sps:$4 sm:$0xff]  }
 0x731   :  { %6763 = vmatprep.mubr.bf16.mxu0 %v9668_v51  ;;  %7886 = vmatpush3.bf16.msra.mxu1 %v8630_v24  ;;  %v8645_v51 = vld [vmem:[#allocation19 + $0x7c0] ss:$28 sps:$4 sm:$0xff]   ;;  %v8695_v24 = vld [vmem:[#allocation19 + $0xbb0] ss:$28 sps:$4 sm:$0xff]  }
 0x732   :  { %6966 = vmatprep.mubr.bf16.mxu1 %v9678_v27  ;;  %6733 = vmatprep.subr.bf16.mxu0 %v8633_v38  ;;  %v8698_v38 = vld [vmem:[#allocation19 + $0x6a4] ss:$28 sps:$4 sm:$0xff]  }
 0x733   :  { %7887 = vmatprep.subr.bf16.mxu1 %v8634_v45  ;;  %v8699_v45 = vld [vmem:[#allocation19 + $0xda8] ss:$28 sps:$4 sm:$0xff]  }
 0x734   :  { %6734 = vmatpush1.bf16.msra.mxu0 %v8631_v18  ;;  %v8696_v18 = vld [vmem:[#allocation19 + $0x6a0] ss:$28 sps:$4 sm:$0xff]  }
 0x735   :  { %7888 = vmatpush3.bf16.msra.mxu1 %v8635_v35  ;;  %6735 = vmatprep.subr.bf16.mxu0 %v8638_v62  ;;  %v8700_v35 = vld [vmem:[#allocation19 + $0xbe8] ss:$28 sps:$4 sm:$0xff]   ;;  %v8703_v62 = vld [vmem:[#allocation19 + $0x6dc] ss:$28 sps:$4 sm:$0xff]  }
 0x736   :  { %7889 = vmatprep.subr.bf16.mxu1 %v8639_v31  ;;  %v8704_v31 = vld [vmem:[#allocation19 + $0xde0] ss:$28 sps:$4 sm:$0xff]  }
 0x738   :  { %6736 = vmatpush1.bf16.msra.mxu0 %v8636_v25  ;;  %v8701_v25 = vld [vmem:[#allocation19 + $0x6d8] ss:$28 sps:$4 sm:$0xff]  }
 0x739   :  { %7890 = vmatpush3.bf16.msra.mxu1 %v8640_v43  ;;  %6737 = vmatprep.subr.bf16.mxu0 %v8643_v63  ;;  %v8705_v43 = vld [vmem:[#allocation19 + $0xc20] ss:$28 sps:$4 sm:$0xff]   ;;  %v8708_v63 = vld [vmem:[#allocation19 + $0x714] ss:$28 sps:$4 sm:$0xff]  }
 0x73a   :  { %7891 = vmatprep.subr.bf16.mxu1 %v8644_v4  ;;  %v8706_v4 = vld [vmem:[#allocation19 + $0x710] ss:$28 sps:$4 sm:$0xff]  }
 0x73c   :  { %6738 = vmatpush1.bf16.msra.mxu0 %v8641_v5  ;;  %v8711_v5 = vld [vmem:[#allocation19 + $0x74c] ss:$28 sps:$4 sm:$0xff]  }
 0x73d   :  { %7892 = vmatpush3.bf16.msra.mxu1 %v8645_v51  ;;  %6739 = vmatprep.subr.bf16.mxu0 %v8648_v20  ;;  %v8709_v51 = vld [vmem:[#allocation19 + $0x748] ss:$28 sps:$4 sm:$0xff]  }
 0x73e   :  { %7893 = vmatprep.subr.bf16.mxu1 %v8649_v6  ;;  %v8714_v20 = vld [vmem:[#allocation19 + $0x784] ss:$28 sps:$4 sm:$0xff]  }
 0x73f   :  { %v8712_v6 = vld [vmem:[#allocation19 + $0x780] ss:$28 sps:$4 sm:$0xff]  }
 0x740   :  { %6740 = vmatpush1.bf16.msra.mxu0 %v8646_v0  ;;  %v8717_v0 = vld [vmem:[#allocation19 + $0x7bc] ss:$28 sps:$4 sm:$0xff]  }
 0x741   :  { %7894 = vmatpush3.bf16.msra.mxu1 %v8650_v7  ;;  %6741 = vmatprep.subr.bf16.mxu0 %v8653_v8  ;;  %v8715_v7 = vld [vmem:[#allocation19 + $0x7b8] ss:$28 sps:$4 sm:$0xff]  }
 0x742   :  { %7895 = vmatprep.subr.bf16.mxu1 %v8654_v33  ;;  %v8720_v8 = vld [vmem:[#allocation19 + $0x7f4] ss:$28 sps:$4 sm:$0xff]  }
 0x743   :  { %v8718_v33 = vld [vmem:[#allocation19 + $0x7f0] ss:$28 sps:$4 sm:$0xff]  }
 0x744   :  { %6742 = vmatpush1.bf16.msra.mxu0 %v8651_v53  ;;  %v8721_v53 = vld [vmem:[#allocation19 + $0x828] ss:$28 sps:$4 sm:$0xff]  }
 0x745   :  { %7896 = vmatpush3.bf16.msra.mxu1 %v8655_v11  ;;  %6743 = vmatprep.subr.bf16.mxu0 %v8658_v52  ;;  %v8726_v11 = vld [vmem:[#allocation19 + $0x864] ss:$28 sps:$4 sm:$0xff]   ;;  %v8729_v52 = vld [vmem:[#allocation19 + $0x89c] ss:$28 sps:$4 sm:$0xff]  }
 0x746   :  { %7897 = vmatprep.subr.bf16.mxu1 %v8659_v16  ;;  %v8727_v16 = vld [vmem:[#allocation19 + $0x898] ss:$28 sps:$4 sm:$0xff]  }
 0x748   :  { %6744 = vmatpush1.bf16.msra.mxu0 %v8656_v28  ;;  %v8732_v28 = vld [vmem:[#allocation19 + $0x8d4] ss:$28 sps:$4 sm:$0xff]  }
 0x749   :  { %7898 = vmatpush3.bf16.msra.mxu1 %v8660_v9  ;;  %6745 = vmatprep.subr.bf16.mxu0 %v8663_v13  ;;  %v8730_v9 = vld [vmem:[#allocation19 + $0x8d0] ss:$28 sps:$4 sm:$0xff]  }
 0x74a   :  { %7899 = vmatprep.subr.bf16.mxu1 %v8664_v34  ;;  %v8735_v13 = vld [vmem:[#allocation19 + $0x90c] ss:$28 sps:$4 sm:$0xff]  }
 0x74b   :  { %v8733_v34 = vld [vmem:[#allocation19 + $0x908] ss:$28 sps:$4 sm:$0xff]  }
 0x74c   :  { %6746 = vmatpush1.bf16.msra.mxu0 %v8661_v37  ;;  %v8738_v37 = vld [vmem:[#allocation19 + $0x944] ss:$28 sps:$4 sm:$0xff]  }
 0x74d   :  { %7900 = vmatpush3.bf16.msra.mxu1 %v8665_v23  ;;  %6747 = vmatprep.subr.bf16.mxu0 %v8668_v26  ;;  %v8736_v23 = vld [vmem:[#allocation19 + $0x940] ss:$28 sps:$4 sm:$0xff]  }
 0x74e   :  { %7907 = vmatprep.subr.bf16.mxu1 %v8669_v36  ;;  %v8741_v26 = vld [vmem:[#allocation19 + $0x97c] ss:$28 sps:$4 sm:$0xff]  }
 0x74f   :  { %v8739_v36 = vld [vmem:[#allocation19 + $0x978] ss:$28 sps:$4 sm:$0xff]  }
 0x750   :  { %6967 = vmatmul.mubr.bf16.vlgmr.msra.gmra.mrb[32].mxu1 %v9688_v12  ;;  %6748 = vmatpush1.bf16.msra.mxu0 %v8666_v40  ;;  %v8744_v40 = vld [vmem:[#allocation19 + $0x9b4] ss:$28 sps:$4 sm:$0xff]  }
 0x751   :  { %7908 = vmatpush3.bf16.msra.mxu1 %v8670_v42  ;;  %7006 = vmatprep.mubr.bf16.mxu1 %v9691_v17  ;;  %v8742_v42 = vld [vmem:[#allocation19 + $0x9b0] ss:$28 sps:$4 sm:$0xff]  }
 0x752   :  { %6749 = vmatprep.subr.bf16.mxu0 %v8673_v44  ;;  %7909 = vmatprep.subr.bf16.mxu1 %v8674_v50  ;;  %v8747_v44 = vld [vmem:[#allocation19 + $0x9ec] ss:$28 sps:$4 sm:$0xff]  }
 0x753   :  { %v8745_v50 = vld [vmem:[#allocation19 + $0x9e8] ss:$28 sps:$4 sm:$0xff]  }
 0x754   :  { %6750 = vmatpush1.bf16.msra.mxu0 %v8671_v54  ;;  %v8750_v54 = vld [vmem:[#allocation19 + $0xa24] ss:$28 sps:$4 sm:$0xff]  }
 0x755   :  { %7910 = vmatpush3.bf16.msra.mxu1 %v8675_v55  ;;  %6751 = vmatprep.subr.bf16.mxu0 %v8678_v56  ;;  %v8748_v55 = vld [vmem:[#allocation19 + $0xa20] ss:$28 sps:$4 sm:$0xff]  }
 0x756   :  { %7911 = vmatprep.subr.bf16.mxu1 %v8679_v2  ;;  %v8753_v56 = vld [vmem:[#allocation19 + $0xa5c] ss:$28 sps:$4 sm:$0xff]  }
 0x757   :  { %v8751_v2 = vld [vmem:[#allocation19 + $0xa58] ss:$28 sps:$4 sm:$0xff]  }
 0x758   :  { %6752 = vmatpush1.bf16.msra.mxu0 %v8676_v3  ;;  %v8756_v3 = vld [vmem:[#allocation19 + $0xa94] ss:$28 sps:$4 sm:$0xff]  }
 0x759   :  { %7912 = vmatpush3.bf16.msra.mxu1 %v8680_v10  ;;  %6753 = vmatprep.subr.bf16.mxu0 %v8683_v14  ;;  %v8754_v10 = vld [vmem:[#allocation19 + $0xa90] ss:$28 sps:$4 sm:$0xff]  }
 0x75a   :  { %7913 = vmatprep.subr.bf16.mxu1 %v8684_v61  ;;  %v8759_v14 = vld [vmem:[#allocation19 + $0xacc] ss:$28 sps:$4 sm:$0xff]  }
 0x75b   :  { %v8757_v61 = vld [vmem:[#allocation19 + $0xac8] ss:$28 sps:$4 sm:$0xff]  }
 0x75c   :  { %6754 = vmatpush1.bf16.msra.mxu0 %v8681_v15  ;;  %v8762_v15 = vld [vmem:[#allocation19 + $0xb04] ss:$28 sps:$4 sm:$0xff]  }
 0x75d   :  { %7914 = vmatpush3.bf16.msra.mxu1 %v8685_v47  ;;  %6755 = vmatprep.subr.bf16.mxu0 %v8688_v60  ;;  %v8760_v47 = vld [vmem:[#allocation19 + $0xb00] ss:$28 sps:$4 sm:$0xff]  }
 0x75e   :  { %7915 = vmatprep.subr.bf16.mxu1 %v8689_v22  ;;  %v8765_v60 = vld [vmem:[#allocation19 + $0xb3c] ss:$28 sps:$4 sm:$0xff]  }
 0x75f   :  { %v8763_v22 = vld [vmem:[#allocation19 + $0xb38] ss:$28 sps:$4 sm:$0xff]  }
 0x760   :  { %6756 = vmatpush1.bf16.msra.mxu0 %v8686_v29  ;;  %v8768_v29 = vld [vmem:[#allocation19 + $0xb74] ss:$28 sps:$4 sm:$0xff]  }
 0x761   :  { %7916 = vmatpush3.bf16.msra.mxu1 %v8690_v57  ;;  %6757 = vmatprep.subr.bf16.mxu0 %v8693_v32  ;;  %v8766_v57 = vld [vmem:[#allocation19 + $0xb70] ss:$28 sps:$4 sm:$0xff]   ;;  %v9717_v32 = vld [vmem:[#allocation21] sm:$0xff] }
 0x762   :  { %7917 = vmatprep.subr.bf16.mxu1 %v8694_v30  ;;  %v4034_v30 = vrot.slane %v9717_v32, %v9474_v46 }
 0x764   :  { %6758 = vmatpush1.bf16.msra.mxu0 %v8691_v41  ;;  %v4030_v41 = vrot.slane %v9717_v32, %v9416_v59 }
 0x765   :  { %7918 = vmatpush3.bf16.msra.mxu1 %v8695_v24  ;;  %6759 = vmatprep.subr.bf16.mxu0 %v8698_v38  ;;  %v8769_v24 = vld [vmem:[#allocation19 + $0xba8] ss:$28 sps:$4 sm:$0xff]   ;;  %v4038_v38 = vrot.slane %v9717_v32, %v9477_v49 }
 0x766   :  { %7919 = vmatprep.subr.bf16.mxu1 %v8699_v45  ;;  %v8774_v45 = vld [vmem:[#allocation19 + $0xbe4] ss:$28 sps:$4 sm:$0xff]  }
 0x768   :  { %6760 = vmatpush1.bf16.msra.mxu0 %v8696_v18 }
 0x769   :  { %7920 = vmatpush3.bf16.msra.mxu1 %v8700_v35  ;;  %6761 = vmatprep.subr.bf16.mxu0 %v8703_v62 }
 0x76a   :  { %7921 = vmatprep.subr.bf16.mxu1 %v8704_v31 }
 0x76c   :  { %6762 = vmatpush1.bf16.msra.mxu0 %v8701_v25 }
 0x76d   :  { %7922 = vmatpush3.bf16.msra.mxu1 %v8705_v43  ;;  %6772 = vmatprep.subr.bf16.mxu0 %v8708_v63 }
 0x76f   :  { %6764 = vmatmul.mubr.bf16.vlgmr.msra.gmra.mrb[16].mxu0 %v9676_v39  ;;  %v8723_v39 = vld [vmem:[#allocation19 + $0x82c] ss:$28 sps:$4 sm:$0xff]  }
 0x770   :  { %7007 = vmatmul.mubr.bf16.vlgmr.msra.gmra.mrb[36].mxu1 %v9698_v1  ;;  %6773 = vmatpush1.bf16.msra.mxu0 %v8706_v4  ;;  %v8772_v4 = vld [vmem:[#allocation19 + $0xbe0] ss:$28 sps:$4 sm:$0xff]  }
 0x771   :  { %6804 = vmatprep.mubr.bf16.mxu0 %v9678_v27  ;;  %6774 = vmatprep.subr.bf16.mxu0 %v8711_v5  ;;  %v8724_v27 = vld [vmem:[#allocation19 + $0x860] ss:$28 sps:$4 sm:$0xff]  }
 0x774   :  { %6775 = vmatpush1.bf16.msra.mxu0 %v8709_v51  ;;  %v8777_v51 = vld [vmem:[#allocation19 + $0xc1c] ss:$28 sps:$4 sm:$0xff]  }
 0x775   :  { %6776 = vmatprep.subr.bf16.mxu0 %v8714_v20  ;;  %v8775_v20 = vld [vmem:[#allocation19 + $0xc18] ss:$28 sps:$4 sm:$0xff]  }
 0x778   :  { %6777 = vmatpush1.bf16.msra.mxu0 %v8712_v6  ;;  %v8780_v6 = vld [vmem:[#allocation19 + $0xc54] ss:$28 sps:$4 sm:$0xff]  }
 0x779   :  { %6778 = vmatprep.subr.bf16.mxu0 %v8717_v0  ;;  %v8778_v0 = vld [vmem:[#allocation19 + $0xc50] ss:$28 sps:$4 sm:$0xff]  }
 0x77c   :  { %6779 = vmatpush1.bf16.msra.mxu0 %v8715_v7  ;;  %v8783_v7 = vld [vmem:[#allocation19 + $0xc8c] ss:$28 sps:$4 sm:$0xff]  }
 0x77d   :  { %6780 = vmatprep.subr.bf16.mxu0 %v8720_v8 }
 0x780   :  { %6781 = vmatpush1.bf16.msra.mxu0 %v8718_v33 }
 0x781   :  { %6782 = vmatprep.subr.bf16.mxu0 %v8723_v39  ;;  %v8781_v39 = vld [vmem:[#allocation19 + $0xc88] ss:$28 sps:$4 sm:$0xff]  }
 0x784   :  { %6783 = vmatpush1.bf16.msra.mxu0 %v8721_v53 }
 0x785   :  { %6784 = vmatprep.subr.bf16.mxu0 %v8726_v11  ;;  %v8786_v11 = vld [vmem:[#allocation19 + $0xcc4] ss:$28 sps:$4 sm:$0xff]  }
 0x788   :  { %6785 = vmatpush1.bf16.msra.mxu0 %v8724_v27 }
 0x789   :  { %6786 = vmatprep.subr.bf16.mxu0 %v8729_v52  ;;  %v8784_v52 = vld [vmem:[#allocation19 + $0xcc0] ss:$28 sps:$4 sm:$0xff]  }
 0x78c   :  { %6787 = vmatpush1.bf16.msra.mxu0 %v8727_v16  ;;  %v8789_v16 = vld [vmem:[#allocation19 + $0xcfc] ss:$28 sps:$4 sm:$0xff]  }
 0x78d   :  { %6788 = vmatprep.subr.bf16.mxu0 %v8732_v28  ;;  %v8787_v28 = vld [vmem:[#allocation19 + $0xcf8] ss:$28 sps:$4 sm:$0xff]  }
 0x790   :  { %6789 = vmatpush1.bf16.msra.mxu0 %v8730_v9  ;;  %v8792_v9 = vld [vmem:[#allocation19 + $0xd34] ss:$28 sps:$4 sm:$0xff]  }
 0x791   :  { %6790 = vmatprep.subr.bf16.mxu0 %v8735_v13  ;;  %v8790_v13 = vld [vmem:[#allocation19 + $0xd30] ss:$28 sps:$4 sm:$0xff]  }
 0x794   :  { %6791 = vmatpush1.bf16.msra.mxu0 %v8733_v34  ;;  %v8795_v34 = vld [vmem:[#allocation19 + $0xd6c] ss:$28 sps:$4 sm:$0xff]  }
 0x795   :  { %6792 = vmatprep.subr.bf16.mxu0 %v8738_v37  ;;  %v8793_v37 = vld [vmem:[#allocation19 + $0xd68] ss:$28 sps:$4 sm:$0xff]  }
 0x798   :  { %6793 = vmatpush1.bf16.msra.mxu0 %v8736_v23  ;;  %v8798_v23 = vld [vmem:[#allocation19 + $0xda4] ss:$28 sps:$4 sm:$0xff]  }
 0x799   :  { %6794 = vmatprep.subr.bf16.mxu0 %v8741_v26 }
 0x79c   :  { %6795 = vmatpush1.bf16.msra.mxu0 %v8739_v36 }
 0x79d   :  { %6796 = vmatprep.subr.bf16.mxu0 %v8744_v40  ;;  %v8796_v40 = vld [vmem:[#allocation19 + $0xda0] ss:$28 sps:$4 sm:$0xff]  }
 0x7a0   :  { %6797 = vmatpush1.bf16.msra.mxu0 %v8742_v42 }
 0x7a1   :  { %6798 = vmatprep.subr.bf16.mxu0 %v8747_v44 }
 0x7a4   :  { %6799 = vmatpush1.bf16.msra.mxu0 %v8745_v50  ;;  %v8801_v50 = vld [vmem:[#allocation19 + $0xddc] ss:$28 sps:$4 sm:$0xff]  }
 0x7a5   :  { %6800 = vmatprep.subr.bf16.mxu0 %v8750_v54 }
 0x7a8   :  { %6801 = vmatpush1.bf16.msra.mxu0 %v8748_v55  ;;  %v8799_v55 = vld [vmem:[#allocation19 + $0xdd8] ss:$28 sps:$4 sm:$0xff]  }
 0x7a9   :  { %6802 = vmatprep.subr.bf16.mxu0 %v8753_v56  ;;  %v4050_v56 = vrot.slane %v9717_v32, %v9615_v21 }
 0x7ac   :  { %6803 = vmatpush1.bf16.msra.mxu0 %v8751_v2 }
 0x7ad   :  { %6813 = vmatprep.subr.bf16.mxu0 %v8756_v3 }
 0x7af   :  { %6805 = vmatmul.mubr.bf16.vlgmr.msra.gmra.mrb[16].mxu0 %v9688_v12  ;;  %v8771_v12 = vld [vmem:[#allocation19 + $0xbac] ss:$28 sps:$4 sm:$0xff]  }
 0x7b0   :  { %6814 = vmatpush1.bf16.msra.mxu0 %v8754_v10  ;;  %6845 = vmatprep.mubr.bf16.mxu0 %v9691_v17  ;;  %v4026_v17 = vrot.slane %v9717_v32, %v9413_v58 }
 0x7b1   :  { %6815 = vmatprep.subr.bf16.mxu0 %v8759_v14 }
 0x7b4   :  { %6816 = vmatpush1.bf16.msra.mxu0 %v8757_v61 }
 0x7b5   :  { %6817 = vmatprep.subr.bf16.mxu0 %v8762_v15 }
 0x7b8   :  { %6818 = vmatpush1.bf16.msra.mxu0 %v8760_v47 }
 0x7b9   :  { %6819 = vmatprep.subr.bf16.mxu0 %v8765_v60 }
 0x7bc   :  { %6820 = vmatpush1.bf16.msra.mxu0 %v8763_v22 }
 0x7bd   :  { %6821 = vmatprep.subr.bf16.mxu0 %v8768_v29 }
 0x7c0   :  { %6822 = vmatpush1.bf16.msra.mxu0 %v8766_v57 }
 0x7c1   :  { %6823 = vmatprep.subr.bf16.mxu0 %v8771_v12 }
 0x7c2   :  { %v6519_v18 = vpop.f32.mrb[12].mxu0 }
 0x7c3   :  { %v7949_v35 = vadd.f32 %v6519_v18, %v4026_v17  ;;  %v6683_v62 = vpop.f32.mrb[20].mxu1  ;;  %v6521_v31 = vpop.f32.mrb[13].mxu0  ;;  %v4042_v18 = vrot.slane %v9717_v32, %v9609_v48 }
 0x7c4   :  { %v7951_v25 = vadd.f32 %v6683_v62, %v4034_v30  ;;  %v7950_v43 = vadd.f32 %v6521_v31, %v4030_v41  ;;  %v6685_v58 = vpop.f32.mrb[21].mxu1  ;;  %v6523_v63 = vpop.f32.mrb[14].mxu0  ;;  %6824 = vmatpush1.bf16.msra.mxu0 %v8769_v24 }
 0x7c5   :  { %8830 = vtanh.f32 %v7949_v35  ;;  %v7952_v46 = vadd.f32 %v6685_v58, %v4038_v38  ;;  %v6687_v5 = vpop.f32.mrb[22].mxu1  ;;  %v6524_v59 = vpop.f32.mrb[15].mxu0  ;;  %6825 = vmatprep.subr.bf16.mxu0 %v8774_v45  ;;  %v4046_v35 = vrot.slane %v9717_v32, %v9612_v19 }
 0x7c6   :  { %8832 = vtanh.f32 %v7951_v25  ;;  %v6688_v49 = vpop.f32.mrb[23].mxu1 }
 0x7c7   :  { %8834 = vtanh.f32 %v7950_v43 }
 0x7c8   :  { %8836 = vtanh.f32 %v7952_v46  ;;  %6826 = vmatpush1.bf16.msra.mxu0 %v8772_v4 }
 0x7c9   :  { %6827 = vmatprep.subr.bf16.mxu0 %v8777_v51 }
 0x7cc   :  { %6828 = vmatpush1.bf16.msra.mxu0 %v8775_v20 }
 0x7cd   :  { %6829 = vmatprep.subr.bf16.mxu0 %v8780_v6 }
 0x7cf   :  { %v8831_v8 = vpop.eup %8830 }
 0x7d0   :  { %v8833_v33 = vpop.eup %8832  ;;  %7021 = vst [vmem:[%s9769_s14] sm:$0xff] %v8831_v8  ;;  %6830 = vmatpush1.bf16.msra.mxu0 %v8778_v0 }
 0x7d1   :  { %v8835_v53 = vpop.eup %8834  ;;  %7023 = vst [vmem:[%s9769_s14 + $0x10] sm:$0xff] %v8833_v33  ;;  %6831 = vmatprep.subr.bf16.mxu0 %v8783_v7 }
 0x7d2   :  { %v8837_v27 = vpop.eup %8836  ;;  %7022 = vst [vmem:[%s9769_s14 + $0x8] sm:$0xff] %v8835_v53 }
 0x7d3   :  { %7024 = vst [vmem:[%s9769_s14 + $0x18] sm:$0xff] %v8837_v27 }
 0x7d4   :  { %6832 = vmatpush1.bf16.msra.mxu0 %v8781_v39 }
 0x7d5   :  { %6833 = vmatprep.subr.bf16.mxu0 %v8786_v11 }
 0x7d8   :  { %6834 = vmatpush1.bf16.msra.mxu0 %v8784_v52 }
 0x7d9   :  { %6835 = vmatprep.subr.bf16.mxu0 %v8789_v16 }
 0x7dc   :  { %6836 = vmatpush1.bf16.msra.mxu0 %v8787_v28 }
 0x7dd   :  { %6837 = vmatprep.subr.bf16.mxu0 %v8792_v9 }
 0x7e0   :  { %6838 = vmatpush1.bf16.msra.mxu0 %v8790_v13 }
 0x7e1   :  { %6839 = vmatprep.subr.bf16.mxu0 %v8795_v34 }
 0x7e3   :  { %v7857_v26 = vpop.f32.mrb[24].mxu1 }
 0x7e4   :  { %v7858_v36 = vpop.f32.mrb[25].mxu1  ;;  %6840 = vmatpush1.bf16.msra.mxu0 %v8793_v37 }
 0x7e5   :  { %v7859_v42 = vadd.f32 %v7858_v36, %v7857_v26  ;;  %v7860_v44 = vpop.f32.mrb[26].mxu1  ;;  %6841 = vmatprep.subr.bf16.mxu0 %v8798_v23 }
 0x7e6   :  { %v7861_v54 = vpop.f32.mrb[27].mxu1 }
 0x7e7   :  { %v6889_v10 = vadd.f32 %v7859_v42, %v4050_v56 }
 0x7e8   :  { %6842 = vmatpush1.bf16.msra.mxu0 %v8796_v40 }
 0x7e9   :  { %6843 = vmatprep.subr.bf16.mxu0 %v8801_v50 }
 0x7ec   :  { %6844 = vmatpush1.bf16.msra.mxu0 %v8799_v55 }
 0x7ef   :  { %6846 = vmatmul.mubr.bf16.vlgmr.msra.gmra.mrb[16].mxu0 %v9698_v1 }
 0x803   :  { %v7879_v2 = vpop.f32.mrb[28].mxu1 }
 0x804   :  { %v7880_v3 = vpop.f32.mrb[29].mxu1 }
 0x805   :  { %v7881_v14 = vadd.f32 %v7880_v3, %v7879_v2  ;;  %v7882_v61 = vpop.f32.mrb[30].mxu1 }
 0x806   :  { %v7883_v15 = vpop.f32.mrb[31].mxu1 }
 0x807   :  { %v6929_v47 = vadd.f32 %v7881_v14, %v6889_v10 }
 0x823   :  { %v7901_v60 = vpop.f32.mrb[32].mxu1 }
 0x824   :  { %v7902_v22 = vpop.f32.mrb[33].mxu1 }
 0x825   :  { %v7903_v29 = vadd.f32 %v7902_v22, %v7901_v60  ;;  %v7904_v57 = vpop.f32.mrb[34].mxu1 }
 0x826   :  { %v7905_v12 = vpop.f32.mrb[35].mxu1 }
 0x827   :  { %v6969_v17 = vadd.f32 %v7903_v29, %v6929_v47 }
 0x843   :  { %v7923_v30 = vpop.f32.mrb[36].mxu1 }
 0x844   :  { %v7924_v41 = vpop.f32.mrb[37].mxu1 }
 0x845   :  { %v7925_v24 = vadd.f32 %v7924_v41, %v7923_v30  ;;  %v7926_v1 = vpop.f32.mrb[38].mxu1 }
 0x846   :  { %v7927_v38 = vpop.f32.mrb[39].mxu1 }
 0x847   :  { %v7009_v45 = vadd.f32 %v7925_v24, %v6969_v17 }
 0x849   :  { %8838 = vtanh.f32 %v7009_v45 }
 0x853   :  { %v8839_v21 = vpop.eup %8838 }
 0x854   :  { %7027 = vst [vmem:[%s9769_s14 + $0x30] sm:$0xff] %v8839_v21 }
 0x8c2   :  { %v6847_v62 = vpop.f32.mrb[16].mxu0 }
 0x8c3   :  { %v7953_v31 = vadd.f32 %v6847_v62, %v4042_v18  ;;  %v6849_v25 = vpop.f32.mrb[17].mxu0 }
 0x8c4   :  { %v7954_v43 = vadd.f32 %v6849_v25, %v4046_v35  ;;  %v6851_v58 = vpop.f32.mrb[18].mxu0 }
 0x8c5   :  { %8840 = vtanh.f32 %v7953_v31  ;;  %v6852_v63 = vpop.f32.mrb[19].mxu0 }
 0x8c6   :  { %8842 = vtanh.f32 %v7954_v43 }
 0x8cf   :  { %v8841_v4 = vpop.eup %8840 }
 0x8d0   :  { %v8843_v46 = vpop.eup %8842  ;;  %7025 = vst [vmem:[%s9769_s14 + $0x20] sm:$0xff] %v8841_v4 }
 0x8d1   :  { %7026 = vst [vmem:[%s9769_s14 + $0x28] sm:$0xff] %v8843_v46 }
 0x8d2   :  { %7032 = vsyncpa [#allocation3], 1 }
 0x8d3   :  { %7033 = vsyncpa [#allocation5], 1 }
 0x8d4   :  { %7034 = vsyncpa [#allocation8], 1 }
 0x8d5   :  { %7035 = vsyncpa [#allocation11], 1 }
 0x8d6   :  { %7036 = vsyncpa [#allocation14], 1 }
 0x8d7   :  { %7037 = vsyncpa [#allocation17], 1 }
 0x8d8   :  { %7038 = vsyncpa [#allocation20], 1 }

</bundles_post_ra>
